<compile_context>
chip_gen: v5e
topology: v5e:2x2
jax: 0.10.0
libtpu: 0.0.40
codegen_flags: <defaults>
</compile_context>

<pallas_src>
import numpy as np
import jax
import jax.numpy as jnp
from jax import lax
from jax.experimental import pallas as pl
from jax.experimental.pallas import tpu as pltpu

_EPS = 1e-5
_BN_MOMENTUM = 0.1          # F.batch_norm default


def _round_up(n, m):
    return ((n + m - 1) // m) * m


def _spec(shape):
    nd = len(shape)
    return pl.BlockSpec(shape, lambda i, _nd=nd: (0,) * _nd)


# ---------------------------------------------------------------------------
# Structural constant: 0/1 gather matrix turning "extract conv patches" into a
# single MXU matmul.  Each tap occupies its own `tap_stride`(=padded-lane)
# block, so tap slices inside the kernel are vreg-aligned.
# ---------------------------------------------------------------------------
def _gather_matrix(B, H, W, kh, kw, stride, pad, src_rows, tap_stride):
    OH = (H + 2 * pad - kh) // stride + 1
    OW = (W + 2 * pad - kw) // stride + 1
    O = OH * OW
    assert B * O <= tap_stride and B * H * W <= src_rows
    g = np.zeros((src_rows, kh * kw * tap_stride), np.float32)
    for b in range(B):
        for oh in range(OH):
            for ow in range(OW):
                n_out = b * O + oh * OW + ow
                for i in range(kh):
                    for j in range(kw):
                        h = oh * stride + i - pad
                        w = ow * stride + j - pad
                        if 0 <= h < H and 0 <= w < W:
                            t = i * kw + j
                            g[b * H * W + h * W + w, t * tap_stride + n_out] = 1.0
    return g


def _parse_config(config, in_c, in_h, in_w):
    """Expects (conv2d, relu, bn)* + flatten + linear (the Learner config)."""
    convs = []
    c, h, w = in_c, in_h, in_w
    i = 0
    while i < len(config) and config[i][0] == 'conv2d':
        c_out, c_in, kh, kw, stride, pad = config[i][1][:6]
        assert c_in == c, "channel chain mismatch"
        assert config[i + 1][0] == 'relu', "expected relu after conv2d"
        assert config[i + 2][0] == 'bn' and config[i + 2][1][0] == c_out
        oh = (h + 2 * pad - kh) // stride + 1
        ow = (w + 2 * pad - kw) // stride + 1
        convs.append(dict(c_in=c_in, c_out=c_out, kh=kh, kw=kw, stride=stride,
                          pad=pad, h=h, w=w, oh=oh, ow=ow))
        c, h, w = c_out, oh, ow
        i += 3
    assert i < len(config) and config[i][0] == 'flatten'
    i += 1
    assert i < len(config) and config[i][0] == 'linear'
    lin_out, lin_in = config[i][1]
    assert lin_in == c * h * w
    i += 1
    assert i == len(config), "unsupported trailing ops"
    if h * w != 1:
        # TODO(synk): general NCHW flatten for final spatial > 1x1 not implemented.
        raise NotImplementedError("fused kernel requires final conv output to be 1x1")
    # TODO(synk): convt2d / upsample / max_pool2d / avg_pool2d / tanh / sigmoid /
    #             leakyrelu branches of Learner are not needed by this config.
    return convs, (lin_out, lin_in)


# ---------------------------------------------------------------------------
# Fused forward builder: one pallas_call for the whole network.
# ---------------------------------------------------------------------------
def make_learner_forward(config, x_shape, bn_training=True):
    B, C0, H0, W0 = x_shape
    convs, (lin_out, lin_in) = _parse_config(config, C0, H0, W0)
    n_conv = len(convs)
    C = convs[0]['c_out']
    assert all(cv['c_out'] == C for cv in convs) and C % 8 == 0
    assert lin_in == C and lin_out <= 128 and B <= 128

    # Lane widths (true vs padded-to-128) of every conv output.
    n_true = [B * cv['oh'] * cv['ow'] for cv in convs]
    n_pad = [_round_up(n, 128) for n in n_true]

    k1 = convs[0]['kh'] * convs[0]['kw'] * convs[0]['c_in']
    k1p = _round_up(k1, 16)
    assert k1p <= 128

    # Padded K per conv layer >= 2 (multiple of 16 for clean bf16 operands).
    k_true = [None] + [convs[l]['kh'] * convs[l]['kw'] * convs[l]['c_in']
                       for l in range(1, n_conv)]
    k_pad = [k1p] + [_round_up(k, 16) for k in k_true[1:]]
    assert all(k <= 128 for k in k_pad)

    # ---- packed gather slab (bf16, built once; 0/1 so exact in bf16) --------
    g_lanes = max(convs[l]['kh'] * convs[l]['kw'] * n_pad[l] for l in range(1, n_conv))
    g_blocks, g_row_off = [], []
    row = 0
    for l in range(1, n_conv):
        cv = convs[l]
        g = _gather_matrix(B, cv['h'], cv['w'], cv['kh'], cv['kw'],
                           cv['stride'], cv['pad'], n_pad[l - 1], n_pad[l])
        g_blocks.append(np.pad(g, ((0, 0), (0, g_lanes - g.shape[1]))))
        g_row_off.append(row)
        row += n_pad[l - 1]
    g_rows = row
    gslab = jnp.asarray(np.concatenate(g_blocks, axis=0)).astype(jnp.bfloat16)

    # ---- packed parameter slabs --------------------------------------------
    w_rows = _round_up(n_conv * C + lin_in, 8)        # weight slab [w_rows, 128] bf16
    tab_rows = _round_up(n_conv * C + 1, 8)           # bias/BN table [tab_rows, 128] f32
    b_pad = max(8, _round_up(B, 8))

    in_shapes = [(k1p, n_pad[0]), (g_rows, g_lanes), (w_rows, 128), (tab_rows, 128)]
    mom = _BN_MOMENTUM

    # ---------------------------- the fused kernel ----------------------------
    def kernel(cols_ref, g_ref, w_ref, tab_ref, out_ref, stats_ref):
        stats_cols = []

        def relu_bn(z, l):
            """bias add -> ReLU -> BatchNorm epilogue.  z: [C, n_pad] f32."""
            r0 = l * C
            blk = tab_ref[r0:r0 + C, :]                      # [C, 128] f32
            bias, gam, bet = blk[:, 0:1], blk[:, 1:2], blk[:, 2:3]
            rm, rv = blk[:, 3:4], blk[:, 4:5]
            nt = n_true[l]
            z = jnp.maximum(z + bias, 0.0)                   # fused bias + ReLU
            if z.shape[1] != nt:                             # zero padding lanes so
                lane = lax.broadcasted_iota(jnp.int32, z.shape, 1)
                z = jnp.where(lane < nt, z, 0.0)             # stats use true count
            if bn_training:
                inv_n = 1.0 / float(nt)
                # merged s1/s2: one cross-lane reduce over sublane-stacked [2C, N]
                s = jnp.sum(jnp.concatenate([z, z * z], axis=0),
                            axis=1, keepdims=True)           # [2C, 1]
                mean = s[:C] * inv_n
                var = jnp.maximum(s[C:] * inv_n - mean * mean, 0.0)   # biased
                unb = float(nt) / float(nt - 1) if nt > 1 else 1.0
                stats_cols.append((1.0 - mom) * rm + mom * mean)
                stats_cols.append((1.0 - mom) * rv + mom * (var * unb))
            else:
                mean, var = rm, rv
                stats_cols.append(rm)
                stats_cols.append(rv)
            scale = gam * lax.rsqrt(var + _EPS)
            return (z - mean) * scale + bet

        # conv block 1: host-provided im2col columns, single MXU matmul.
        z = jnp.dot(w_ref[0:C, 0:k1p], cols_ref[...],
                    preferred_element_type=jnp.float32)      # [C, n_pad0]
        a = relu_bn(z, 0)

        # conv blocks 2..n: gather (one aligned matmul) -> restack taps along
        # sublanes (vreg-aligned concat) -> ONE conv matmul with K = taps*Cin.
        for l in range(1, n_conv):
            cv = convs[l]
            taps = cv['kh'] * cv['kw']
            npd = n_pad[l]
            gr0, grows = g_row_off[l - 1], n_pad[l - 1]
            p = jnp.dot(a.astype(jnp.bfloat16),
                        g_ref[gr0:gr0 + grows, 0:taps * npd],
                        preferred_element_type=jnp.float32)  # [C, taps*npd]
            pieces = [p[:, t * npd:(t + 1) * npd] for t in range(taps)]
            if k_pad[l] > taps * cv['c_in']:
                pieces.append(jnp.zeros((k_pad[l] - taps * cv['c_in'], npd),
                                        jnp.float32))
            colsv = jnp.concatenate(pieces, axis=0)          # [k_pad, npd]
            z = jnp.dot(w_ref[l * C:(l + 1) * C, 0:k_pad[l]],
                        colsv.astype(jnp.bfloat16),
                        preferred_element_type=jnp.float32)  # [C, npd]
            a = relu_bn(z, l)

        # flatten (final spatial 1x1) + linear: contract the sublane (channel)
        # axis directly, lane-dense 128-wide output store.
        feat = a[:, 0:b_pad]                                 # [C, b_pad] f32
        wlin = w_ref[n_conv * C:n_conv * C + lin_in, :].astype(jnp.float32)
        res = lax.dot_general(feat, wlin, (((0,), (0,)), ((), ())),
                              preferred_element_type=jnp.float32)   # [b_pad, 128]
        out_ref[...] = res + tab_ref[n_conv * C:n_conv * C + 1, :]

        # single batched store of all running-stat updates.
        stats_ref[...] = jnp.concatenate(stats_cols, axis=1)        # [C, 2*n_conv]

    fused = pl.pallas_call(
        kernel,
        out_shape=(jax.ShapeDtypeStruct((b_pad, 128), jnp.float32),
                   jax.ShapeDtypeStruct((C, 2 * n_conv), jnp.float32)),
        grid=(1,),
        in_specs=[_spec(s) for s in in_shapes],
        out_specs=(_spec((b_pad, 128)), _spec((C, 2 * n_conv))),
        compiler_params=pltpu.CompilerParams(
            dimension_semantics=("arbitrary",)),
    )

    # ------------------------- host-side (XLA) wrapper -------------------------
    kh0, kw0 = convs[0]['kh'], convs[0]['kw']
    s0, p0 = convs[0]['stride'], convs[0]['pad']
    oh0, ow0 = convs[0]['oh'], convs[0]['ow']

    def _im2col_first(x):
        """NCHW input -> padded, transposed im2col columns [k1p, n_pad0] bf16."""
        xh = jnp.transpose(x, (0, 2, 3, 1)).astype(jnp.float32)       # NHWC
        if p0:
            xh = jnp.pad(xh, ((0, 0), (p0, p0), (p0, p0), (0, 0)))
        pats = []
        for ii in range(kh0):
            for jj in range(kw0):
                pats.append(xh[:, ii:ii + s0 * (oh0 - 1) + 1:s0,
                               jj:jj + s0 * (ow0 - 1) + 1:s0, :])
        cols = jnp.stack(pats, axis=3).reshape(n_true[0], k1)         # (i,j,ci)
        cols = jnp.pad(cols, ((0, n_pad[0] - n_true[0]), (0, k1p - k1)))
        return cols.T.astype(jnp.bfloat16)

    def forward(x, vars_, vars_bn):
        cols = _im2col_first(x)

        wblocks, tblocks = [], []
        vi = 0
        for l, cv in enumerate(convs):
            w, b = vars_[vi], vars_[vi + 1]; vi += 2
            if l == 0:
                wf = jnp.transpose(w, (2, 3, 1, 0)).reshape(k1, C).T   # [C, k1]
                wf = jnp.pad(wf, ((0, 0), (0, k1p - k1)))
            else:
                wf = jnp.transpose(w, (0, 2, 3, 1)).reshape(
                    C, cv['kh'] * cv['kw'] * cv['c_in'])               # [C, taps*Cin]
            wblocks.append(jnp.pad(wf, ((0, 0), (0, 128 - wf.shape[1]))))
            g, bt = vars_[vi], vars_[vi + 1]; vi += 2                  # bn gamma/beta
            rm, rv = vars_bn[2 * l], vars_bn[2 * l + 1]
            tl = jnp.stack([b, g, bt, rm, rv], axis=1)                 # [C, 5]
            tblocks.append(jnp.pad(tl, ((0, 0), (0, 128 - 5))))
        wl, bl = vars_[vi], vars_[vi + 1]; vi += 2                     # linear
        assert vi == len(vars_)
        wblocks.append(jnp.pad(wl.T, ((0, 0), (0, 128 - lin_out))))    # [lin_in, 128]
        tblocks.append(jnp.pad(bl, (0, 128 - lin_out)).reshape(1, 128))

        wslab = jnp.concatenate(wblocks, axis=0)
        wslab = jnp.pad(wslab, ((0, w_rows - wslab.shape[0]), (0, 0))
                        ).astype(jnp.bfloat16)
        tab = jnp.concatenate(tblocks, axis=0)
        tab = jnp.pad(tab, ((0, tab_rows - tab.shape[0]), (0, 0)))

        out_pad, stats = fused(cols, gslab, wslab, tab)
        out = out_pad[:B, :lin_out]
        if bn_training:
            new_bn = []                                   # updated running statistics
            for l in range(n_conv):
                new_bn.append(stats[:, 2 * l])
                new_bn.append(stats[:, 2 * l + 1])
        else:
            new_bn = list(vars_bn)
        return out, new_bn

    return jax.jit(forward)


# ---------------------------------------------------------------------------
# Parameter init matching Learner.__init__ (kaiming-normal conv/linear).
# ---------------------------------------------------------------------------
def init_learner_params(config, key):
    vars_, vars_bn = [], []
    for name, param in config:
        if name == 'conv2d':
            c_out, c_in, kh, kw = param[:4]
            key, sub = jax.random.split(key)
            fan_in = c_in * kh * kw
            w = jax.random.normal(sub, (c_out, c_in, kh, kw), jnp.float32)
            vars_.append(w * jnp.sqrt(2.0 / fan_in))
            vars_.append(jnp.zeros((c_out,), jnp.float32))
        elif name == 'linear':
            out_f, in_f = param
            key, sub = jax.random.split(key)
            w = jax.random.normal(sub, (out_f, in_f), jnp.float32)
            vars_.append(w * jnp.sqrt(2.0 / in_f))
            vars_.append(jnp.zeros((out_f,), jnp.float32))
        elif name == 'bn':
            c = param[0]
            vars_.append(jnp.ones((c,), jnp.float32))
            vars_.append(jnp.zeros((c,), jnp.float32))
            vars_bn.append(jnp.zeros((c,), jnp.float32))   # running_mean
            vars_bn.append(jnp.ones((c,), jnp.float32))    # running_var
        elif name in ('tanh', 'relu', 'upsample', 'avg_pool2d', 'max_pool2d',
                      'flatten', 'reshape', 'leakyrelu', 'sigmoid'):
            continue
        else:
            raise NotImplementedError(name)
    return vars_, vars_bn


# ---------------------------------------------------------------------------
if __name__ == "__main__":
    # 4x[conv2d, relu, bn] + flatten + linear -> 18 params, first 16 = "hyper".
    config = [
        ('conv2d', [8, 1, 3, 3, 2, 0]),
        ('relu', [True]),
        ('bn', [8]),
        ('conv2d', [8, 8, 3, 3, 2, 0]),
        ('relu', [True]),
        ('bn', [8]),
        ('conv2d', [8, 8, 3, 3, 2, 0]),
        ('relu', [True]),
        ('bn', [8]),
        ('conv2d', [8, 8, 2, 2, 1, 0]),
        ('relu', [True]),
        ('bn', [8]),
        ('flatten', []),
        ('linear', [5, 8]),
    ]

    key = jax.random.PRNGKey(0)
    k_x, k_p = jax.random.split(key)
    x = jax.random.normal(k_x, (2, 1, 28, 28), jnp.float32)     # [b, 1, 28, 28]

    vars_, vars_bn = init_learner_params(config, k_p)
    assert len(vars_) == 18 and len(vars_bn) == 8

    # Training-mode forward (batch statistics + functional running-stat update).
    fwd_train = make_learner_forward(config, x.shape, bn_training=True)
    out, new_bn = fwd_train(x, vars_, vars_bn)
    out = jax.block_until_ready(out)
    assert out.shape == (2, 5) and out.dtype == jnp.float32
    assert len(new_bn) == len(vars_bn)

    # Eval-mode forward (uses running statistics, no update).
    fwd_eval = make_learner_forward(config, x.shape, bn_training=False)
    out_eval, _ = fwd_eval(x, vars_, new_bn)
    out_eval = jax.block_until_ready(out_eval)
    assert out_eval.shape == (2, 5)

    print("KERNEL_OK")
</pallas_src>

<mosaic_0001>
module attributes {stable_mosaic.version = 11 : i64} {
  func.func @kernel(%arg0: i32, %arg1: memref<16x384xbf16, #tpu.memory_space<vmem>>, %arg2: memref<640x1152xbf16, #tpu.memory_space<vmem>>, %arg3: memref<40x128xbf16, #tpu.memory_space<vmem>>, %arg4: memref<40x128xf32, #tpu.memory_space<vmem>>, %arg5: memref<8x128xf32, #tpu.memory_space<vmem>>, %arg6: memref<8x8xf32, #tpu.memory_space<vmem>>) attributes {dimension_semantics = [#tpu.dimension_semantics<arbitrary>], iteration_bounds = array<i64: 1>, scalar_prefetch = 0 : i64, scratch_operands = 0 : i64, tpu.core_type = #tpu.core_type<tc>, window_params = [{pipeline_mode = #tpu.pipeline_mode<synchronous>, transform_indices = @transform_0, window_bounds = array<i64: 16, 384>}, {pipeline_mode = #tpu.pipeline_mode<synchronous>, transform_indices = @transform_1, window_bounds = array<i64: 640, 1152>}, {pipeline_mode = #tpu.pipeline_mode<synchronous>, transform_indices = @transform_2, window_bounds = array<i64: 40, 128>}, {pipeline_mode = #tpu.pipeline_mode<synchronous>, transform_indices = @transform_3, window_bounds = array<i64: 40, 128>}, {pipeline_mode = #tpu.pipeline_mode<synchronous>, transform_indices = @transform_4, window_bounds = array<i64: 8, 128>}, {pipeline_mode = #tpu.pipeline_mode<synchronous>, transform_indices = @transform_5, window_bounds = array<i64: 8, 8>}]} {
    %c0 = arith.constant 0 : index
    %c0_0 = arith.constant 0 : index
    %0 = vector.load %arg3[%c0, %c0_0] : memref<40x128xbf16, #tpu.memory_space<vmem>>, vector<8x16xbf16>
    %c0_1 = arith.constant 0 : index
    %c0_2 = arith.constant 0 : index
    %1 = vector.load %arg1[%c0_1, %c0_2] : memref<16x384xbf16, #tpu.memory_space<vmem>>, vector<16x384xbf16>
    %cst = arith.constant dense<0.000000e+00> : vector<8x384xf32>
    %2 = tpu.matmul %0, %1, %cst {dimension_numbers = #tpu.dot_dimension_numbers<[1], [0], [0], [1], [0, 0, 1, 1], [], []>} : vector<8x16xbf16>, vector<16x384xbf16>, vector<8x384xf32> -> vector<8x384xf32>
    %c0_3 = arith.constant 0 : index
    %c0_4 = arith.constant 0 : index
    %3 = vector.load %arg4[%c0_3, %c0_4] : memref<40x128xf32, #tpu.memory_space<vmem>>, vector<8x128xf32>
    %4 = vector.extract_strided_slice %3 {offsets = [0, 0], sizes = [8, 1], strides = [1, 1]} : vector<8x128xf32> to vector<8x1xf32>
    %5 = vector.extract_strided_slice %3 {offsets = [0, 1], sizes = [8, 1], strides = [1, 1]} : vector<8x128xf32> to vector<8x1xf32>
    %6 = vector.extract_strided_slice %3 {offsets = [0, 2], sizes = [8, 1], strides = [1, 1]} : vector<8x128xf32> to vector<8x1xf32>
    %7 = vector.extract_strided_slice %3 {offsets = [0, 3], sizes = [8, 1], strides = [1, 1]} : vector<8x128xf32> to vector<8x1xf32>
    %8 = vector.extract_strided_slice %3 {offsets = [0, 4], sizes = [8, 1], strides = [1, 1]} : vector<8x128xf32> to vector<8x1xf32>
    %9 = vector.broadcast %4 : vector<8x1xf32> to vector<8x384xf32>
    %10 = arith.addf %2, %9 : vector<8x384xf32>
    %cst_5 = arith.constant 0.000000e+00 : f32
    %11 = vector.broadcast %cst_5 : f32 to vector<8x384xf32>
    %12 = arith.maximumf %10, %11 : vector<8x384xf32>
    %13 = tpu.iota {dimensions = array<i32: 1>} : vector<8x384xi32>
    %c338_i32 = arith.constant 338 : i32
    %14 = vector.broadcast %c338_i32 : i32 to vector<8x384xi32>
    %15 = arith.cmpi slt, %13, %14 : vector<8x384xi32>
    %cst_6 = arith.constant 0.000000e+00 : f32
    %16 = vector.broadcast %cst_6 : f32 to vector<8x384xf32>
    %17 = arith.select %15, %12, %16 : vector<8x384xi1>, vector<8x384xf32>
    %18 = arith.mulf %17, %17 : vector<8x384xf32>
    %19 = tpu.concatenate %17, %18 in 0 : vector<8x384xf32>, vector<8x384xf32> -> vector<16x384xf32>
    %cst_7 = arith.constant dense<0.000000e+00> : vector<16xf32>
    %20 = vector.multi_reduction <add>, %19, %cst_7 [1] : vector<16x384xf32> to vector<16xf32>
    %21 = vector.shape_cast %20 : vector<16xf32> to vector<16x1xf32>
    %22 = vector.extract_strided_slice %21 {offsets = [0, 0], sizes = [8, 1], strides = [1, 1]} : vector<16x1xf32> to vector<8x1xf32>
    %cst_8 = arith.constant 2.958580e-03 : f32
    %23 = vector.broadcast %cst_8 : f32 to vector<8x1xf32>
    %24 = arith.mulf %22, %23 : vector<8x1xf32>
    %25 = vector.extract_strided_slice %21 {offsets = [8, 0], sizes = [8, 1], strides = [1, 1]} : vector<16x1xf32> to vector<8x1xf32>
    %cst_9 = arith.constant 2.958580e-03 : f32
    %26 = vector.broadcast %cst_9 : f32 to vector<8x1xf32>
    %27 = arith.mulf %25, %26 : vector<8x1xf32>
    %28 = arith.mulf %24, %24 : vector<8x1xf32>
    %29 = arith.subf %27, %28 : vector<8x1xf32>
    %cst_10 = arith.constant 0.000000e+00 : f32
    %30 = vector.broadcast %cst_10 : f32 to vector<8x1xf32>
    %31 = arith.maximumf %29, %30 : vector<8x1xf32>
    %cst_11 = arith.constant 0.899999976 : f32
    %32 = vector.broadcast %cst_11 : f32 to vector<8x1xf32>
    %33 = arith.mulf %32, %7 : vector<8x1xf32>
    %cst_12 = arith.constant 1.000000e-01 : f32
    %34 = vector.broadcast %cst_12 : f32 to vector<8x1xf32>
    %35 = arith.mulf %34, %24 : vector<8x1xf32>
    %36 = arith.addf %33, %35 : vector<8x1xf32>
    %cst_13 = arith.constant 0.899999976 : f32
    %37 = vector.broadcast %cst_13 : f32 to vector<8x1xf32>
    %38 = arith.mulf %37, %8 : vector<8x1xf32>
    %cst_14 = arith.constant 1.00296736 : f32
    %39 = vector.broadcast %cst_14 : f32 to vector<8x1xf32>
    %40 = arith.mulf %31, %39 : vector<8x1xf32>
    %cst_15 = arith.constant 1.000000e-01 : f32
    %41 = vector.broadcast %cst_15 : f32 to vector<8x1xf32>
    %42 = arith.mulf %41, %40 : vector<8x1xf32>
    %43 = arith.addf %38, %42 : vector<8x1xf32>
    %cst_16 = arith.constant 9.99999974E-6 : f32
    %44 = vector.broadcast %cst_16 : f32 to vector<8x1xf32>
    %45 = arith.addf %31, %44 : vector<8x1xf32>
    %46 = math.rsqrt %45 : vector<8x1xf32>
    %47 = arith.mulf %5, %46 : vector<8x1xf32>
    %48 = vector.broadcast %24 : vector<8x1xf32> to vector<8x384xf32>
    %49 = arith.subf %17, %48 : vector<8x384xf32>
    %50 = vector.broadcast %47 : vector<8x1xf32> to vector<8x384xf32>
    %51 = arith.mulf %49, %50 : vector<8x384xf32>
    %52 = vector.broadcast %6 : vector<8x1xf32> to vector<8x384xf32>
    %53 = arith.addf %51, %52 : vector<8x384xf32>
    %54 = arith.truncf %53 : vector<8x384xf32> to vector<8x384xbf16>
    %c0_17 = arith.constant 0 : index
    %c0_18 = arith.constant 0 : index
    %55 = vector.load %arg2[%c0_17, %c0_18] : memref<640x1152xbf16, #tpu.memory_space<vmem>>, vector<384x1152xbf16>
    %cst_19 = arith.constant dense<0.000000e+00> : vector<8x1152xf32>
    %56 = tpu.matmul %54, %55, %cst_19 {dimension_numbers = #tpu.dot_dimension_numbers<[1], [0], [0], [1], [0, 0, 1, 1], [], []>} : vector<8x384xbf16>, vector<384x1152xbf16>, vector<8x1152xf32> -> vector<8x1152xf32>
    %57 = vector.extract_strided_slice %56 {offsets = [0, 0], sizes = [8, 128], strides = [1, 1]} : vector<8x1152xf32> to vector<8x128xf32>
    %58 = vector.extract_strided_slice %56 {offsets = [0, 128], sizes = [8, 128], strides = [1, 1]} : vector<8x1152xf32> to vector<8x128xf32>
    %59 = vector.extract_strided_slice %56 {offsets = [0, 256], sizes = [8, 128], strides = [1, 1]} : vector<8x1152xf32> to vector<8x128xf32>
    %60 = vector.extract_strided_slice %56 {offsets = [0, 384], sizes = [8, 128], strides = [1, 1]} : vector<8x1152xf32> to vector<8x128xf32>
    %61 = vector.extract_strided_slice %56 {offsets = [0, 512], sizes = [8, 128], strides = [1, 1]} : vector<8x1152xf32> to vector<8x128xf32>
    %62 = vector.extract_strided_slice %56 {offsets = [0, 640], sizes = [8, 128], strides = [1, 1]} : vector<8x1152xf32> to vector<8x128xf32>
    %63 = vector.extract_strided_slice %56 {offsets = [0, 768], sizes = [8, 128], strides = [1, 1]} : vector<8x1152xf32> to vector<8x128xf32>
    %64 = vector.extract_strided_slice %56 {offsets = [0, 896], sizes = [8, 128], strides = [1, 1]} : vector<8x1152xf32> to vector<8x128xf32>
    %65 = vector.extract_strided_slice %56 {offsets = [0, 1024], sizes = [8, 128], strides = [1, 1]} : vector<8x1152xf32> to vector<8x128xf32>
    %cst_20 = arith.constant 0.000000e+00 : f32
    %66 = vector.broadcast %cst_20 : f32 to vector<8x128xf32>
    %67 = tpu.concatenate %57, %58, %59, %60, %61, %62, %63, %64, %65, %66 in 0 : vector<8x128xf32>, vector<8x128xf32>, vector<8x128xf32>, vector<8x128xf32>, vector<8x128xf32>, vector<8x128xf32>, vector<8x128xf32>, vector<8x128xf32>, vector<8x128xf32>, vector<8x128xf32> -> vector<80x128xf32>
    %c8 = arith.constant 8 : index
    %c0_21 = arith.constant 0 : index
    %68 = vector.load %arg3[%c8, %c0_21] : memref<40x128xbf16, #tpu.memory_space<vmem>>, vector<8x80xbf16>
    %69 = arith.truncf %67 : vector<80x128xf32> to vector<80x128xbf16>
    %cst_22 = arith.constant dense<0.000000e+00> : vector<8x128xf32>
    %70 = tpu.matmul %68, %69, %cst_22 {dimension_numbers = #tpu.dot_dimension_numbers<[1], [0], [0], [1], [0, 0, 1, 1], [], []>} : vector<8x80xbf16>, vector<80x128xbf16>, vector<8x128xf32> -> vector<8x128xf32>
    %c8_23 = arith.constant 8 : index
    %c0_24 = arith.constant 0 : index
    %71 = vector.load %arg4[%c8_23, %c0_24] : memref<40x128xf32, #tpu.memory_space<vmem>>, vector<8x128xf32>
    %72 = vector.extract_strided_slice %71 {offsets = [0, 0], sizes = [8, 1], strides = [1, 1]} : vector<8x128xf32> to vector<8x1xf32>
    %73 = vector.extract_strided_slice %71 {offsets = [0, 1], sizes = [8, 1], strides = [1, 1]} : vector<8x128xf32> to vector<8x1xf32>
    %74 = vector.extract_strided_slice %71 {offsets = [0, 2], sizes = [8, 1], strides = [1, 1]} : vector<8x128xf32> to vector<8x1xf32>
    %75 = vector.extract_strided_slice %71 {offsets = [0, 3], sizes = [8, 1], strides = [1, 1]} : vector<8x128xf32> to vector<8x1xf32>
    %76 = vector.extract_strided_slice %71 {offsets = [0, 4], sizes = [8, 1], strides = [1, 1]} : vector<8x128xf32> to vector<8x1xf32>
    %77 = vector.broadcast %72 : vector<8x1xf32> to vector<8x128xf32>
    %78 = arith.addf %70, %77 : vector<8x128xf32>
    %cst_25 = arith.constant 0.000000e+00 : f32
    %79 = vector.broadcast %cst_25 : f32 to vector<8x128xf32>
    %80 = arith.maximumf %78, %79 : vector<8x128xf32>
    %81 = tpu.iota {dimensions = array<i32: 1>} : vector<8x128xi32>
    %c72_i32 = arith.constant 72 : i32
    %82 = vector.broadcast %c72_i32 : i32 to vector<8x128xi32>
    %83 = arith.cmpi slt, %81, %82 : vector<8x128xi32>
    %cst_26 = arith.constant 0.000000e+00 : f32
    %84 = vector.broadcast %cst_26 : f32 to vector<8x128xf32>
    %85 = arith.select %83, %80, %84 : vector<8x128xi1>, vector<8x128xf32>
    %86 = arith.mulf %85, %85 : vector<8x128xf32>
    %87 = tpu.concatenate %85, %86 in 0 : vector<8x128xf32>, vector<8x128xf32> -> vector<16x128xf32>
    %cst_27 = arith.constant dense<0.000000e+00> : vector<16xf32>
    %88 = vector.multi_reduction <add>, %87, %cst_27 [1] : vector<16x128xf32> to vector<16xf32>
    %89 = vector.shape_cast %88 : vector<16xf32> to vector<16x1xf32>
    %90 = vector.extract_strided_slice %89 {offsets = [0, 0], sizes = [8, 1], strides = [1, 1]} : vector<16x1xf32> to vector<8x1xf32>
    %cst_28 = arith.constant 0.013888889 : f32
    %91 = vector.broadcast %cst_28 : f32 to vector<8x1xf32>
    %92 = arith.mulf %90, %91 : vector<8x1xf32>
    %93 = vector.extract_strided_slice %89 {offsets = [8, 0], sizes = [8, 1], strides = [1, 1]} : vector<16x1xf32> to vector<8x1xf32>
    %cst_29 = arith.constant 0.013888889 : f32
    %94 = vector.broadcast %cst_29 : f32 to vector<8x1xf32>
    %95 = arith.mulf %93, %94 : vector<8x1xf32>
    %96 = arith.mulf %92, %92 : vector<8x1xf32>
    %97 = arith.subf %95, %96 : vector<8x1xf32>
    %cst_30 = arith.constant 0.000000e+00 : f32
    %98 = vector.broadcast %cst_30 : f32 to vector<8x1xf32>
    %99 = arith.maximumf %97, %98 : vector<8x1xf32>
    %cst_31 = arith.constant 0.899999976 : f32
    %100 = vector.broadcast %cst_31 : f32 to vector<8x1xf32>
    %101 = arith.mulf %100, %75 : vector<8x1xf32>
    %cst_32 = arith.constant 1.000000e-01 : f32
    %102 = vector.broadcast %cst_32 : f32 to vector<8x1xf32>
    %103 = arith.mulf %102, %92 : vector<8x1xf32>
    %104 = arith.addf %101, %103 : vector<8x1xf32>
    %cst_33 = arith.constant 0.899999976 : f32
    %105 = vector.broadcast %cst_33 : f32 to vector<8x1xf32>
    %106 = arith.mulf %105, %76 : vector<8x1xf32>
    %cst_34 = arith.constant 1.01408446 : f32
    %107 = vector.broadcast %cst_34 : f32 to vector<8x1xf32>
    %108 = arith.mulf %99, %107 : vector<8x1xf32>
    %cst_35 = arith.constant 1.000000e-01 : f32
    %109 = vector.broadcast %cst_35 : f32 to vector<8x1xf32>
    %110 = arith.mulf %109, %108 : vector<8x1xf32>
    %111 = arith.addf %106, %110 : vector<8x1xf32>
    %cst_36 = arith.constant 9.99999974E-6 : f32
    %112 = vector.broadcast %cst_36 : f32 to vector<8x1xf32>
    %113 = arith.addf %99, %112 : vector<8x1xf32>
    %114 = math.rsqrt %113 : vector<8x1xf32>
    %115 = arith.mulf %73, %114 : vector<8x1xf32>
    %116 = vector.broadcast %92 : vector<8x1xf32> to vector<8x128xf32>
    %117 = arith.subf %85, %116 : vector<8x128xf32>
    %118 = vector.broadcast %115 : vector<8x1xf32> to vector<8x128xf32>
    %119 = arith.mulf %117, %118 : vector<8x128xf32>
    %120 = vector.broadcast %74 : vector<8x1xf32> to vector<8x128xf32>
    %121 = arith.addf %119, %120 : vector<8x128xf32>
    %122 = arith.truncf %121 : vector<8x128xf32> to vector<8x128xbf16>
    %c384 = arith.constant 384 : index
    %c0_37 = arith.constant 0 : index
    %123 = vector.load %arg2[%c384, %c0_37] : memref<640x1152xbf16, #tpu.memory_space<vmem>>, vector<128x1152xbf16>
    %cst_38 = arith.constant dense<0.000000e+00> : vector<8x1152xf32>
    %124 = tpu.matmul %122, %123, %cst_38 {dimension_numbers = #tpu.dot_dimension_numbers<[1], [0], [0], [1], [0, 0, 1, 1], [], []>} : vector<8x128xbf16>, vector<128x1152xbf16>, vector<8x1152xf32> -> vector<8x1152xf32>
    %125 = vector.extract_strided_slice %124 {offsets = [0, 0], sizes = [8, 128], strides = [1, 1]} : vector<8x1152xf32> to vector<8x128xf32>
    %126 = vector.extract_strided_slice %124 {offsets = [0, 128], sizes = [8, 128], strides = [1, 1]} : vector<8x1152xf32> to vector<8x128xf32>
    %127 = vector.extract_strided_slice %124 {offsets = [0, 256], sizes = [8, 128], strides = [1, 1]} : vector<8x1152xf32> to vector<8x128xf32>
    %128 = vector.extract_strided_slice %124 {offsets = [0, 384], sizes = [8, 128], strides = [1, 1]} : vector<8x1152xf32> to vector<8x128xf32>
    %129 = vector.extract_strided_slice %124 {offsets = [0, 512], sizes = [8, 128], strides = [1, 1]} : vector<8x1152xf32> to vector<8x128xf32>
    %130 = vector.extract_strided_slice %124 {offsets = [0, 640], sizes = [8, 128], strides = [1, 1]} : vector<8x1152xf32> to vector<8x128xf32>
    %131 = vector.extract_strided_slice %124 {offsets = [0, 768], sizes = [8, 128], strides = [1, 1]} : vector<8x1152xf32> to vector<8x128xf32>
    %132 = vector.extract_strided_slice %124 {offsets = [0, 896], sizes = [8, 128], strides = [1, 1]} : vector<8x1152xf32> to vector<8x128xf32>
    %133 = vector.extract_strided_slice %124 {offsets = [0, 1024], sizes = [8, 128], strides = [1, 1]} : vector<8x1152xf32> to vector<8x128xf32>
    %cst_39 = arith.constant 0.000000e+00 : f32
    %134 = vector.broadcast %cst_39 : f32 to vector<8x128xf32>
    %135 = tpu.concatenate %125, %126, %127, %128, %129, %130, %131, %132, %133, %134 in 0 : vector<8x128xf32>, vector<8x128xf32>, vector<8x128xf32>, vector<8x128xf32>, vector<8x128xf32>, vector<8x128xf32>, vector<8x128xf32>, vector<8x128xf32>, vector<8x128xf32>, vector<8x128xf32> -> vector<80x128xf32>
    %c16 = arith.constant 16 : index
    %c0_40 = arith.constant 0 : index
    %136 = vector.load %arg3[%c16, %c0_40] : memref<40x128xbf16, #tpu.memory_space<vmem>>, vector<8x80xbf16>
    %137 = arith.truncf %135 : vector<80x128xf32> to vector<80x128xbf16>
    %cst_41 = arith.constant dense<0.000000e+00> : vector<8x128xf32>
    %138 = tpu.matmul %136, %137, %cst_41 {dimension_numbers = #tpu.dot_dimension_numbers<[1], [0], [0], [1], [0, 0, 1, 1], [], []>} : vector<8x80xbf16>, vector<80x128xbf16>, vector<8x128xf32> -> vector<8x128xf32>
    %c16_42 = arith.constant 16 : index
    %c0_43 = arith.constant 0 : index
    %139 = vector.load %arg4[%c16_42, %c0_43] : memref<40x128xf32, #tpu.memory_space<vmem>>, vector<8x128xf32>
    %140 = vector.extract_strided_slice %139 {offsets = [0, 0], sizes = [8, 1], strides = [1, 1]} : vector<8x128xf32> to vector<8x1xf32>
    %141 = vector.extract_strided_slice %139 {offsets = [0, 1], sizes = [8, 1], strides = [1, 1]} : vector<8x128xf32> to vector<8x1xf32>
    %142 = vector.extract_strided_slice %139 {offsets = [0, 2], sizes = [8, 1], strides = [1, 1]} : vector<8x128xf32> to vector<8x1xf32>
    %143 = vector.extract_strided_slice %139 {offsets = [0, 3], sizes = [8, 1], strides = [1, 1]} : vector<8x128xf32> to vector<8x1xf32>
    %144 = vector.extract_strided_slice %139 {offsets = [0, 4], sizes = [8, 1], strides = [1, 1]} : vector<8x128xf32> to vector<8x1xf32>
    %145 = vector.broadcast %140 : vector<8x1xf32> to vector<8x128xf32>
    %146 = arith.addf %138, %145 : vector<8x128xf32>
    %cst_44 = arith.constant 0.000000e+00 : f32
    %147 = vector.broadcast %cst_44 : f32 to vector<8x128xf32>
    %148 = arith.maximumf %146, %147 : vector<8x128xf32>
    %149 = tpu.iota {dimensions = array<i32: 1>} : vector<8x128xi32>
    %c8_i32 = arith.constant 8 : i32
    %150 = vector.broadcast %c8_i32 : i32 to vector<8x128xi32>
    %151 = arith.cmpi slt, %149, %150 : vector<8x128xi32>
    %cst_45 = arith.constant 0.000000e+00 : f32
    %152 = vector.broadcast %cst_45 : f32 to vector<8x128xf32>
    %153 = arith.select %151, %148, %152 : vector<8x128xi1>, vector<8x128xf32>
    %154 = arith.mulf %153, %153 : vector<8x128xf32>
    %155 = tpu.concatenate %153, %154 in 0 : vector<8x128xf32>, vector<8x128xf32> -> vector<16x128xf32>
    %cst_46 = arith.constant dense<0.000000e+00> : vector<16xf32>
    %156 = vector.multi_reduction <add>, %155, %cst_46 [1] : vector<16x128xf32> to vector<16xf32>
    %157 = vector.shape_cast %156 : vector<16xf32> to vector<16x1xf32>
    %158 = vector.extract_strided_slice %157 {offsets = [0, 0], sizes = [8, 1], strides = [1, 1]} : vector<16x1xf32> to vector<8x1xf32>
    %cst_47 = arith.constant 1.250000e-01 : f32
    %159 = vector.broadcast %cst_47 : f32 to vector<8x1xf32>
    %160 = arith.mulf %158, %159 : vector<8x1xf32>
    %161 = vector.extract_strided_slice %157 {offsets = [8, 0], sizes = [8, 1], strides = [1, 1]} : vector<16x1xf32> to vector<8x1xf32>
    %cst_48 = arith.constant 1.250000e-01 : f32
    %162 = vector.broadcast %cst_48 : f32 to vector<8x1xf32>
    %163 = arith.mulf %161, %162 : vector<8x1xf32>
    %164 = arith.mulf %160, %160 : vector<8x1xf32>
    %165 = arith.subf %163, %164 : vector<8x1xf32>
    %cst_49 = arith.constant 0.000000e+00 : f32
    %166 = vector.broadcast %cst_49 : f32 to vector<8x1xf32>
    %167 = arith.maximumf %165, %166 : vector<8x1xf32>
    %cst_50 = arith.constant 0.899999976 : f32
    %168 = vector.broadcast %cst_50 : f32 to vector<8x1xf32>
    %169 = arith.mulf %168, %143 : vector<8x1xf32>
    %cst_51 = arith.constant 1.000000e-01 : f32
    %170 = vector.broadcast %cst_51 : f32 to vector<8x1xf32>
    %171 = arith.mulf %170, %160 : vector<8x1xf32>
    %172 = arith.addf %169, %171 : vector<8x1xf32>
    %cst_52 = arith.constant 0.899999976 : f32
    %173 = vector.broadcast %cst_52 : f32 to vector<8x1xf32>
    %174 = arith.mulf %173, %144 : vector<8x1xf32>
    %cst_53 = arith.constant 1.14285719 : f32
    %175 = vector.broadcast %cst_53 : f32 to vector<8x1xf32>
    %176 = arith.mulf %167, %175 : vector<8x1xf32>
    %cst_54 = arith.constant 1.000000e-01 : f32
    %177 = vector.broadcast %cst_54 : f32 to vector<8x1xf32>
    %178 = arith.mulf %177, %176 : vector<8x1xf32>
    %179 = arith.addf %174, %178 : vector<8x1xf32>
    %cst_55 = arith.constant 9.99999974E-6 : f32
    %180 = vector.broadcast %cst_55 : f32 to vector<8x1xf32>
    %181 = arith.addf %167, %180 : vector<8x1xf32>
    %182 = math.rsqrt %181 : vector<8x1xf32>
    %183 = arith.mulf %141, %182 : vector<8x1xf32>
    %184 = vector.broadcast %160 : vector<8x1xf32> to vector<8x128xf32>
    %185 = arith.subf %153, %184 : vector<8x128xf32>
    %186 = vector.broadcast %183 : vector<8x1xf32> to vector<8x128xf32>
    %187 = arith.mulf %185, %186 : vector<8x128xf32>
    %188 = vector.broadcast %142 : vector<8x1xf32> to vector<8x128xf32>
    %189 = arith.addf %187, %188 : vector<8x128xf32>
    %190 = arith.truncf %189 : vector<8x128xf32> to vector<8x128xbf16>
    %c512 = arith.constant 512 : index
    %c0_56 = arith.constant 0 : index
    %191 = vector.load %arg2[%c512, %c0_56] : memref<640x1152xbf16, #tpu.memory_space<vmem>>, vector<128x512xbf16>
    %cst_57 = arith.constant dense<0.000000e+00> : vector<8x512xf32>
    %192 = tpu.matmul %190, %191, %cst_57 {dimension_numbers = #tpu.dot_dimension_numbers<[1], [0], [0], [1], [0, 0, 1, 1], [], []>} : vector<8x128xbf16>, vector<128x512xbf16>, vector<8x512xf32> -> vector<8x512xf32>
    %193 = vector.extract_strided_slice %192 {offsets = [0, 0], sizes = [8, 128], strides = [1, 1]} : vector<8x512xf32> to vector<8x128xf32>
    %194 = vector.extract_strided_slice %192 {offsets = [0, 128], sizes = [8, 128], strides = [1, 1]} : vector<8x512xf32> to vector<8x128xf32>
    %195 = vector.extract_strided_slice %192 {offsets = [0, 256], sizes = [8, 128], strides = [1, 1]} : vector<8x512xf32> to vector<8x128xf32>
    %196 = vector.extract_strided_slice %192 {offsets = [0, 384], sizes = [8, 128], strides = [1, 1]} : vector<8x512xf32> to vector<8x128xf32>
    %197 = tpu.concatenate %193, %194, %195, %196 in 0 : vector<8x128xf32>, vector<8x128xf32>, vector<8x128xf32>, vector<8x128xf32> -> vector<32x128xf32>
    %c24 = arith.constant 24 : index
    %c0_58 = arith.constant 0 : index
    %198 = vector.load %arg3[%c24, %c0_58] : memref<40x128xbf16, #tpu.memory_space<vmem>>, vector<8x32xbf16>
    %199 = arith.truncf %197 : vector<32x128xf32> to vector<32x128xbf16>
    %cst_59 = arith.constant dense<0.000000e+00> : vector<8x128xf32>
    %200 = tpu.matmul %198, %199, %cst_59 {dimension_numbers = #tpu.dot_dimension_numbers<[1], [0], [0], [1], [0, 0, 1, 1], [], []>} : vector<8x32xbf16>, vector<32x128xbf16>, vector<8x128xf32> -> vector<8x128xf32>
    %c24_60 = arith.constant 24 : index
    %c0_61 = arith.constant 0 : index
    %201 = vector.load %arg4[%c24_60, %c0_61] : memref<40x128xf32, #tpu.memory_space<vmem>>, vector<8x128xf32>
    %202 = vector.extract_strided_slice %201 {offsets = [0, 0], sizes = [8, 1], strides = [1, 1]} : vector<8x128xf32> to vector<8x1xf32>
    %203 = vector.extract_strided_slice %201 {offsets = [0, 1], sizes = [8, 1], strides = [1, 1]} : vector<8x128xf32> to vector<8x1xf32>
    %204 = vector.extract_strided_slice %201 {offsets = [0, 2], sizes = [8, 1], strides = [1, 1]} : vector<8x128xf32> to vector<8x1xf32>
    %205 = vector.extract_strided_slice %201 {offsets = [0, 3], sizes = [8, 1], strides = [1, 1]} : vector<8x128xf32> to vector<8x1xf32>
    %206 = vector.extract_strided_slice %201 {offsets = [0, 4], sizes = [8, 1], strides = [1, 1]} : vector<8x128xf32> to vector<8x1xf32>
    %207 = vector.broadcast %202 : vector<8x1xf32> to vector<8x128xf32>
    %208 = arith.addf %200, %207 : vector<8x128xf32>
    %cst_62 = arith.constant 0.000000e+00 : f32
    %209 = vector.broadcast %cst_62 : f32 to vector<8x128xf32>
    %210 = arith.maximumf %208, %209 : vector<8x128xf32>
    %211 = tpu.iota {dimensions = array<i32: 1>} : vector<8x128xi32>
    %c2_i32 = arith.constant 2 : i32
    %212 = vector.broadcast %c2_i32 : i32 to vector<8x128xi32>
    %213 = arith.cmpi slt, %211, %212 : vector<8x128xi32>
    %cst_63 = arith.constant 0.000000e+00 : f32
    %214 = vector.broadcast %cst_63 : f32 to vector<8x128xf32>
    %215 = arith.select %213, %210, %214 : vector<8x128xi1>, vector<8x128xf32>
    %216 = arith.mulf %215, %215 : vector<8x128xf32>
    %217 = tpu.concatenate %215, %216 in 0 : vector<8x128xf32>, vector<8x128xf32> -> vector<16x128xf32>
    %cst_64 = arith.constant dense<0.000000e+00> : vector<16xf32>
    %218 = vector.multi_reduction <add>, %217, %cst_64 [1] : vector<16x128xf32> to vector<16xf32>
    %219 = vector.shape_cast %218 : vector<16xf32> to vector<16x1xf32>
    %220 = vector.extract_strided_slice %219 {offsets = [0, 0], sizes = [8, 1], strides = [1, 1]} : vector<16x1xf32> to vector<8x1xf32>
    %cst_65 = arith.constant 5.000000e-01 : f32
    %221 = vector.broadcast %cst_65 : f32 to vector<8x1xf32>
    %222 = arith.mulf %220, %221 : vector<8x1xf32>
    %223 = vector.extract_strided_slice %219 {offsets = [8, 0], sizes = [8, 1], strides = [1, 1]} : vector<16x1xf32> to vector<8x1xf32>
    %cst_66 = arith.constant 5.000000e-01 : f32
    %224 = vector.broadcast %cst_66 : f32 to vector<8x1xf32>
    %225 = arith.mulf %223, %224 : vector<8x1xf32>
    %226 = arith.mulf %222, %222 : vector<8x1xf32>
    %227 = arith.subf %225, %226 : vector<8x1xf32>
    %cst_67 = arith.constant 0.000000e+00 : f32
    %228 = vector.broadcast %cst_67 : f32 to vector<8x1xf32>
    %229 = arith.maximumf %227, %228 : vector<8x1xf32>
    %cst_68 = arith.constant 0.899999976 : f32
    %230 = vector.broadcast %cst_68 : f32 to vector<8x1xf32>
    %231 = arith.mulf %230, %205 : vector<8x1xf32>
    %cst_69 = arith.constant 1.000000e-01 : f32
    %232 = vector.broadcast %cst_69 : f32 to vector<8x1xf32>
    %233 = arith.mulf %232, %222 : vector<8x1xf32>
    %234 = arith.addf %231, %233 : vector<8x1xf32>
    %cst_70 = arith.constant 0.899999976 : f32
    %235 = vector.broadcast %cst_70 : f32 to vector<8x1xf32>
    %236 = arith.mulf %235, %206 : vector<8x1xf32>
    %cst_71 = arith.constant 2.000000e+00 : f32
    %237 = vector.broadcast %cst_71 : f32 to vector<8x1xf32>
    %238 = arith.mulf %229, %237 : vector<8x1xf32>
    %cst_72 = arith.constant 1.000000e-01 : f32
    %239 = vector.broadcast %cst_72 : f32 to vector<8x1xf32>
    %240 = arith.mulf %239, %238 : vector<8x1xf32>
    %241 = arith.addf %236, %240 : vector<8x1xf32>
    %cst_73 = arith.constant 9.99999974E-6 : f32
    %242 = vector.broadcast %cst_73 : f32 to vector<8x1xf32>
    %243 = arith.addf %229, %242 : vector<8x1xf32>
    %244 = math.rsqrt %243 : vector<8x1xf32>
    %245 = arith.mulf %203, %244 : vector<8x1xf32>
    %246 = vector.broadcast %222 : vector<8x1xf32> to vector<8x128xf32>
    %247 = arith.subf %215, %246 : vector<8x128xf32>
    %248 = vector.broadcast %245 : vector<8x1xf32> to vector<8x128xf32>
    %249 = arith.mulf %247, %248 : vector<8x128xf32>
    %250 = vector.broadcast %204 : vector<8x1xf32> to vector<8x128xf32>
    %251 = arith.addf %249, %250 : vector<8x128xf32>
    %252 = vector.extract_strided_slice %251 {offsets = [0, 0], sizes = [8, 8], strides = [1, 1]} : vector<8x128xf32> to vector<8x8xf32>
    %c32 = arith.constant 32 : index
    %c0_74 = arith.constant 0 : index
    %253 = vector.load %arg3[%c32, %c0_74] : memref<40x128xbf16, #tpu.memory_space<vmem>>, vector<8x128xbf16>
    %254 = arith.extf %253 : vector<8x128xbf16> to vector<8x128xf32>
    %cst_75 = arith.constant dense<0.000000e+00> : vector<8x128xf32>
    %255 = tpu.matmul %252, %254, %cst_75 {dimension_numbers = #tpu.dot_dimension_numbers<[0], [0], [1], [1], [0, 1, 1, 1], [], []>} : vector<8x8xf32>, vector<8x128xf32>, vector<8x128xf32> -> vector<8x128xf32>
    %c32_76 = arith.constant 32 : index
    %c0_77 = arith.constant 0 : index
    %256 = vector.load %arg4[%c32_76, %c0_77] : memref<40x128xf32, #tpu.memory_space<vmem>>, vector<1x128xf32>
    %257 = vector.broadcast %256 : vector<1x128xf32> to vector<8x128xf32>
    %258 = arith.addf %255, %257 : vector<8x128xf32>
    %c0_78 = arith.constant 0 : index
    %c0_79 = arith.constant 0 : index
    %259 = vector.load %arg5[%c0_78, %c0_79] : memref<8x128xf32, #tpu.memory_space<vmem>>, vector<8x128xf32>
    tpu.vector_store %arg5[%c0_78, %c0_79], %258 {strides = array<i32>} : memref<8x128xf32, #tpu.memory_space<vmem>>, vector<8x128xf32>,
    %260 = tpu.concatenate %36, %43, %104, %111, %172, %179, %234, %241 in 1 : vector<8x1xf32>, vector<8x1xf32>, vector<8x1xf32>, vector<8x1xf32>, vector<8x1xf32>, vector<8x1xf32>, vector<8x1xf32>, vector<8x1xf32> -> vector<8x8xf32>
    %c0_80 = arith.constant 0 : index
    %c0_81 = arith.constant 0 : index
    %261 = vector.load %arg6[%c0_80, %c0_81] : memref<8x8xf32, #tpu.memory_space<vmem>>, vector<8x8xf32>
    tpu.vector_store %arg6[%c0_80, %c0_81], %260 {strides = array<i32>} : memref<8x8xf32, #tpu.memory_space<vmem>>, vector<8x8xf32>,
    return
  }
  func.func @transform_0(%arg0: i32) -> (i32, i32) {
    %c0_i32 = arith.constant 0 : i32
    %c0_i32_0 = arith.constant 0 : i32
    %c0_i32_1 = arith.constant 0 : i32
    return %c0_i32, %c0_i32_0 : i32, i32
  }
  func.func @transform_1(%arg0: i32) -> (i32, i32) {
    %c0_i32 = arith.constant 0 : i32
    %c0_i32_0 = arith.constant 0 : i32
    %c0_i32_1 = arith.constant 0 : i32
    return %c0_i32, %c0_i32_0 : i32, i32
  }
  func.func @transform_2(%arg0: i32) -> (i32, i32) {
    %c0_i32 = arith.constant 0 : i32
    %c0_i32_0 = arith.constant 0 : i32
    %c0_i32_1 = arith.constant 0 : i32
    return %c0_i32, %c0_i32_0 : i32, i32
  }
  func.func @transform_3(%arg0: i32) -> (i32, i32) {
    %c0_i32 = arith.constant 0 : i32
    %c0_i32_0 = arith.constant 0 : i32
    %c0_i32_1 = arith.constant 0 : i32
    return %c0_i32, %c0_i32_0 : i32, i32
  }
  func.func @transform_4(%arg0: i32) -> (i32, i32) {
    %c0_i32 = arith.constant 0 : i32
    %c0_i32_0 = arith.constant 0 : i32
    %c0_i32_1 = arith.constant 0 : i32
    return %c0_i32, %c0_i32_0 : i32, i32
  }
  func.func @transform_5(%arg0: i32) -> (i32, i32) {
    %c0_i32 = arith.constant 0 : i32
    %c0_i32_0 = arith.constant 0 : i32
    %c0_i32_1 = arith.constant 0 : i32
    return %c0_i32, %c0_i32_0 : i32, i32
  }
}

</mosaic_0001>

<bundles_post_ra>
// kernel: forward.1
= control target key start
LH: loop header
LB: loop body
LE: loop exit
PB: predicated region body
PF: predicated region fallthrough
CT: control target
= control target key end

     0   :  { %11 = vsyncpa [#allocation3], 0  ;;  %s4689_s21 = smov [#allocation2]   ;;  %s4690_s23 = smov 576   ;;  %s5004_s0 = inlined_call_operand.vmem [shape: bf16[16,384], index: 0, kind: input, shape index: {}]   ;;  %s5005_s1 = inlined_call_operand.hbm [shape: bf16[640,1152], index: 1, kind: input, shape index: {}]   ;;  %s5006_s2 = inlined_call_operand.vmem [shape: bf16[40,128], index: 2, kind: input, shape index: {}]   ;;  %s5007_s3 = inlined_call_operand.vmem [shape: f32[40,128], index: 3, kind: input, shape index: {}]   ;;  %s5008_s4 = inlined_call_operand.vmem [shape: f32[8,128], index: 4, kind: output, shape index: {0}]   ;;  %s5009_s5 = inlined_call_operand.vmem [shape: f32[8,8], index: 5, kind: output, shape index: {1}]  }
   0x1   :  { %s18_s20 = sshll.u32 %s5005_s1, 4  ;;  %s20_s22 = sshll.u32 %s4689_s21, 4  ;;  %s19_s20 = int_to_ptr.hbm [resolvable:$true] %s18_s20  ;;  %s21_s22 = int_to_ptr.vmem [resolvable:$true] %s20_s22 }
   0x2   :  { %s4691_s24 = smov 36  }
   0x3   :  { %26 = dma.hbm_to_vmem [thread:$0]  %s19_s20, 46080, %s21_s22, [#allocation3], %s4690_s23, %s4690_s23, %s4691_s24  }
   0x4   :  { %4687 = dma.done.wait [#allocation3], 46080  }
   0x5   :  { %4688 = vsyncadd [#allocation3], 4294921216  ;;  %v4692_v0 = vmov 0   ;;  %v3011_v1 = vld [vmem:[%s5004_s0] sm:$0xf]  ;;  %vm63_vm0 = vcmask 130048   ;;  %v109_v12 = vlaneseq }
   0x6   :  { %4642 = vset.pattern.permute.xlu0 %v4692_v0  ;;  %v4309_v2 = vld [vmem:[%s5004_s0 + $0x8] sm:$0xf0]  ;;  %v4308_v3 = vld [vmem:[%s5004_s0 + $0x4] sm:$0xf]  ;;  %v3013_v5 = vld [vmem:[%s5004_s0 + $0xc] sm:$0xf0] }
   0x7   :  { %v3012_v4 = vor.u32 %v4309_v2, %v3011_v1  ;;  %v3019_v6 = vld [vmem:[%s5004_s0 + $0x8] sm:$0xf]  ;;  %v4310_v7 = vld [vmem:[%s5004_s0 + $0x10] sm:$0xf0]  ;;  %v3016_v8 = vor.u32 %v4308_v3, %v3013_v5  ;;  %v4754_v10 = vld [vmem:[%s5007_s3] sm:$0xff]  ;;  %v4760_v17 = vand.u32 127, %v109_v12 }
   0x8   :  { %v3020_v9 = vor.u32 %v4310_v7, %v3019_v6  ;;  %v36_v11 = vld [vmem:[%s5006_s2] sm:$0xf]  ;;  %44 = vperm.xlu0 %4642, %v4754_v10   ;;  %v4693_v36 = vmov 1   ;;  %v3278_v37 = vld [vmem:[#allocation2 + $0x1f8] sm:$0xf]  ;;  %v4694_v40 = vmov 2  }
   0x9   :  { %74 = vmatpush.bf16.msra.mxu0 %v3012_v4  ;;  %87 = vmatpush.bf16.msra.mxu1 %v3016_v8  ;;  %v112_v21 = vadd.s32 256, %v4760_v17  ;;  %v4378_v38 = vld [vmem:[#allocation2 + $0x218] sm:$0xf0]  ;;  %v3566_v42 = vld [vmem:[#allocation2 + $0x438] sm:$0xf]  ;;  %vm1881_vm5 = vcmask 654336  }
   0xa   :  { %100 = vmatpush.bf16.msra.mxu2 %v3020_v9  ;;  %4643 = vset.pattern.permute.xlu1 %v4693_v36  ;;  %v3279_v41 = vor.u32 %v4378_v38, %v3278_v37  ;;  %v4450_v43 = vld [vmem:[#allocation2 + $0x458] sm:$0xf0]  ;;  %v3854_v44 = vld [vmem:[#allocation2 + $0x678] sm:$0xf]  ;;  %v3280_v51 = vld [vmem:[#allocation2 + $0x21c] sm:$0xf0] }
   0xb   :  { %vm115_vm1 = vcmp.lt.s32.totalorder %v112_v21, 338  ;;  %4644 = vset.pattern.permute.xlu2 %v4694_v40  ;;  %v3567_v46 = vor.u32 %v4450_v43, %v3566_v42  ;;  %v4522_v47 = vld [vmem:[#allocation2 + $0x698] sm:$0xf0]  ;;  %v3242_v52 = vld [vmem:[#allocation2 + $0x1b0] sm:$0xf]  ;;  %vm1899_vm6 = vcmp.lt.s32.totalorder %v4760_v17, 72 }
   0xc   :  { %3021 = vmatmul.msk.bf16.vlgmr.msra.gmra.mxu0 %vm63_vm0, %v36_v11  ;;  %3022 = vmatmul.msk.bf16.vlgmr.msra.gmra.mxu1 %vm63_vm0, %v36_v11  ;;  %v4374_v48 = vld [vmem:[#allocation2 + $0x1fc] sm:$0xf]  ;;  %v3855_v50 = vor.u32 %v4522_v47, %v3854_v44  ;;  %v4369_v53 = vld [vmem:[#allocation2 + $0x1d0] sm:$0xf0]  ;;  %v3530_v58 = vld [vmem:[#allocation2 + $0x3f0] sm:$0xf] }
   0xd   :  { %3023 = vmatmul.msk.bf16.vlgmr.msra.gmra.mxu2 %vm63_vm0, %v36_v11  ;;  %165 = vperm.xlu2 %4644, %v4754_v10   ;;  %v3283_v56 = vor.u32 %v4374_v48, %v3280_v51  ;;  %v3243_v57 = vor.u32 %v4369_v53, %v3242_v52  ;;  %v4441_v59 = vld [vmem:[#allocation2 + $0x410] sm:$0xf0]  ;;  %v3818_v61 = vld [vmem:[#allocation2 + $0x630] sm:$0xf]  ;;  %v3244_v3 = vld [vmem:[#allocation2 + $0x1d4] sm:$0xf0] }
   0xe   :  { %1518 = vmatpush.bf16.msra.mxu3 %v3279_v41  ;;  %1531 = vmatpush.bf16.msrb.mxu0 %v3567_v46  ;;  %v3531_v60 = vor.u32 %v4441_v59, %v3530_v58  ;;  %v4513_v62 = vld [vmem:[#allocation2 + $0x650] sm:$0xf0]  ;;  %v3206_v4 = vld [vmem:[#allocation2 + $0x168] sm:$0xf]  ;;  %v4360_v5 = vld [vmem:[#allocation2 + $0x188] sm:$0xf0] }
   0xf   :  { %1544 = vmatpush.bf16.msrb.mxu1 %v3855_v50  ;;  %v4365_v63 = vld [vmem:[#allocation2 + $0x1b4] sm:$0xf]  ;;  %1557 = vmatpush.bf16.msrb.mxu2 %v3283_v56  ;;  %v3819_v2 = vor.u32 %v4513_v62, %v3818_v61  ;;  %v3207_v7 = vor.u32 %v4360_v5, %v3206_v4  ;;  %v3494_v8 = vld [vmem:[#allocation2 + $0x3a8] sm:$0xf]  ;;  %v4432_v9 = vld [vmem:[#allocation2 + $0x3c8] sm:$0xf0] }
  0x10   :  { %4646 = vset.pattern.permute.xlu0 %v4693_v36  ;;  %v3247_v6 = vor.u32 %v4365_v63, %v3244_v3  ;;  %v3782_v11 = vld [vmem:[#allocation2 + $0x5e8] sm:$0xf]  ;;  %v3170_v21 = vld [vmem:[#allocation2 + $0x120] sm:$0xf]  ;;  %v4342_v37 = vld [vmem:[#allocation2 + $0xf8] sm:$0xf0] }
  0x11   :  { %v3422_v38 = vld [vmem:[#allocation2 + $0x318] sm:$0xf]  ;;  %v4414_v41 = vld [vmem:[#allocation2 + $0x338] sm:$0xf0]  ;;  %v3136_v47 = vld [vmem:[#allocation2 + $0xfc] sm:$0xf0] }
  0x12   :  { %1519 = vmatpush.bf16.msra.mxu3 %v3243_v57  ;;  %1532 = vmatpush.bf16.msrb.mxu0 %v3531_v60  ;;  %v3710_v42 = vld [vmem:[#allocation2 + $0x558] sm:$0xf]  ;;  %v4486_v43 = vld [vmem:[#allocation2 + $0x578] sm:$0xf0]  ;;  %v3423_v48 = vor.u32 %v4414_v41, %v3422_v38  ;;  %v4333_v50 = vld [vmem:[#allocation2 + $0xb0] sm:$0xf0] }
  0x13   :  { %1545 = vmatpush.bf16.msrb.mxu1 %v3819_v2  ;;  %1558 = vmatpush.bf16.msrb.mxu2 %v3247_v6  ;;  %v4338_v46 = vld [vmem:[#allocation2 + $0xdc] sm:$0xf]  ;;  %v3711_v51 = vor.u32 %v4486_v43, %v3710_v42  ;;  %v3386_v52 = vld [vmem:[#allocation2 + $0x2d0] sm:$0xf]  ;;  %v4405_v53 = vld [vmem:[#allocation2 + $0x2f0] sm:$0xf0] }
  0x14   :  { %v3674_v56 = vld [vmem:[#allocation2 + $0x510] sm:$0xf]  ;;  %v4477_v57 = vld [vmem:[#allocation2 + $0x530] sm:$0xf0]  ;;  %v4796_v58 = vmul.f32 0.9, %v4754_v10  ;;  %v3387_v63 = vor.u32 %v4405_v53, %v3386_v52 }
  0x15   :  { %4645 = vset.pattern.permute.xlu2 %v4692_v0  ;;  %v4329_v61 = vld [vmem:[#allocation2 + $0x94] sm:$0xf]  ;;  %v3100_v62 = vld [vmem:[#allocation2 + $0xb4] sm:$0xf0]  ;;  %v4324_v2 = vld [vmem:[#allocation2 + $0x68] sm:$0xf0]  ;;  %v3675_v5 = vor.u32 %v4477_v57, %v3674_v56 }
  0x16   :  { %1520 = vmatpush.bf16.msra.mxu3 %v3207_v7  ;;  %v3350_v6 = vld [vmem:[#allocation2 + $0x288] sm:$0xf]  ;;  %v4396_v7 = vld [vmem:[#allocation2 + $0x2a8] sm:$0xf0]  ;;  %v4518_v41 = vld [vmem:[#allocation2 + $0x67c] sm:$0xf] }
  0x17   :  { %v3856_v42 = vld [vmem:[#allocation2 + $0x69c] sm:$0xf0]  ;;  %v4437_v56 = vld [vmem:[#allocation2 + $0x3f4] sm:$0xf]  ;;  %v3532_v57 = vld [vmem:[#allocation2 + $0x414] sm:$0xf0] }
  0x18   :  { %v3286_v43 = vld [vmem:[#allocation2 + $0x200] sm:$0xf]  ;;  %vm2536_vm10 = vcmp.lt.s32.totalorder %v4760_v17, 8  ;;  %s4695_s24 = smov 125   ;;  %s4696_s25 = smov 127   ;;  %vm2832_vm14 = vcmask 261120  }
  0x19   :  { %vm2850_vm15 = vcmp.lt.s32.totalorder %v4760_v17, 2  ;;  %s4697_s28 = smov 1   ;;  %s4698_s1 = smov 3  }
  0x7a   :  { %v45_v13 = vpop.permute.xlu0 %44 }
  0x89   :  { %v76_v14 = vpop.f32.mrf.mxu0  ;;  %v89_v15 = vpop.f32.mrf.mxu1 }
  0x8a   :  { %v77_v16 = vadd.f32 %v76_v14, %v45_v13  ;;  %v90_v18 = vadd.f32 %v89_v15, %v45_v13  ;;  %v4504_v14 = vld [vmem:[#allocation2 + $0x608] sm:$0xf0] }
  0x8b   :  { %v4356_v15 = vld [vmem:[#allocation2 + $0x16c] sm:$0xf] }
  0x8c   :  { %v4762_v19 = vmax.f32 %v77_v16, 0.0  ;;  %v4764_v20 = vmax.f32 %v90_v18, 0.0  ;;  %v3783_v16 = vor.u32 %v4504_v14, %v3782_v11  ;;  %v3208_v18 = vld [vmem:[#allocation2 + $0x18c] sm:$0xf0]  ;;  %v4468_v11 = vld [vmem:[#allocation2 + $0x4e8] sm:$0xf0] }
  0x8d   :  { %v3064_v14 = vld [vmem:[#allocation2 + $0x6c] sm:$0xf0] }
  0x8e   :  { %v119_v23 = vmul.f32 %v4762_v19, %v4762_v19  ;;  %v120_v24 = vmul.f32 %v4764_v20, %v4764_v20  ;;  %v122_v28 = vadd.f32 %v4764_v20, %v4762_v19  ;;  %1546 = vmatpush.bf16.msrb.mxu1 %v3783_v16 }
  0x90   :  { %v102_v22 = vpop.f32.mrf.mxu2  ;;  %v126_v30 = vadd.f32 %v120_v24, %v119_v23  ;;  %v3211_v24 = vor.u32 %v4356_v15, %v3208_v18 }
  0x91   :  { %v103_v25 = vadd.f32 %v102_v22, %v45_v13  ;;  %v78_v26 = vpop.f32.mrf.mxu0  ;;  %v91_v27 = vpop.f32.mrf.mxu1  ;;  %v3495_v13 = vor.u32 %v4432_v9, %v3494_v8  ;;  %v4351_v22 = vld [vmem:[#allocation2 + $0x140] sm:$0xf0]  ;;  %v3638_v8 = vld [vmem:[#allocation2 + $0x4c8] sm:$0xf]  ;;  %v3103_v9 = vor.u32 %v4329_v61, %v3100_v62  ;;  %v4509_v61 = vld [vmem:[#allocation2 + $0x634] sm:$0xf] }
  0x92   :  { %v3171_v26 = vor.u32 %v4351_v22, %v3170_v21  ;;  %v4423_v27 = vld [vmem:[#allocation2 + $0x380] sm:$0xf0]  ;;  %1559 = vmatpush.bf16.msrb.mxu2 %v3211_v24  ;;  %v3026_v21 = vld [vmem:[#allocation2] sm:$0xf]  ;;  %v3351_v24 = vor.u32 %v4396_v7, %v3350_v6  ;;  %v3820_v62 = vld [vmem:[#allocation2 + $0x654] sm:$0xf0] }
  0x93   :  { %v108_v29 = vmax.f32 %v103_v25, 0.0  ;;  %v3458_v25 = vld [vmem:[#allocation2 + $0x360] sm:$0xf]  ;;  %1533 = vmatpush.bf16.msrb.mxu0 %v3495_v13  ;;  %v4320_v13 = vld [vmem:[#allocation2 + $0x4c] sm:$0xf] }
  0x94   :  { %1521 = vmatpush.bf16.msra.mxu3 %v3171_v26  ;;  %v4315_v22 = vld [vmem:[#allocation2 + $0x20] sm:$0xf0] }
  0x95   :  { %v4773_v31 = vsel %vm115_vm1, %v108_v29, 0.0  ;;  %v4495_v29 = vld [vmem:[#allocation2 + $0x5c0] sm:$0xf0] }
  0x96   :  { %v123_v32 = vadd.f32 %v122_v28, %v4773_v31  ;;  %v121_v33 = vmul.f32 %v4773_v31, %v4773_v31  ;;  %v3746_v28 = vld [vmem:[#allocation2 + $0x5a0] sm:$0xf]  ;;  %v4387_v26 = vld [vmem:[#allocation2 + $0x260] sm:$0xf0] }
  0x98   :  { %v104_v34 = vpop.f32.mrf.mxu2  ;;  %124 = vadd.xlane.f32.xlu0 %v123_v32  ;;  %v127_v35 = vadd.f32 %v126_v30, %v121_v33  ;;  %v3459_v30 = vor.u32 %v4423_v27, %v3458_v25  ;;  %v4347_v32 = vld [vmem:[#allocation2 + $0x124] sm:$0xf]  ;;  %v3172_v33 = vld [vmem:[#allocation2 + $0x144] sm:$0xf0]  ;;  %v3314_v25 = vld [vmem:[#allocation2 + $0x240] sm:$0xf] }
  0x99   :  { %v3747_v34 = vor.u32 %v4495_v29, %v3746_v28  ;;  %v3602_v27 = vld [vmem:[#allocation2 + $0x480] sm:$0xf]  ;;  %v3178_v29 = vld [vmem:[#allocation2 + $0x128] sm:$0xf] }
  0x9a   :  { %128 = vadd.xlane.f32.xlu1 %v127_v35  ;;  %v3134_v35 = vld [vmem:[#allocation2 + $0xd8] sm:$0xf]  ;;  %1534 = vmatpush.bf16.msrb.mxu0 %v3459_v30  ;;  %v3639_v30 = vor.u32 %v4468_v11, %v3638_v8  ;;  %v4500_v8 = vld [vmem:[#allocation2 + $0x5ec] sm:$0xf]  ;;  %v3214_v11 = vld [vmem:[#allocation2 + $0x170] sm:$0xf] }
  0x9b   :  { %v3135_v44 = vor.u32 %v4342_v37, %v3134_v35  ;;  %1547 = vmatpush.bf16.msrb.mxu1 %v3747_v34  ;;  %v3067_v34 = vor.u32 %v4320_v13, %v3064_v14  ;;  %v3028_v35 = vld [vmem:[#allocation2 + $0x24] sm:$0xf0]  ;;  %v3568_v37 = vld [vmem:[#allocation2 + $0x45c] sm:$0xf0]  ;;  %v4361_v13 = vld [vmem:[#allocation2 + $0x190] sm:$0xf0] }
  0x9c   :  { %v3502_v14 = vld [vmem:[#allocation2 + $0x3b0] sm:$0xf] }
  0x9d   :  { %1522 = vmatpush.bf16.msra.mxu3 %v3135_v44  ;;  %v3315_v44 = vor.u32 %v4387_v26, %v3314_v25  ;;  %v3215_v25 = vor.u32 %v4361_v13, %v3214_v11  ;;  %v3358_v11 = vld [vmem:[#allocation2 + $0x290] sm:$0xf]  ;;  %v4397_v13 = vld [vmem:[#allocation2 + $0x2b0] sm:$0xf0] }
  0x9e   :  { %1535 = vmatpush.bf16.msrb.mxu0 %v3423_v48  ;;  %v4451_v48 = vld [vmem:[#allocation2 + $0x460] sm:$0xf0] }
  0x9f   :  { %1548 = vmatpush.bf16.msrb.mxu1 %v3711_v51 }
  0xa2   :  { %1536 = vmatpush.bf16.msrb.mxu0 %v3387_v63  ;;  %v3250_v63 = vld [vmem:[#allocation2 + $0x1b8] sm:$0xf] }
  0xa3   :  { %1549 = vmatpush.bf16.msrb.mxu1 %v3675_v5  ;;  %v3496_v5 = vld [vmem:[#allocation2 + $0x3cc] sm:$0xf0] }
  0xa6   :  { %1537 = vmatpush.bf16.msrb.mxu0 %v3351_v24  ;;  %v3460_v24 = vld [vmem:[#allocation2 + $0x384] sm:$0xf0] }
  0xa7   :  { %1550 = vmatpush.bf16.msrb.mxu1 %v3639_v30  ;;  %v4352_v30 = vld [vmem:[#allocation2 + $0x148] sm:$0xf0] }
  0xaa   :  { %1538 = vmatpush.bf16.msrb.mxu0 %v3315_v44  ;;  %v4343_v44 = vld [vmem:[#allocation2 + $0x100] sm:$0xf0] }
 0x10b   :  { %v125_v39 = vpop.xlane.xlu0 %124 }
 0x10c   :  { %v4781_v45 = vmul.f32 0.00295858, %v125_v39  ;;  %v3175_v39 = vor.u32 %v4347_v32, %v3172_v33  ;;  %v4459_v32 = vld [vmem:[#allocation2 + $0x4a0] sm:$0xf0] }
 0x10d   :  { %v129_v49 = vpop.xlane.xlu1 %128  ;;  %v4311_v33 = vld [vmem:[#allocation2 + $0x4] sm:$0xf] }
 0x10e   :  { %v132_v54 = vmul.f32 %v4781_v45, %v4781_v45  ;;  %v131_v55 = vmul.f32 0.00295858, %v129_v49  ;;  %v3098_v49 = vld [vmem:[#allocation2 + $0x90] sm:$0xf]  ;;  %1560 = vmatpush.bf16.msrb.mxu2 %v3175_v39  ;;  %v136_v3 = vmul.f32 0.1, %v4781_v45  ;;  %v3027_v39 = vor.u32 %v4315_v22, %v3026_v21 }
 0x10f   :  { %v3099_v60 = vor.u32 %v4333_v50, %v3098_v49  ;;  %v3603_v50 = vor.u32 %v4459_v32, %v3602_v27  ;;  %v3031_v53 = vor.u32 %v4311_v33, %v3028_v35  ;;  %v4419_v22 = vld [vmem:[#allocation2 + $0x364] sm:$0xf]  ;;  %v3466_v32 = vld [vmem:[#allocation2 + $0x368] sm:$0xf]  ;;  %v4424_v33 = vld [vmem:[#allocation2 + $0x388] sm:$0xf0] }
 0x110   :  { %v133_v1 = vsub.f32 %v131_v55, %v132_v54  ;;  %v3139_v55 = vor.u32 %v4338_v46, %v3136_v47  ;;  %v4804_v15 = vadd.f32 %v136_v3, %v4796_v58  ;;  %v4379_v46 = vld [vmem:[#allocation2 + $0x220] sm:$0xf0]  ;;  %v3574_v47 = vld [vmem:[#allocation2 + $0x440] sm:$0xf]  ;;  %v3535_v3 = vor.u32 %v4437_v56, %v3532_v57  ;;  %v3676_v56 = vld [vmem:[#allocation2 + $0x534] sm:$0xf0] }
 0x111   :  { %1523 = vmatpush.bf16.msra.mxu3 %v3099_v60  ;;  %v3575_v60 = vor.u32 %v4451_v48, %v3574_v47  ;;  %1551 = vmatpush.bf16.msrb.mxu1 %v3603_v50  ;;  %v4491_v27 = vld [vmem:[#allocation2 + $0x5a4] sm:$0xf]  ;;  %v4401_v50 = vld [vmem:[#allocation2 + $0x2d4] sm:$0xf]  ;;  %v3106_v57 = vld [vmem:[#allocation2 + $0x98] sm:$0xf] }
 0x112   :  { %v4786_v12 = vmax.f32 %v133_v1, 0.0  ;;  %v3062_v1 = vld [vmem:[#allocation2 + $0x48] sm:$0xf]  ;;  %1561 = vmatpush.bf16.msrb.mxu2 %v3139_v55  ;;  %v3859_v55 = vor.u32 %v4518_v41, %v3856_v42  ;;  %v4482_v41 = vld [vmem:[#allocation2 + $0x55c] sm:$0xf] }
 0x113   :  { %v3063_v18 = vor.u32 %v4324_v2, %v3062_v1  ;;  %v4370_v1 = vld [vmem:[#allocation2 + $0x1d8] sm:$0xf0]  ;;  %v3712_v42 = vld [vmem:[#allocation2 + $0x57c] sm:$0xf0]  ;;  %v4415_v47 = vld [vmem:[#allocation2 + $0x340] sm:$0xf0] }
 0x114   :  { %v4789_v23 = vadd.f32 1e-05, %v4786_v12  ;;  %v4442_v2 = vld [vmem:[#allocation2 + $0x418] sm:$0xf0]  ;;  %1583 = vmatpush.bf16.msra.mxu0 %v3859_v55  ;;  %v3251_v6 = vor.u32 %v4370_v1, %v3250_v63  ;;  %v4473_v55 = vld [vmem:[#allocation2 + $0x514] sm:$0xf] }
 0x115   :  { %1524 = vmatpush.bf16.msra.mxu3 %v3063_v18  ;;  %v3679_v63 = vor.u32 %v4473_v55, %v3676_v56  ;;  %v3826_v56 = vld [vmem:[#allocation2 + $0x638] sm:$0xf] }
 0x116   :  { %4655 = vrsqrt.f32 %v4789_v23  ;;  %vm148_vm3 = vweird.f32 %v4789_v23  ;;  %1562 = vmatpush.bf16.msrb.mxu2 %v3103_v9  ;;  %v3784_v9 = vld [vmem:[#allocation2 + $0x60c] sm:$0xf0] }
 0x117   :  { %v3787_v21 = vor.u32 %v4500_v8, %v3784_v9 }
 0x119   :  { %1525 = vmatpush.bf16.msra.mxu3 %v3027_v39  ;;  %v3467_v39 = vor.u32 %v4424_v33, %v3466_v32  ;;  %v153_v33 = vsub.f32 %v4762_v19, %v4781_v45  ;;  %v3576_v19 = vld [vmem:[#allocation2 + $0x464] sm:$0xf0] }
 0x11a   :  { %1563 = vmatpush.bf16.msrb.mxu2 %v3067_v34  ;;  %v3463_v34 = vor.u32 %v4419_v22, %v3460_v24  ;;  %v3604_v24 = vld [vmem:[#allocation2 + $0x4a4] sm:$0xf0] }
 0x11c   :  { %v4793_v54 = vpop.eup %4655 }
 0x11d   :  { %v143_v59 = vmul.f32 %v4793_v54, %v4789_v23  ;;  %vm149_vm2 = vweird.f32 %v4793_v54  ;;  %v4446_v23 = vld [vmem:[#allocation2 + $0x43c] sm:$0xf] }
 0x11e   :  { %vm4809_vm4 = vmor %vm148_vm3, %vm149_vm2  ;;  %v3571_v51 = vor.u32 %v4446_v23, %v3568_v37  ;;  %1564 = vmatpush.bf16.msrb.mxu2 %v3031_v53  ;;  %v4410_v23 = vld [vmem:[#allocation2 + $0x31c] sm:$0xf]  ;;  %v3424_v37 = vld [vmem:[#allocation2 + $0x33c] sm:$0xf0]  ;;  %vm2928_vm3 = vcmask 64512  }
 0x11f   :  { %v144_v4 = vmul.f32 %v4793_v54, %v143_v59  ;;  %v3287_v59 = vor.u32 %v4379_v46, %v3286_v43  ;;  %v3142_v43 = vld [vmem:[#allocation2 + $0xe0] sm:$0xf]  ;;  %v3427_v48 = vor.u32 %v4410_v23, %v3424_v37  ;;  %v166_v37 = vpop.permute.xlu2 %165 }
 0x120   :  { %1570 = vmatpush.bf16.msrb.mxu3 %v3571_v51  ;;  %v3430_v46 = vld [vmem:[#allocation2 + $0x320] sm:$0xf]  ;;  %v3388_v51 = vld [vmem:[#allocation2 + $0x2f4] sm:$0xf0] }
 0x121   :  { %v145_v16 = vmul.f32 0.5, %v144_v4  ;;  %v4428_v4 = vld [vmem:[#allocation2 + $0x3ac] sm:$0xf]  ;;  %1596 = vmatpush.bf16.msra.mxu1 %v3287_v59  ;;  %v3431_v53 = vor.u32 %v4415_v47, %v3430_v46  ;;  %v4334_v59 = vld [vmem:[#allocation2 + $0xb8] sm:$0xf0] }
 0x122   :  { %1609 = vmatpush.bf16.msra.mxu2 %v3575_v60  ;;  %v3499_v18 = vor.u32 %v4428_v4, %v3496_v5  ;;  %v3394_v60 = vld [vmem:[#allocation2 + $0x2d8] sm:$0xf]  ;;  %v3107_v1 = vor.u32 %v4334_v59, %v3106_v57  ;;  %v3640_v5 = vld [vmem:[#allocation2 + $0x4ec] sm:$0xf0]  ;;  %v3288_v46 = vld [vmem:[#allocation2 + $0x224] sm:$0xf0] }
 0x123   :  { %v146_v28 = vsub.f32 1.5, %v145_v16  ;;  %v4433_v16 = vld [vmem:[#allocation2 + $0x3d0] sm:$0xf0]  ;;  %v4447_v47 = vld [vmem:[#allocation2 + $0x444] sm:$0xf] }
 0x124   :  { %1571 = vmatpush.bf16.msrb.mxu3 %v3535_v3  ;;  %v3503_v26 = vor.u32 %v4433_v16, %v3502_v14  ;;  %v3352_v3 = vld [vmem:[#allocation2 + $0x2ac] sm:$0xf0]  ;;  %v3359_v14 = vor.u32 %v4397_v13, %v3358_v11  ;;  %v4383_v16 = vld [vmem:[#allocation2 + $0x244] sm:$0xf]  ;;  %v4514_v57 = vld [vmem:[#allocation2 + $0x658] sm:$0xf0]  ;;  %v3579_v59 = vor.u32 %v4447_v47, %v3576_v19 }
 0x125   :  { %v147_v38 = vmul.f32 %v4793_v54, %v146_v28  ;;  %1597 = vmatpush.bf16.msra.mxu1 %v3251_v6  ;;  %v3748_v28 = vld [vmem:[#allocation2 + $0x5c4] sm:$0xf0]  ;;  %v3070_v6 = vld [vmem:[#allocation2 + $0x50] sm:$0xf]  ;;  %v4429_v11 = vld [vmem:[#allocation2 + $0x3b4] sm:$0xf] }
 0x126   :  { %v3751_v35 = vor.u32 %v4491_v27, %v3748_v28  ;;  %v3504_v13 = vld [vmem:[#allocation2 + $0x3d4] sm:$0xf0]  ;;  %v3720_v47 = vld [vmem:[#allocation2 + $0x584] sm:$0xf0]  ;;  %v4478_v19 = vld [vmem:[#allocation2 + $0x538] sm:$0xf0] }
 0x127   :  { %v151_v49 = vsel %vm4809_vm4, %v4793_v54, %v147_v38  ;;  %v3538_v54 = vld [vmem:[#allocation2 + $0x3f8] sm:$0xf]  ;;  %v3179_v38 = vor.u32 %v4352_v30, %v3178_v29  ;;  %v3322_v29 = vld [vmem:[#allocation2 + $0x248] sm:$0xf]  ;;  %v4388_v30 = vld [vmem:[#allocation2 + $0x268] sm:$0xf0] }
 0x128   :  { %v152_v52 = vmul.f32 %v151_v49, %v4754_v10  ;;  %v3823_v10 = vor.u32 %v4509_v61, %v3820_v62  ;;  %v3539_v7 = vor.u32 %v4442_v2, %v3538_v54  ;;  %1572 = vmatpush.bf16.msrb.mxu3 %v3499_v18  ;;  %v3715_v49 = vor.u32 %v4482_v41, %v3712_v42  ;;  %v4406_v61 = vld [vmem:[#allocation2 + $0x2f8] sm:$0xf0]  ;;  %v4392_v2 = vld [vmem:[#allocation2 + $0x28c] sm:$0xf]  ;;  %v3316_v18 = vld [vmem:[#allocation2 + $0x264] sm:$0xf0] }
 0x129   :  { %1598 = vmatpush.bf16.msra.mxu1 %v3215_v25  ;;  %v3391_v62 = vor.u32 %v4401_v50, %v3388_v51  ;;  %v3395_v54 = vor.u32 %v4406_v61, %v3394_v60  ;;  %v3355_v4 = vor.u32 %v4392_v2, %v3352_v3  ;;  %v3319_v22 = vor.u32 %v4383_v16, %v3316_v18  ;;  %v3034_v25 = vld [vmem:[#allocation2 + $0x8] sm:$0xf]  ;;  %v3862_v42 = vld [vmem:[#allocation2 + $0x680] sm:$0xf]  ;;  %v4519_v51 = vld [vmem:[#allocation2 + $0x684] sm:$0xf] }
 0x12a   :  { %158 = vperm.xlu1 %4643, %v152_v52   ;;  %1584 = vmatpush.bf16.msra.mxu0 %v3823_v10  ;;  %v3143_v52 = vor.u32 %v4343_v44, %v3142_v43  ;;  %v4464_v10 = vld [vmem:[#allocation2 + $0x4cc] sm:$0xf]  ;;  %v3323_v32 = vor.u32 %v4388_v30, %v3322_v29  ;;  %v4523_v43 = vld [vmem:[#allocation2 + $0x6a0] sm:$0xf0]  ;;  %v4366_v61 = vld [vmem:[#allocation2 + $0x1bc] sm:$0xf]  ;;  %v3827_v3 = vor.u32 %v4514_v57, %v3826_v56 }
 0x12b   :  { %1610 = vmatpush.bf16.msra.mxu2 %v3539_v7  ;;  %v4325_v7 = vld [vmem:[#allocation2 + $0x70] sm:$0xf0]  ;;  %v3643_v8 = vor.u32 %v4464_v10, %v3640_v5  ;;  %v4375_v44 = vld [vmem:[#allocation2 + $0x204] sm:$0xf]  ;;  %v3828_v2 = vld [vmem:[#allocation2 + $0x65c] sm:$0xf0] }
 0x12c   :  { %1573 = vmatpush.bf16.msrb.mxu3 %v3463_v34  ;;  %v3071_v9 = vor.u32 %v4325_v7, %v3070_v6  ;;  %v154_v34 = vsub.f32 %v4764_v20, %v4781_v45  ;;  %v3863_v20 = vor.u32 %v4523_v43, %v3862_v42  ;;  %v3291_v55 = vor.u32 %v4375_v44, %v3288_v46  ;;  %v4505_v5 = vld [vmem:[#allocation2 + $0x610] sm:$0xf0]  ;;  %v3792_v16 = vld [vmem:[#allocation2 + $0x614] sm:$0xf0]  ;;  %v4420_v29 = vld [vmem:[#allocation2 + $0x36c] sm:$0xf] }
 0x12d   :  { %1599 = vmatpush.bf16.msra.mxu1 %v3179_v38  ;;  %v3468_v30 = vld [vmem:[#allocation2 + $0x38c] sm:$0xf0]  ;;  %v3144_v42 = vld [vmem:[#allocation2 + $0x104] sm:$0xf0]  ;;  %v4411_v43 = vld [vmem:[#allocation2 + $0x324] sm:$0xf] }
 0x12e   :  { %1585 = vmatpush.bf16.msra.mxu0 %v3787_v21  ;;  %v4455_v21 = vld [vmem:[#allocation2 + $0x484] sm:$0xf]  ;;  %v3432_v44 = vld [vmem:[#allocation2 + $0x344] sm:$0xf0]  ;;  %v4402_v56 = vld [vmem:[#allocation2 + $0x2dc] sm:$0xf] }
 0x12f   :  { %1611 = vmatpush.bf16.msra.mxu2 %v3503_v26  ;;  %v4316_v26 = vld [vmem:[#allocation2 + $0x28] sm:$0xf0]  ;;  %v3607_v27 = vor.u32 %v4455_v21, %v3604_v24  ;;  %v4483_v46 = vld [vmem:[#allocation2 + $0x564] sm:$0xf]  ;;  %v3396_v57 = vld [vmem:[#allocation2 + $0x2fc] sm:$0xf0] }
 0x130   :  { %1574 = vmatpush.bf16.msrb.mxu3 %v3427_v48  ;;  %v3035_v28 = vor.u32 %v4316_v26, %v3034_v25  ;;  %v4496_v24 = vld [vmem:[#allocation2 + $0x5c8] sm:$0xf0]  ;;  %v3507_v25 = vor.u32 %v4429_v11, %v3504_v13  ;;  %vm2985_vm4 = vcmask 7168  }
 0x131   :  { %1600 = vmatpush.bf16.msra.mxu1 %v3143_v52  ;;  %v3864_v52 = vld [vmem:[#allocation2 + $0x6a4] sm:$0xf0]  ;;  %v4460_v13 = vld [vmem:[#allocation2 + $0x4a8] sm:$0xf0] }
 0x132   :  { %4648 = vset.pattern.permute.xlu1 %v4692_v0  ;;  %1586 = vmatpush.bf16.msra.mxu0 %v3751_v35  ;;  %v155_v35 = vsub.f32 %v4773_v31, %v4781_v45  ;;  %v3867_v60 = vor.u32 %v4519_v51, %v3864_v52  ;;  %v3435_v51 = vor.u32 %v4411_v43, %v3432_v44  ;;  %v3258_v43 = vld [vmem:[#allocation2 + $0x1c0] sm:$0xf]  ;;  %v4371_v44 = vld [vmem:[#allocation2 + $0x1e0] sm:$0xf0] }
 0x133   :  { %1612 = vmatpush.bf16.msra.mxu2 %v3467_v39  ;;  %v3723_v52 = vor.u32 %v4483_v46, %v3720_v47 }
 0x134   :  { %1575 = vmatpush.bf16.msrb.mxu3 %v3391_v62  ;;  %v3252_v62 = vld [vmem:[#allocation2 + $0x1dc] sm:$0xf0] }
 0x135   :  { %1601 = vmatpush.bf16.msra.mxu1 %v3107_v1  ;;  %v3540_v1 = vld [vmem:[#allocation2 + $0x41c] sm:$0xf0]  ;;  %v3255_v10 = vor.u32 %v4366_v61, %v3252_v62 }
 0x136   :  { %1587 = vmatpush.bf16.msra.mxu0 %v3715_v49 }
 0x137   :  { %1613 = vmatpush.bf16.msra.mxu2 %v3431_v53 }
 0x138   :  { %1576 = vmatpush.bf16.msrb.mxu3 %v3355_v4  ;;  %v3790_v4 = vld [vmem:[#allocation2 + $0x5f0] sm:$0xf] }
 0x139   :  { %1602 = vmatpush.bf16.msra.mxu1 %v3071_v9  ;;  %v3216_v9 = vld [vmem:[#allocation2 + $0x194] sm:$0xf0]  ;;  %v3791_v18 = vor.u32 %v4505_v5, %v3790_v4  ;;  %v4393_v4 = vld [vmem:[#allocation2 + $0x294] sm:$0xf] }
 0x13a   :  { %1588 = vmatpush.bf16.msra.mxu0 %v3679_v63  ;;  %v4438_v63 = vld [vmem:[#allocation2 + $0x3fc] sm:$0xf]  ;;  %v3360_v5 = vld [vmem:[#allocation2 + $0x2b4] sm:$0xf0] }
 0x13b   :  { %1614 = vmatpush.bf16.msra.mxu2 %v3395_v54  ;;  %v4510_v54 = vld [vmem:[#allocation2 + $0x63c] sm:$0xf]  ;;  %v3543_v6 = vor.u32 %v4438_v63, %v3540_v1  ;;  %v3646_v63 = vld [vmem:[#allocation2 + $0x4d0] sm:$0xf]  ;;  %v4469_v1 = vld [vmem:[#allocation2 + $0x4f0] sm:$0xf0] }
 0x13c   :  { %1577 = vmatpush.bf16.msrb.mxu3 %v3319_v22  ;;  %v3831_v7 = vor.u32 %v4510_v54, %v3828_v2  ;;  %v3754_v22 = vld [vmem:[#allocation2 + $0x5a8] sm:$0xf]  ;;  %v3399_v54 = vor.u32 %v4402_v56, %v3396_v57  ;;  %v3222_v56 = vld [vmem:[#allocation2 + $0x178] sm:$0xf]  ;;  %v4362_v57 = vld [vmem:[#allocation2 + $0x198] sm:$0xf0] }
 0x13d   :  { %1603 = vmatpush.bf16.msra.mxu1 %v3035_v28  ;;  %v3180_v28 = vld [vmem:[#allocation2 + $0x14c] sm:$0xf0] }
 0x13e   :  { %1589 = vmatpush.bf16.msra.mxu0 %v3643_v8  ;;  %v4357_v8 = vld [vmem:[#allocation2 + $0x174] sm:$0xf] }
 0x13f   :  { %1615 = vmatpush.bf16.msra.mxu2 %v3359_v14  ;;  %v4501_v14 = vld [vmem:[#allocation2 + $0x5f4] sm:$0xf]  ;;  %v3219_v21 = vor.u32 %v4357_v8, %v3216_v9  ;;  %v3610_v8 = vld [vmem:[#allocation2 + $0x488] sm:$0xf]  ;;  %v3647_v9 = vor.u32 %v4469_v1, %v3646_v63  ;;  %v3798_v63 = vld [vmem:[#allocation2 + $0x5f8] sm:$0xf] }
 0x140   :  { %v3795_v26 = vor.u32 %v4501_v14, %v3792_v16  ;;  %v4312_v14 = vld [vmem:[#allocation2 + $0xc] sm:$0xf]  ;;  %v3036_v16 = vld [vmem:[#allocation2 + $0x2c] sm:$0xf0]  ;;  %v4506_v1 = vld [vmem:[#allocation2 + $0x618] sm:$0xf0] }
 0x142   :  { %1590 = vmatpush.bf16.msra.mxu0 %v3607_v27  ;;  %v4348_v27 = vld [vmem:[#allocation2 + $0x12c] sm:$0xf] }
 0x143   :  { %1616 = vmatpush.bf16.msra.mxu2 %v3323_v32  ;;  %v4492_v32 = vld [vmem:[#allocation2 + $0x5ac] sm:$0xf] }
 0x19c   :  { %v159_v23 = vpop.permute.xlu1 %158 }
 0x19d   :  { %v161_v38 = vmul.f32 %v159_v23, %v153_v33  ;;  %v162_v39 = vmul.f32 %v159_v23, %v154_v34  ;;  %v163_v41 = vmul.f32 %v159_v23, %v155_v35  ;;  %v3756_v33 = vld [vmem:[#allocation2 + $0x5cc] sm:$0xf0]  ;;  %v3755_v34 = vor.u32 %v4496_v24, %v3754_v22  ;;  %v3718_v23 = vld [vmem:[#allocation2 + $0x560] sm:$0xf]  ;;  %v4384_v22 = vld [vmem:[#allocation2 + $0x24c] sm:$0xf] }
 0x19e   :  { %v3183_v35 = vor.u32 %v4348_v27, %v3180_v28  ;;  %v3324_v24 = vld [vmem:[#allocation2 + $0x26c] sm:$0xf0]  ;;  %v3294_v27 = vld [vmem:[#allocation2 + $0x208] sm:$0xf]  ;;  %v4380_v28 = vld [vmem:[#allocation2 + $0x228] sm:$0xf0] }
 0x19f   :  { %v168_v48 = vadd.f32 %v166_v37, %v161_v38  ;;  %v169_v49 = vadd.f32 %v166_v37, %v162_v39  ;;  %v170_v50 = vadd.f32 %v166_v37, %v163_v41  ;;  %v4487_v37 = vld [vmem:[#allocation2 + $0x580] sm:$0xf0]  ;;  %v3471_v38 = vor.u32 %v4420_v29, %v3468_v30  ;;  %v3582_v29 = vld [vmem:[#allocation2 + $0x448] sm:$0xf]  ;;  %v4452_v30 = vld [vmem:[#allocation2 + $0x468] sm:$0xf0] }
 0x1a0   :  { %v3759_v39 = vor.u32 %v4492_v32, %v3756_v33  ;;  %v4339_v41 = vld [vmem:[#allocation2 + $0xe4] sm:$0xf]  ;;  %v3870_v32 = vld [vmem:[#allocation2 + $0x688] sm:$0xf]  ;;  %v3611_v33 = vor.u32 %v4460_v13, %v3610_v8  ;;  %v3474_v8 = vld [vmem:[#allocation2 + $0x370] sm:$0xf] }
 0x1a1   :  { %v4825_v53 = vpack.c.bf16 %v168_v48, %v168_v48  ;;  %v4827_v31 = vpack.c.bf16 %v169_v49, %v169_v49  ;;  %v4829_v45 = vpack.c.bf16 %v170_v50, %v170_v50  ;;  %v3719_v48 = vor.u32 %v4487_v37, %v3718_v23  ;;  %v3682_v50 = vld [vmem:[#allocation2 + $0x518] sm:$0xf]  ;;  %v4376_v23 = vld [vmem:[#allocation2 + $0x20c] sm:$0xf]  ;;  %v3296_v37 = vld [vmem:[#allocation2 + $0x22c] sm:$0xf0] }
 0x1a2   :  { %v3147_v49 = vor.u32 %v4339_v41, %v3144_v42  ;;  %v3683_v61 = vor.u32 %v4478_v19, %v3682_v50  ;;  %v3295_v41 = vor.u32 %v4380_v28, %v3294_v27  ;;  %v3583_v42 = vor.u32 %v4452_v30, %v3582_v29  ;;  %v3834_v50 = vld [vmem:[#allocation2 + $0x640] sm:$0xf]  ;;  %v4515_v19 = vld [vmem:[#allocation2 + $0x660] sm:$0xf0]  ;;  %v4497_v13 = vld [vmem:[#allocation2 + $0x5d0] sm:$0xf0] }
 0x1a3   :  { %1526 = vmatmul.bf16.vlgmr.msra.gmra.mxu3 %v4825_v53  ;;  %1539 = vmatmul.bf16.vlgmr.msrb.gmra.mxu0 %v4827_v31  ;;  %v3299_v47 = vor.u32 %v4376_v23, %v3296_v37  ;;  %v3438_v27 = vld [vmem:[#allocation2 + $0x328] sm:$0xf]  ;;  %v4416_v28 = vld [vmem:[#allocation2 + $0x348] sm:$0xf0]  ;;  %v3114_v23 = vld [vmem:[#allocation2 + $0xa0] sm:$0xf] }
 0x1a4   :  { %1552 = vmatmul.bf16.vlgmr.msrb.gmra.mxu1 %v4829_v45  ;;  %1565 = vmatmul.bf16.vlgmr.msrb.gmra.mxu2 %v4825_v53  ;;  %v3726_v29 = vld [vmem:[#allocation2 + $0x568] sm:$0xf]  ;;  %v4488_v30 = vld [vmem:[#allocation2 + $0x588] sm:$0xf0]  ;;  %v4335_v37 = vld [vmem:[#allocation2 + $0xc0] sm:$0xf0] }
 0x1a5   :  { %1622 = vmatpush.bf16.msra.mxu3 %v3863_v20  ;;  %1635 = vmatpush.bf16.msrb.mxu0 %v3291_v55  ;;  %v4330_v20 = vld [vmem:[#allocation2 + $0x9c] sm:$0xf]  ;;  %v3108_v55 = vld [vmem:[#allocation2 + $0xbc] sm:$0xf0] }
 0x1a6   :  { %1648 = vmatpush.bf16.msrb.mxu1 %v3579_v59  ;;  %1661 = vmatpush.bf16.msrb.mxu2 %v3867_v60  ;;  %v4474_v59 = vld [vmem:[#allocation2 + $0x51c] sm:$0xf]  ;;  %v3684_v60 = vld [vmem:[#allocation2 + $0x53c] sm:$0xf0]  ;;  %v3111_v62 = vor.u32 %v4330_v20, %v3108_v55  ;;  %v3259_v20 = vor.u32 %v4371_v44, %v3258_v43  ;;  %v4479_v44 = vld [vmem:[#allocation2 + $0x540] sm:$0xf0] }
 0x1a7   :  { %v3687_v2 = vor.u32 %v4474_v59, %v3684_v60  ;;  %v3835_v59 = vor.u32 %v4515_v19, %v3834_v50  ;;  %v3690_v43 = vld [vmem:[#allocation2 + $0x520] sm:$0xf]  ;;  %v3078_v50 = vld [vmem:[#allocation2 + $0x58] sm:$0xf]  ;;  %v4326_v19 = vld [vmem:[#allocation2 + $0x78] sm:$0xf0] }
 0x1a9   :  { %1623 = vmatpush.bf16.msra.mxu3 %v3827_v3  ;;  %1636 = vmatpush.bf16.msrb.mxu0 %v3255_v10  ;;  %v4321_v3 = vld [vmem:[#allocation2 + $0x54] sm:$0xf]  ;;  %v3072_v10 = vld [vmem:[#allocation2 + $0x74] sm:$0xf0] }
 0x1aa   :  { %1649 = vmatpush.bf16.msrb.mxu1 %v3543_v6  ;;  %1662 = vmatpush.bf16.msrb.mxu2 %v3831_v7  ;;  %v4465_v6 = vld [vmem:[#allocation2 + $0x4d4] sm:$0xf]  ;;  %v3648_v7 = vld [vmem:[#allocation2 + $0x4f4] sm:$0xf0]  ;;  %v3075_v11 = vor.u32 %v4321_v3, %v3072_v10  ;;  %v3223_v3 = vor.u32 %v4362_v57, %v3222_v56  ;;  %v4470_v57 = vld [vmem:[#allocation2 + $0x4f8] sm:$0xf0] }
 0x1ab   :  { %v3654_v56 = vld [vmem:[#allocation2 + $0x4d8] sm:$0xf] }
 0x1ad   :  { %1624 = vmatpush.bf16.msra.mxu3 %v3791_v18  ;;  %1637 = vmatpush.bf16.msrb.mxu0 %v3219_v21  ;;  %v3363_v18 = vor.u32 %v4393_v4, %v3360_v5  ;;  %v3651_v21 = vor.u32 %v4465_v6, %v3648_v7  ;;  %v3186_v4 = vld [vmem:[#allocation2 + $0x130] sm:$0xf]  ;;  %v4353_v5 = vld [vmem:[#allocation2 + $0x150] sm:$0xf0]  ;;  %v3799_v6 = vor.u32 %v4506_v1, %v3798_v63 }
 0x1ae   :  { %1650 = vmatpush.bf16.msrb.mxu1 %v3507_v25  ;;  %1663 = vmatpush.bf16.msrb.mxu2 %v3795_v26  ;;  %v4456_v25 = vld [vmem:[#allocation2 + $0x48c] sm:$0xf]  ;;  %v3612_v26 = vld [vmem:[#allocation2 + $0x4ac] sm:$0xf0]  ;;  %v4317_v1 = vld [vmem:[#allocation2 + $0x30] sm:$0xf0] }
 0x1b1   :  { %1625 = vmatpush.bf16.msra.mxu3 %v3755_v34  ;;  %1638 = vmatpush.bf16.msrb.mxu0 %v3183_v35  ;;  %v3039_v34 = vor.u32 %v4312_v14, %v3036_v16  ;;  %v4524_v35 = vld [vmem:[#allocation2 + $0x6a8] sm:$0xf0]  ;;  %v4349_v14 = vld [vmem:[#allocation2 + $0x134] sm:$0xf]  ;;  %v3188_v16 = vld [vmem:[#allocation2 + $0x154] sm:$0xf0] }
 0x1b2   :  { %1651 = vmatpush.bf16.msrb.mxu1 %v3471_v38  ;;  %1664 = vmatpush.bf16.msrb.mxu2 %v3759_v39  ;;  %v3327_v38 = vor.u32 %v4384_v22, %v3324_v24  ;;  %v3615_v39 = vor.u32 %v4456_v25, %v3612_v26  ;;  %v3871_v46 = vor.u32 %v4524_v35, %v3870_v32  ;;  %v3150_v22 = vld [vmem:[#allocation2 + $0xe8] sm:$0xf]  ;;  %v4344_v24 = vld [vmem:[#allocation2 + $0x108] sm:$0xf0] }
 0x1b3   :  { %1578 = vmatmul.bf16.vlgmr.msrb.gmra.mxu3 %v4827_v31  ;;  %1591 = vmatmul.bf16.vlgmr.msra.gmra.mxu0 %v4829_v45  ;;  %v3191_v26 = vor.u32 %v4349_v14, %v3188_v16  ;;  %v4340_v32 = vld [vmem:[#allocation2 + $0xec] sm:$0xf]  ;;  %v3439_v35 = vor.u32 %v4416_v28, %v3438_v27  ;;  %v3302_v14 = vld [vmem:[#allocation2 + $0x210] sm:$0xf] }
 0x1b4   :  { %1604 = vmatmul.bf16.vlgmr.msra.gmra.mxu1 %v4825_v53  ;;  %1617 = vmatmul.bf16.vlgmr.msra.gmra.mxu2 %v4827_v31 }
 0x1b5   :  { %1626 = vmatpush.bf16.msra.mxu3 %v3719_v48  ;;  %1639 = vmatpush.bf16.msrb.mxu0 %v3147_v49  ;;  %v3546_v48 = vld [vmem:[#allocation2 + $0x400] sm:$0xf]  ;;  %v4443_v49 = vld [vmem:[#allocation2 + $0x420] sm:$0xf0] }
 0x1b6   :  { %1652 = vmatpush.bf16.msrb.mxu1 %v3435_v51  ;;  %1665 = vmatpush.bf16.msrb.mxu2 %v3723_v52  ;;  %v4367_v51 = vld [vmem:[#allocation2 + $0x1c4] sm:$0xf]  ;;  %v3260_v52 = vld [vmem:[#allocation2 + $0x1e4] sm:$0xf0]  ;;  %v3547_v55 = vor.u32 %v4443_v49, %v3546_v48  ;;  %v3115_v48 = vor.u32 %v4335_v37, %v3114_v23  ;;  %v4372_v37 = vld [vmem:[#allocation2 + $0x1e8] sm:$0xf0] }
 0x1b7   :  { %v3263_v60 = vor.u32 %v4367_v51, %v3260_v52  ;;  %v3691_v51 = vor.u32 %v4479_v44, %v3690_v43  ;;  %v3266_v23 = vld [vmem:[#allocation2 + $0x1c8] sm:$0xf]  ;;  %v4430_v43 = vld [vmem:[#allocation2 + $0x3bc] sm:$0xf]  ;;  %v3512_v44 = vld [vmem:[#allocation2 + $0x3dc] sm:$0xf0] }
 0x1b9   :  { %1627 = vmatpush.bf16.msra.mxu3 %v3683_v61  ;;  %1640 = vmatpush.bf16.msrb.mxu0 %v3111_v62  ;;  %v3510_v61 = vld [vmem:[#allocation2 + $0x3b8] sm:$0xf]  ;;  %v4434_v62 = vld [vmem:[#allocation2 + $0x3d8] sm:$0xf0] }
 0x1ba   :  { %1653 = vmatpush.bf16.msrb.mxu1 %v3399_v54  ;;  %1666 = vmatpush.bf16.msrb.mxu2 %v3687_v2  ;;  %v4358_v54 = vld [vmem:[#allocation2 + $0x17c] sm:$0xf]  ;;  %v3224_v2 = vld [vmem:[#allocation2 + $0x19c] sm:$0xf0]  ;;  %v3511_v10 = vor.u32 %v4434_v62, %v3510_v61  ;;  %v3042_v61 = vld [vmem:[#allocation2 + $0x10] sm:$0xf]  ;;  %v3079_v62 = vor.u32 %v4326_v19, %v3078_v50 }
 0x1bb   :  { %v3227_v7 = vor.u32 %v4358_v54, %v3224_v2  ;;  %v3330_v54 = vld [vmem:[#allocation2 + $0x250] sm:$0xf]  ;;  %v4389_v2 = vld [vmem:[#allocation2 + $0x270] sm:$0xf0]  ;;  %v3043_v16 = vor.u32 %v4317_v1, %v3042_v61  ;;  %v3230_v50 = vld [vmem:[#allocation2 + $0x180] sm:$0xf] }
 0x1bc   :  { %v4363_v19 = vld [vmem:[#allocation2 + $0x1a0] sm:$0xf0]  ;;  %v4493_v61 = vld [vmem:[#allocation2 + $0x5b4] sm:$0xf]  ;;  %v4354_v1 = vld [vmem:[#allocation2 + $0x158] sm:$0xf0] }
 0x1bd   :  { %1628 = vmatpush.bf16.msra.mxu3 %v3647_v9  ;;  %1641 = vmatpush.bf16.msrb.mxu0 %v3075_v11  ;;  %v4425_v9 = vld [vmem:[#allocation2 + $0x390] sm:$0xf0]  ;;  %v3762_v11 = vld [vmem:[#allocation2 + $0x5b0] sm:$0xf] }
 0x1be   :  { %1654 = vmatpush.bf16.msrb.mxu1 %v3363_v18  ;;  %1667 = vmatpush.bf16.msrb.mxu2 %v3651_v21  ;;  %v3187_v18 = vor.u32 %v4353_v5, %v3186_v4  ;;  %v3475_v21 = vor.u32 %v4425_v9, %v3474_v8  ;;  %v3763_v25 = vor.u32 %v4497_v13, %v3762_v11  ;;  %v3618_v4 = vld [vmem:[#allocation2 + $0x490] sm:$0xf]  ;;  %v4461_v5 = vld [vmem:[#allocation2 + $0x4b0] sm:$0xf0]  ;;  %v4448_v8 = vld [vmem:[#allocation2 + $0x44c] sm:$0xf] }
 0x1bf   :  { %v3584_v9 = vld [vmem:[#allocation2 + $0x46c] sm:$0xf0]  ;;  %v4520_v11 = vld [vmem:[#allocation2 + $0x68c] sm:$0xf] }
 0x1c0   :  { %v3872_v13 = vld [vmem:[#allocation2 + $0x6ac] sm:$0xf0]  ;;  %v3587_v27 = vor.u32 %v4448_v8, %v3584_v9  ;;  %v4484_v8 = vld [vmem:[#allocation2 + $0x56c] sm:$0xf] }
 0x1c1   :  { %1629 = vmatpush.bf16.msra.mxu3 %v3611_v33  ;;  %1642 = vmatpush.bf16.msrb.mxu0 %v3039_v34  ;;  %v3152_v33 = vld [vmem:[#allocation2 + $0x10c] sm:$0xf0]  ;;  %v3151_v34 = vor.u32 %v4344_v24, %v3150_v22  ;;  %v4453_v24 = vld [vmem:[#allocation2 + $0x470] sm:$0xf0]  ;;  %v3875_v28 = vor.u32 %v4520_v11, %v3872_v13 }
 0x1c2   :  { %1655 = vmatpush.bf16.msrb.mxu1 %v3327_v38  ;;  %1668 = vmatpush.bf16.msrb.mxu2 %v3615_v39  ;;  %v3727_v38 = vor.u32 %v4488_v30, %v3726_v29  ;;  %v3155_v39 = vor.u32 %v4340_v32, %v3152_v33  ;;  %v3590_v22 = vld [vmem:[#allocation2 + $0x450] sm:$0xf]  ;;  %v4439_v29 = vld [vmem:[#allocation2 + $0x404] sm:$0xf]  ;;  %v3548_v30 = vld [vmem:[#allocation2 + $0x424] sm:$0xf0] }
 0x1c3   :  { %v3591_v33 = vor.u32 %v4453_v24, %v3590_v22  ;;  %v3728_v9 = vld [vmem:[#allocation2 + $0x58c] sm:$0xf0]  ;;  %v4345_v13 = vld [vmem:[#allocation2 + $0x110] sm:$0xf0]  ;;  %v4403_v22 = vld [vmem:[#allocation2 + $0x2e4] sm:$0xf] }
 0x1c4   :  { %1630 = vmatmul.bf16.vlgmr.msra.gmra.mxu3 %v4829_v45  ;;  %1643 = vmatmul.bf16.vlgmr.msrb.gmra.mxu0 %v4825_v53  ;;  %v3158_v11 = vld [vmem:[#allocation2 + $0xf0] sm:$0xf]  ;;  %v3404_v24 = vld [vmem:[#allocation2 + $0x304] sm:$0xf0] }
 0x1c5   :  { %1674 = vmatpush.bf16.msrb.mxu3 %v3295_v41  ;;  %1687 = vmatpush.bf16.msra.mxu0 %v3583_v42  ;;  %v3402_v41 = vld [vmem:[#allocation2 + $0x2e0] sm:$0xf]  ;;  %v4407_v42 = vld [vmem:[#allocation2 + $0x300] sm:$0xf0] }
 0x1c6   :  { %1700 = vmatpush.bf16.msra.mxu1 %v3871_v46  ;;  %1713 = vmatpush.bf16.msra.mxu2 %v3299_v47  ;;  %v4331_v46 = vld [vmem:[#allocation2 + $0xa4] sm:$0xf]  ;;  %v3116_v47 = vld [vmem:[#allocation2 + $0xc4] sm:$0xf0]  ;;  %v3403_v49 = vor.u32 %v4407_v42, %v3402_v41  ;;  %v3551_v41 = vor.u32 %v4439_v29, %v3548_v30  ;;  %v4336_v30 = vld [vmem:[#allocation2 + $0xc8] sm:$0xf0] }
 0x1c7   :  { %1656 = vmatmul.bf16.vlgmr.msrb.gmra.mxu1 %v4827_v31  ;;  %1669 = vmatmul.bf16.vlgmr.msrb.gmra.mxu2 %v4829_v45  ;;  %v3119_v52 = vor.u32 %v4331_v46, %v3116_v47  ;;  %v3267_v46 = vor.u32 %v4372_v37, %v3266_v23  ;;  %v3122_v29 = vld [vmem:[#allocation2 + $0xa8] sm:$0xf]  ;;  %v4394_v23 = vld [vmem:[#allocation2 + $0x29c] sm:$0xf]  ;;  %v3368_v37 = vld [vmem:[#allocation2 + $0x2bc] sm:$0xf0] }
 0x1c9   :  { %1675 = vmatpush.bf16.msrb.mxu3 %v3259_v20  ;;  %1688 = vmatpush.bf16.msra.mxu0 %v3547_v55  ;;  %v3366_v20 = vld [vmem:[#allocation2 + $0x298] sm:$0xf]  ;;  %v4398_v55 = vld [vmem:[#allocation2 + $0x2b8] sm:$0xf0] }
 0x1ca   :  { %1701 = vmatpush.bf16.msra.mxu1 %v3835_v59  ;;  %1714 = vmatpush.bf16.msra.mxu2 %v3263_v60  ;;  %v4322_v59 = vld [vmem:[#allocation2 + $0x5c] sm:$0xf]  ;;  %v3080_v60 = vld [vmem:[#allocation2 + $0x7c] sm:$0xf0]  ;;  %v3367_v63 = vor.u32 %v4398_v55, %v3366_v20  ;;  %v3515_v20 = vor.u32 %v4430_v43, %v3512_v44  ;;  %v4327_v44 = vld [vmem:[#allocation2 + $0x80] sm:$0xf0] }
 0x1cb   :  { %v3086_v43 = vld [vmem:[#allocation2 + $0x60] sm:$0xf] }
 0x1cd   :  { %1676 = vmatpush.bf16.msrb.mxu3 %v3223_v3  ;;  %1689 = vmatpush.bf16.msra.mxu0 %v3511_v10  ;;  %v3655_v3 = vor.u32 %v4470_v57, %v3654_v56  ;;  %v3083_v10 = vor.u32 %v4322_v59, %v3080_v60  ;;  %v4421_v56 = vld [vmem:[#allocation2 + $0x374] sm:$0xf]  ;;  %v3476_v57 = vld [vmem:[#allocation2 + $0x394] sm:$0xf0]  ;;  %v3231_v59 = vor.u32 %v4363_v19, %v3230_v50 }
 0x1ce   :  { %1702 = vmatpush.bf16.msra.mxu1 %v3799_v6  ;;  %1715 = vmatpush.bf16.msra.mxu2 %v3227_v7  ;;  %v4313_v6 = vld [vmem:[#allocation2 + $0x14] sm:$0xf]  ;;  %v3044_v7 = vld [vmem:[#allocation2 + $0x34] sm:$0xf0] }
 0x1cf   :  { %v3332_v19 = vld [vmem:[#allocation2 + $0x274] sm:$0xf0] }
 0x1d1   :  { %1677 = vmatpush.bf16.msrb.mxu3 %v3187_v18  ;;  %1690 = vmatpush.bf16.msra.mxu0 %v3475_v21  ;;  %v3331_v18 = vor.u32 %v4389_v2, %v3330_v54  ;;  %v4381_v21 = vld [vmem:[#allocation2 + $0x230] sm:$0xf0]  ;;  %v3482_v54 = vld [vmem:[#allocation2 + $0x378] sm:$0xf]  ;;  %v4426_v2 = vld [vmem:[#allocation2 + $0x398] sm:$0xf0] }
 0x1d2   :  { %1703 = vmatpush.bf16.msra.mxu1 %v3763_v25  ;;  %1716 = vmatpush.bf16.msra.mxu2 %v3191_v26  ;;  %v3619_v25 = vor.u32 %v4461_v5, %v3618_v4  ;;  %v3047_v26 = vor.u32 %v4313_v6, %v3044_v7  ;;  %v3303_v32 = vor.u32 %v4381_v21, %v3302_v14  ;;  %v4412_v4 = vld [vmem:[#allocation2 + $0x32c] sm:$0xf]  ;;  %v3440_v5 = vld [vmem:[#allocation2 + $0x34c] sm:$0xf0] }
 0x1d3   :  { %v3483_v7 = vor.u32 %v4426_v2, %v3482_v54  ;;  %v3446_v14 = vld [vmem:[#allocation2 + $0x330] sm:$0xf]  ;;  %v3731_v21 = vor.u32 %v4484_v8, %v3728_v9  ;;  %v4449_v54 = vld [vmem:[#allocation2 + $0x454] sm:$0xf] }
 0x1d5   :  { %1678 = vmatpush.bf16.msrb.mxu3 %v3151_v34  ;;  %1691 = vmatpush.bf16.msra.mxu0 %v3439_v35  ;;  %v4511_v34 = vld [vmem:[#allocation2 + $0x644] sm:$0xf]  ;;  %v3836_v35 = vld [vmem:[#allocation2 + $0x664] sm:$0xf0] }
 0x1d6   :  { %1704 = vmatpush.bf16.msra.mxu1 %v3727_v38  ;;  %1717 = vmatpush.bf16.msra.mxu2 %v3155_v39  ;;  %v3554_v38 = vld [vmem:[#allocation2 + $0x408] sm:$0xf]  ;;  %v4444_v39 = vld [vmem:[#allocation2 + $0x428] sm:$0xf0]  ;;  %v3839_v42 = vor.u32 %v4511_v34, %v3836_v35  ;;  %v3407_v34 = vor.u32 %v4403_v22, %v3404_v24  ;;  %v3556_v24 = vld [vmem:[#allocation2 + $0x42c] sm:$0xf0] }
 0x1d7   :  { %v3555_v47 = vor.u32 %v4444_v39, %v3554_v38  ;;  %v3123_v38 = vor.u32 %v4336_v30, %v3122_v29  ;;  %v4440_v22 = vld [vmem:[#allocation2 + $0x40c] sm:$0xf]  ;;  %v3806_v29 = vld [vmem:[#allocation2 + $0x600] sm:$0xf]  ;;  %v4507_v30 = vld [vmem:[#allocation2 + $0x620] sm:$0xf0] }
 0x1d9   :  { %1679 = vmatpush.bf16.msrb.mxu3 %v3115_v48  ;;  %1692 = vmatpush.bf16.msra.mxu0 %v3403_v49  ;;  %v4502_v48 = vld [vmem:[#allocation2 + $0x5fc] sm:$0xf]  ;;  %v3800_v49 = vld [vmem:[#allocation2 + $0x61c] sm:$0xf0] }
 0x1da   :  { %1705 = vmatpush.bf16.msra.mxu1 %v3691_v51  ;;  %1718 = vmatpush.bf16.msra.mxu2 %v3119_v52  ;;  %v3518_v51 = vld [vmem:[#allocation2 + $0x3c0] sm:$0xf]  ;;  %v4435_v52 = vld [vmem:[#allocation2 + $0x3e0] sm:$0xf0]  ;;  %v3803_v55 = vor.u32 %v4502_v48, %v3800_v49  ;;  %v4385_v48 = vld [vmem:[#allocation2 + $0x254] sm:$0xf]  ;;  %v3371_v49 = vor.u32 %v4394_v23, %v3368_v37 }
 0x1db   :  { %v3519_v60 = vor.u32 %v4435_v52, %v3518_v51  ;;  %v4457_v51 = vld [vmem:[#allocation2 + $0x494] sm:$0xf]  ;;  %v3620_v52 = vld [vmem:[#allocation2 + $0x4b4] sm:$0xf0]  ;;  %v3335_v2 = vor.u32 %v4385_v48, %v3332_v19  ;;  %v4431_v23 = vld [vmem:[#allocation2 + $0x3c4] sm:$0xf] }
 0x1dc   :  { %v3520_v37 = vld [vmem:[#allocation2 + $0x3e4] sm:$0xf0]  ;;  %v4350_v48 = vld [vmem:[#allocation2 + $0x13c] sm:$0xf]  ;;  %v3484_v19 = vld [vmem:[#allocation2 + $0x39c] sm:$0xf0] }
 0x1dd   :  { %1680 = vmatpush.bf16.msrb.mxu3 %v3079_v62  ;;  %1693 = vmatpush.bf16.msra.mxu0 %v3367_v63  ;;  %v3764_v62 = vld [vmem:[#allocation2 + $0x5d4] sm:$0xf0] }
 0x1de   :  { %1706 = vmatpush.bf16.msra.mxu1 %v3655_v3  ;;  %1719 = vmatpush.bf16.msra.mxu2 %v3083_v10  ;;  %v3194_v63 = vld [vmem:[#allocation2 + $0x138] sm:$0xf]  ;;  %v3479_v3 = vor.u32 %v4421_v56, %v3476_v57  ;;  %v3767_v10 = vor.u32 %v4493_v61, %v3764_v62  ;;  %v4318_v57 = vld [vmem:[#allocation2 + $0x38] sm:$0xf0]  ;;  %v3878_v61 = vld [vmem:[#allocation2 + $0x690] sm:$0xf] }
 0x1df   :  { %v3195_v6 = vor.u32 %v4354_v1, %v3194_v63  ;;  %v3050_v56 = vld [vmem:[#allocation2 + $0x18] sm:$0xf]  ;;  %v4525_v62 = vld [vmem:[#allocation2 + $0x6b0] sm:$0xf0] }
 0x1e0   :  { %v4377_v63 = vld [vmem:[#allocation2 + $0x214] sm:$0xf]  ;;  %v3304_v1 = vld [vmem:[#allocation2 + $0x234] sm:$0xf0]  ;;  %v3879_v8 = vor.u32 %v4525_v62, %v3878_v61 }
 0x1e1   :  { %1681 = vmatpush.bf16.msrb.mxu3 %v3043_v16  ;;  %1694 = vmatpush.bf16.msra.mxu0 %v3331_v18  ;;  %v4417_v16 = vld [vmem:[#allocation2 + $0x350] sm:$0xf0]  ;;  %v3443_v18 = vor.u32 %v4412_v4, %v3440_v5  ;;  %v3880_v5 = vld [vmem:[#allocation2 + $0x6b4] sm:$0xf0]  ;;  %v3307_v9 = vor.u32 %v4377_v63, %v3304_v1 }
 0x1e2   :  { %1707 = vmatpush.bf16.msra.mxu1 %v3619_v25  ;;  %1720 = vmatpush.bf16.msra.mxu2 %v3047_v26  ;;  %v3159_v25 = vor.u32 %v4345_v13, %v3158_v11  ;;  %v3447_v26 = vor.u32 %v4417_v16, %v3446_v14  ;;  %v4521_v4 = vld [vmem:[#allocation2 + $0x694] sm:$0xf]  ;;  %v3842_v11 = vld [vmem:[#allocation2 + $0x648] sm:$0xf]  ;;  %v4516_v13 = vld [vmem:[#allocation2 + $0x668] sm:$0xf0] }
 0x1e3   :  { %v3883_v16 = vor.u32 %v4521_v4, %v3880_v5  ;;  %v4341_v61 = vld [vmem:[#allocation2 + $0xf4] sm:$0xf]  ;;  %v3160_v62 = vld [vmem:[#allocation2 + $0x114] sm:$0xf0]  ;;  %v3698_v4 = vld [vmem:[#allocation2 + $0x528] sm:$0xf] }
 0x1e4   :  { %1682 = vmatmul.bf16.vlgmr.msrb.gmra.mxu3 %v4825_v53  ;;  %1695 = vmatmul.bf16.vlgmr.msra.gmra.mxu0 %v4827_v31  ;;  %v4413_v63 = vld [vmem:[#allocation2 + $0x334] sm:$0xf]  ;;  %v3448_v1 = vld [vmem:[#allocation2 + $0x354] sm:$0xf0]  ;;  %v4480_v5 = vld [vmem:[#allocation2 + $0x548] sm:$0xf0] }
 0x1e5   :  { %1726 = vmatpush.bf16.msra.mxu3 %v3587_v27  ;;  %1739 = vmatpush.bf16.msrb.mxu0 %v3875_v28  ;;  %v4475_v27 = vld [vmem:[#allocation2 + $0x524] sm:$0xf]  ;;  %v3692_v28 = vld [vmem:[#allocation2 + $0x544] sm:$0xf0] }
 0x1e6   :  { %1752 = vmatpush.bf16.msrb.mxu1 %v3303_v32  ;;  %1765 = vmatpush.bf16.msrb.mxu2 %v3591_v33  ;;  %v3410_v32 = vld [vmem:[#allocation2 + $0x2e8] sm:$0xf]  ;;  %v4408_v33 = vld [vmem:[#allocation2 + $0x308] sm:$0xf0]  ;;  %v3695_v35 = vor.u32 %v4475_v27, %v3692_v28  ;;  %v3843_v27 = vor.u32 %v4516_v13, %v3842_v11  ;;  %v3412_v13 = vld [vmem:[#allocation2 + $0x30c] sm:$0xf0] }
 0x1e7   :  { %1708 = vmatmul.bf16.vlgmr.msra.gmra.mxu1 %v4829_v45  ;;  %1721 = vmatmul.bf16.vlgmr.msra.gmra.mxu2 %v4825_v53  ;;  %v3411_v39 = vor.u32 %v4408_v33, %v3410_v32  ;;  %v3559_v32 = vor.u32 %v4440_v22, %v3556_v24  ;;  %v4404_v11 = vld [vmem:[#allocation2 + $0x2ec] sm:$0xf]  ;;  %v3662_v22 = vld [vmem:[#allocation2 + $0x4e0] sm:$0xf]  ;;  %v4471_v24 = vld [vmem:[#allocation2 + $0x500] sm:$0xf0] }
 0x1e9   :  { %1727 = vmatpush.bf16.msra.mxu3 %v3551_v41  ;;  %1740 = vmatpush.bf16.msrb.mxu0 %v3839_v42  ;;  %v4466_v41 = vld [vmem:[#allocation2 + $0x4dc] sm:$0xf]  ;;  %v3656_v42 = vld [vmem:[#allocation2 + $0x4fc] sm:$0xf0] }
 0x1ea   :  { %1753 = vmatpush.bf16.msrb.mxu1 %v3267_v46  ;;  %1766 = vmatpush.bf16.msrb.mxu2 %v3555_v47  ;;  %v3374_v46 = vld [vmem:[#allocation2 + $0x2a0] sm:$0xf]  ;;  %v4399_v47 = vld [vmem:[#allocation2 + $0x2c0] sm:$0xf0]  ;;  %v3659_v50 = vor.u32 %v4466_v41, %v3656_v42  ;;  %v3807_v41 = vor.u32 %v4507_v30, %v3806_v29  ;;  %v3376_v30 = vld [vmem:[#allocation2 + $0x2c4] sm:$0xf0] }
 0x1eb   :  { %v4395_v29 = vld [vmem:[#allocation2 + $0x2a4] sm:$0xf] }
 0x1ed   :  { %1728 = vmatpush.bf16.msra.mxu3 %v3515_v20  ;;  %1741 = vmatpush.bf16.msrb.mxu0 %v3803_v55  ;;  %v3087_v20 = vor.u32 %v4327_v44, %v3086_v43  ;;  %v3375_v55 = vor.u32 %v4399_v47, %v3374_v46  ;;  %v3770_v43 = vld [vmem:[#allocation2 + $0x5b8] sm:$0xf]  ;;  %v4498_v44 = vld [vmem:[#allocation2 + $0x5d8] sm:$0xf0]  ;;  %v3523_v46 = vor.u32 %v4431_v23, %v3520_v37 }
 0x1ee   :  { %1754 = vmatpush.bf16.msrb.mxu1 %v3231_v59  ;;  %1767 = vmatpush.bf16.msrb.mxu2 %v3519_v60  ;;  %v3338_v59 = vld [vmem:[#allocation2 + $0x258] sm:$0xf]  ;;  %v4390_v60 = vld [vmem:[#allocation2 + $0x278] sm:$0xf0] }
 0x1ef   :  { %v3626_v23 = vld [vmem:[#allocation2 + $0x498] sm:$0xf]  ;;  %v4462_v37 = vld [vmem:[#allocation2 + $0x4b8] sm:$0xf0] }
 0x1f1   :  { %1729 = vmatpush.bf16.msra.mxu3 %v3479_v3  ;;  %1742 = vmatpush.bf16.msrb.mxu0 %v3767_v10  ;;  %v3623_v3 = vor.u32 %v4457_v51, %v3620_v52  ;;  %v3592_v10 = vld [vmem:[#allocation2 + $0x474] sm:$0xf0]  ;;  %v4494_v51 = vld [vmem:[#allocation2 + $0x5bc] sm:$0xf]  ;;  %v3772_v52 = vld [vmem:[#allocation2 + $0x5dc] sm:$0xf0] }
 0x1f2   :  { %1755 = vmatpush.bf16.msrb.mxu1 %v3195_v6  ;;  %1768 = vmatpush.bf16.msrb.mxu2 %v3483_v7  ;;  %v3051_v6 = vor.u32 %v4318_v57, %v3050_v56  ;;  %v3339_v7 = vor.u32 %v4390_v60, %v3338_v59  ;;  %v3595_v14 = vor.u32 %v4449_v54, %v3592_v10  ;;  %v3734_v56 = vld [vmem:[#allocation2 + $0x570] sm:$0xf]  ;;  %v4489_v57 = vld [vmem:[#allocation2 + $0x590] sm:$0xf0] }
 0x1f3   :  { %v3775_v60 = vor.u32 %v4494_v51, %v3772_v52  ;;  %v4485_v54 = vld [vmem:[#allocation2 + $0x574] sm:$0xf]  ;;  %v3163_v10 = vor.u32 %v4341_v61, %v3160_v62  ;;  %v3627_v51 = vor.u32 %v4462_v37, %v3626_v23  ;;  %v3274_v61 = vld [vmem:[#allocation2 + $0x1d0] sm:$0xf]  ;;  %v4346_v23 = vld [vmem:[#allocation2 + $0x118] sm:$0xf0] }
 0x1f4   :  { %v3454_v37 = vld [vmem:[#allocation2 + $0x338] sm:$0xf] }
 0x1f5   :  { %1730 = vmatpush.bf16.msra.mxu3 %v3443_v18  ;;  %1743 = vmatpush.bf16.msrb.mxu0 %v3731_v21  ;;  %v4368_v18 = vld [vmem:[#allocation2 + $0x1cc] sm:$0xf]  ;;  %v3268_v21 = vld [vmem:[#allocation2 + $0x1ec] sm:$0xf0] }
 0x1f6   :  { %1756 = vmatpush.bf16.msrb.mxu1 %v3159_v25  ;;  %1769 = vmatpush.bf16.msrb.mxu2 %v3447_v26  ;;  %v4512_v25 = vld [vmem:[#allocation2 + $0x64c] sm:$0xf]  ;;  %v3844_v26 = vld [vmem:[#allocation2 + $0x66c] sm:$0xf0]  ;;  %v3271_v28 = vor.u32 %v4368_v18, %v3268_v21  ;;  %v3699_v18 = vor.u32 %v4480_v5, %v3698_v4  ;;  %v3238_v5 = vld [vmem:[#allocation2 + $0x188] sm:$0xf] }
 0x1f7   :  { %v3847_v33 = vor.u32 %v4512_v25, %v3844_v26  ;;  %v3415_v25 = vor.u32 %v4404_v11, %v3412_v13  ;;  %v3814_v11 = vld [vmem:[#allocation2 + $0x608] sm:$0xf]  ;;  %v4508_v13 = vld [vmem:[#allocation2 + $0x628] sm:$0xf0] }
 0x1f9   :  { %1731 = vmatpush.bf16.msra.mxu3 %v3407_v34  ;;  %1744 = vmatpush.bf16.msrb.mxu0 %v3695_v35  ;;  %v4359_v34 = vld [vmem:[#allocation2 + $0x184] sm:$0xf]  ;;  %v3232_v35 = vld [vmem:[#allocation2 + $0x1a4] sm:$0xf0] }
 0x1fa   :  { %1757 = vmatpush.bf16.msrb.mxu1 %v3123_v38  ;;  %1770 = vmatpush.bf16.msrb.mxu2 %v3411_v39  ;;  %v4503_v38 = vld [vmem:[#allocation2 + $0x604] sm:$0xf]  ;;  %v3808_v39 = vld [vmem:[#allocation2 + $0x624] sm:$0xf0]  ;;  %v3235_v42 = vor.u32 %v4359_v34, %v3232_v35  ;;  %v3663_v34 = vor.u32 %v4471_v24, %v3662_v22  ;;  %v3202_v22 = vld [vmem:[#allocation2 + $0x140] sm:$0xf]  ;;  %v3815_v24 = vor.u32 %v4508_v13, %v3814_v11 }
 0x1fb   :  { %v3811_v47 = vor.u32 %v4503_v38, %v3808_v39  ;;  %v4314_v38 = vld [vmem:[#allocation2 + $0x1c] sm:$0xf]  ;;  %v3379_v39 = vor.u32 %v4395_v29, %v3376_v30  ;;  %v4499_v29 = vld [vmem:[#allocation2 + $0x5e0] sm:$0xf0]  ;;  %v3346_v13 = vld [vmem:[#allocation2 + $0x260] sm:$0xf] }
 0x1fc   :  { %v4319_v11 = vld [vmem:[#allocation2 + $0x40] sm:$0xf0] }
 0x1fd   :  { %1732 = vmatpush.bf16.msra.mxu3 %v3371_v49  ;;  %1745 = vmatpush.bf16.msrb.mxu0 %v3659_v50  ;;  %v3196_v49 = vld [vmem:[#allocation2 + $0x15c] sm:$0xf0]  ;;  %v4422_v50 = vld [vmem:[#allocation2 + $0x37c] sm:$0xf] }
 0x1fe   :  { %1758 = vmatpush.bf16.msrb.mxu1 %v3087_v20  ;;  %1771 = vmatpush.bf16.msrb.mxu2 %v3375_v55  ;;  %v3771_v20 = vor.u32 %v4498_v44, %v3770_v43  ;;  %v3199_v55 = vor.u32 %v4350_v48, %v3196_v49  ;;  %v3487_v59 = vor.u32 %v4422_v50, %v3484_v19  ;;  %v4386_v43 = vld [vmem:[#allocation2 + $0x25c] sm:$0xf]  ;;  %v3340_v44 = vld [vmem:[#allocation2 + $0x27c] sm:$0xf0]  ;;  %v3310_v48 = vld [vmem:[#allocation2 + $0x218] sm:$0xf] }
 0x1ff   :  { %v4382_v49 = vld [vmem:[#allocation2 + $0x238] sm:$0xf0]  ;;  %v3598_v50 = vld [vmem:[#allocation2 + $0x458] sm:$0xf] }
 0x200   :  { %v4454_v19 = vld [vmem:[#allocation2 + $0x478] sm:$0xf0] }
 0x201   :  { %1733 = vmatpush.bf16.msra.mxu3 %v3335_v2  ;;  %1746 = vmatpush.bf16.msrb.mxu0 %v3623_v3  ;;  %v3736_v2 = vld [vmem:[#allocation2 + $0x594] sm:$0xf0]  ;;  %v3735_v3 = vor.u32 %v4489_v57, %v3734_v56  ;;  %v3343_v56 = vor.u32 %v4386_v43, %v3340_v44  ;;  %v4490_v43 = vld [vmem:[#allocation2 + $0x598] sm:$0xf0] }
 0x202   :  { %1759 = vmatpush.bf16.msrb.mxu1 %v3051_v6  ;;  %1772 = vmatpush.bf16.msrb.mxu2 %v3339_v7  ;;  %v3451_v6 = vor.u32 %v4413_v63, %v3448_v1  ;;  %v3739_v7 = vor.u32 %v4485_v54, %v3736_v2  ;;  %v4373_v63 = vld [vmem:[#allocation2 + $0x1f0] sm:$0xf0]  ;;  %v3562_v1 = vld [vmem:[#allocation2 + $0x410] sm:$0xf] }
 0x203   :  { %v4445_v54 = vld [vmem:[#allocation2 + $0x430] sm:$0xf0]  ;;  %v3850_v2 = vld [vmem:[#allocation2 + $0x650] sm:$0xf] }
 0x204   :  { %1734 = vmatmul.bf16.vlgmr.msra.gmra.mxu3 %v4827_v31  ;;  %1747 = vmatmul.bf16.vlgmr.msrb.gmra.mxu0 %v4829_v45  ;;  %v3563_v4 = vor.u32 %v4445_v54, %v3562_v1  ;;  %v3382_v1 = vld [vmem:[#allocation2 + $0x2a8] sm:$0xf]  ;;  %v4400_v54 = vld [vmem:[#allocation2 + $0x2c8] sm:$0xf0] }
 0x205   :  { %1778 = vmatpush.bf16.msrb.mxu3 %v3879_v8  ;;  %1791 = vmatpush.bf16.msra.mxu0 %v3307_v9  ;;  %v4332_v8 = vld [vmem:[#allocation2 + $0xac] sm:$0xf]  ;;  %v3124_v9 = vld [vmem:[#allocation2 + $0xcc] sm:$0xf0] }
 0x206   :  { %1804 = vmatpush.bf16.msra.mxu1 %v3595_v14  ;;  %1817 = vmatpush.bf16.msra.mxu2 %v3883_v16  ;;  %v4476_v14 = vld [vmem:[#allocation2 + $0x52c] sm:$0xf]  ;;  %v3700_v16 = vld [vmem:[#allocation2 + $0x54c] sm:$0xf0]  ;;  %v3127_v21 = vor.u32 %v4332_v8, %v3124_v9  ;;  %v3526_v8 = vld [vmem:[#allocation2 + $0x3c8] sm:$0xf] }
 0x207   :  { %1760 = vmatmul.bf16.vlgmr.msrb.gmra.mxu1 %v4825_v53  ;;  %1773 = vmatmul.bf16.vlgmr.msrb.gmra.mxu2 %v4827_v31  ;;  %v3703_v26 = vor.u32 %v4476_v14, %v3700_v16  ;;  %v4436_v9 = vld [vmem:[#allocation2 + $0x3e8] sm:$0xf0] }
 0x209   :  { %1779 = vmatpush.bf16.msrb.mxu3 %v3843_v27  ;;  %1792 = vmatpush.bf16.msra.mxu0 %v3271_v28  ;;  %v4323_v27 = vld [vmem:[#allocation2 + $0x64] sm:$0xf]  ;;  %v3088_v28 = vld [vmem:[#allocation2 + $0x84] sm:$0xf0] }
 0x20a   :  { %1805 = vmatpush.bf16.msra.mxu1 %v3559_v32  ;;  %1818 = vmatpush.bf16.msra.mxu2 %v3847_v33  ;;  %v4467_v32 = vld [vmem:[#allocation2 + $0x4e4] sm:$0xf]  ;;  %v3664_v33 = vld [vmem:[#allocation2 + $0x504] sm:$0xf0]  ;;  %v3091_v35 = vor.u32 %v4323_v27, %v3088_v28  ;;  %v3778_v28 = vld [vmem:[#allocation2 + $0x5c0] sm:$0xf] }
 0x20b   :  { %v4427_v27 = vld [vmem:[#allocation2 + $0x3a0] sm:$0xf0] }
 0x20d   :  { %1780 = vmatpush.bf16.msrb.mxu3 %v3807_v41  ;;  %1793 = vmatpush.bf16.msra.mxu0 %v3235_v42  ;;  %v3667_v41 = vor.u32 %v4467_v32, %v3664_v33  ;;  %v3052_v42 = vld [vmem:[#allocation2 + $0x3c] sm:$0xf0]  ;;  %v3166_v33 = vld [vmem:[#allocation2 + $0xf8] sm:$0xf] }
 0x20e   :  { %1806 = vmatpush.bf16.msra.mxu1 %v3523_v46  ;;  %1819 = vmatpush.bf16.msra.mxu2 %v3811_v47  ;;  %v4458_v46 = vld [vmem:[#allocation2 + $0x49c] sm:$0xf]  ;;  %v3628_v47 = vld [vmem:[#allocation2 + $0x4bc] sm:$0xf0]  ;;  %v3055_v52 = vor.u32 %v4314_v38, %v3052_v42  ;;  %v3742_v42 = vld [vmem:[#allocation2 + $0x578] sm:$0xf] }
 0x20f   :  { %v3631_v57 = vor.u32 %v4458_v46, %v3628_v47  ;;  %v4418_v38 = vld [vmem:[#allocation2 + $0x358] sm:$0xf0]  ;;  %v3167_v47 = vor.u32 %v4346_v23, %v3166_v33 }
 0x211   :  { %1781 = vmatpush.bf16.msrb.mxu3 %v3771_v20  ;;  %1794 = vmatpush.bf16.msra.mxu0 %v3199_v55  ;;  %v3886_v20 = vld [vmem:[#allocation2 + $0x698] sm:$0xf]  ;;  %v4526_v55 = vld [vmem:[#allocation2 + $0x6b8] sm:$0xf0] }
 0x212   :  { %1807 = vmatpush.bf16.msra.mxu1 %v3487_v59  ;;  %1820 = vmatpush.bf16.msra.mxu2 %v3775_v60  ;;  %v3311_v59 = vor.u32 %v4382_v49, %v3310_v48  ;;  %v3599_v60 = vor.u32 %v4454_v19, %v3598_v50  ;;  %v3887_v62 = vor.u32 %v4526_v55, %v3886_v20  ;;  %v3130_v50 = vld [vmem:[#allocation2 + $0xb0] sm:$0xf]  ;;  %v4409_v20 = vld [vmem:[#allocation2 + $0x310] sm:$0xf0] }
 0x213   :  { %v3455_v48 = vor.u32 %v4418_v38, %v3454_v37  ;;  %v3743_v19 = vor.u32 %v4490_v43, %v3742_v42  ;;  %v3706_v55 = vld [vmem:[#allocation2 + $0x530] sm:$0xf] }
 0x215   :  { %1782 = vmatpush.bf16.msrb.mxu3 %v3735_v3  ;;  %1795 = vmatpush.bf16.msra.mxu0 %v3163_v10  ;;  %v4517_v3 = vld [vmem:[#allocation2 + $0x670] sm:$0xf0]  ;;  %v3275_v10 = vor.u32 %v4373_v63, %v3274_v61  ;;  %v4328_v63 = vld [vmem:[#allocation2 + $0x88] sm:$0xf0] }
 0x216   :  { %1808 = vmatpush.bf16.msra.mxu1 %v3451_v6  ;;  %1821 = vmatpush.bf16.msra.mxu2 %v3739_v7  ;;  %v3851_v6 = vor.u32 %v4517_v3, %v3850_v2  ;;  %v4364_v7 = vld [vmem:[#allocation2 + $0x1a8] sm:$0xf0]  ;;  %v3670_v3 = vld [vmem:[#allocation2 + $0x4e8] sm:$0xf] }
 0x217   :  { %v3239_v16 = vor.u32 %v4364_v7, %v3238_v5 }
 0x219   :  { %1783 = vmatpush.bf16.msrb.mxu3 %v3699_v18  ;;  %1796 = vmatpush.bf16.msra.mxu0 %v3127_v21  ;;  %v3527_v18 = vor.u32 %v4436_v9, %v3526_v8  ;;  %v3058_v8 = vld [vmem:[#allocation2 + $0x20] sm:$0xf] }
 0x21a   :  { %1809 = vmatpush.bf16.msra.mxu1 %v3415_v25  ;;  %1822 = vmatpush.bf16.msra.mxu2 %v3703_v26  ;;  %v4355_v25 = vld [vmem:[#allocation2 + $0x160] sm:$0xf0]  ;;  %v3490_v26 = vld [vmem:[#allocation2 + $0x380] sm:$0xf] }
 0x21b   :  { %v3203_v30 = vor.u32 %v4355_v25, %v3202_v22  ;;  %v3491_v32 = vor.u32 %v4427_v27, %v3490_v26 }
 0x21d   :  { %1784 = vmatpush.bf16.msrb.mxu3 %v3663_v34  ;;  %1797 = vmatpush.bf16.msra.mxu0 %v3091_v35  ;;  %v3779_v34 = vor.u32 %v4499_v29, %v3778_v28 }
 0x21e   :  { %1810 = vmatpush.bf16.msra.mxu1 %v3379_v39  ;;  %1823 = vmatpush.bf16.msra.mxu2 %v3667_v41 }
 0x220   :  { %v1540_v14 = vpop.f32.mrf.mxu0 }
 0x221   :  { %1785 = vmatpush.bf16.msrb.mxu3 %v3627_v51  ;;  %1798 = vmatpush.bf16.msra.mxu0 %v3055_v52  ;;  %v1553_v21 = vpop.f32.mrf.mxu1  ;;  %v4337_v51 = vld [vmem:[#allocation2 + $0xd0] sm:$0xf0]  ;;  %v3418_v52 = vld [vmem:[#allocation2 + $0x2f0] sm:$0xf] }
 0x222   :  { %1811 = vmatpush.bf16.msra.mxu1 %v3343_v56  ;;  %1824 = vmatpush.bf16.msra.mxu2 %v3631_v57  ;;  %v4481_v56 = vld [vmem:[#allocation2 + $0x550] sm:$0xf0]  ;;  %v3131_v57 = vor.u32 %v4337_v51, %v3130_v50 }
 0x223   :  { %v3707_v61 = vor.u32 %v4481_v56, %v3706_v55 }
 0x224   :  { %1786 = vmatmul.bf16.vlgmr.msrb.gmra.mxu3 %v4829_v45  ;;  %1799 = vmatmul.bf16.vlgmr.msra.gmra.mxu0 %v4825_v53 }
 0x225   :  { %1830 = vmatpush.bf16.msra.mxu3 %v3311_v59  ;;  %1843 = vmatpush.bf16.msrb.mxu0 %v3599_v60  ;;  %v3419_v59 = vor.u32 %v4409_v20, %v3418_v52  ;;  %v3094_v60 = vld [vmem:[#allocation2 + $0x68] sm:$0xf] }
 0x226   :  { %1856 = vmatpush.bf16.msrb.mxu1 %v3887_v62  ;;  %1825 = vmatmul.bf16.vlgmr.msra.gmra.mxu2 %v4829_v45  ;;  %v1527_v35 = vpop.f32.mrf.mxu3  ;;  %v3095_v5 = vor.u32 %v4328_v63, %v3094_v60 }
 0x227   :  { %1812 = vmatmul.bf16.vlgmr.msra.gmra.mxu1 %v4827_v31  ;;  %v1541_v39 = vadd.f32 %v1540_v14, %v1527_v35  ;;  %v1566_v41 = vpop.f32.mrf.mxu2  ;;  %v4391_v14 = vld [vmem:[#allocation2 + $0x280] sm:$0xf0] }
 0x228   :  { %v1542_v44 = vpop.f32.mrf.mxu0  ;;  %v3347_v22 = vor.u32 %v4391_v14, %v3346_v13 }
 0x229   :  { %1831 = vmatpush.bf16.msra.mxu3 %v3275_v10  ;;  %1844 = vmatpush.bf16.msrb.mxu0 %v3563_v4  ;;  %v4855_v46 = vadd.f32 %v1553_v21, %v1541_v39  ;;  %v1555_v49 = vpop.f32.mrf.mxu1  ;;  %v4472_v10 = vld [vmem:[#allocation2 + $0x508] sm:$0xf0]  ;;  %v3059_v21 = vor.u32 %v4319_v11, %v3058_v8 }
 0x22a   :  { %1857 = vmatpush.bf16.msrb.mxu1 %v3851_v6  ;;  %v3383_v6 = vor.u32 %v4400_v54, %v3382_v1  ;;  %v3671_v9 = vor.u32 %v4472_v10, %v3670_v3 }
 0x22d   :  { %1832 = vmatpush.bf16.msra.mxu3 %v3239_v16  ;;  %1845 = vmatpush.bf16.msrb.mxu0 %v3527_v18  ;;  %v3634_v16 = vld [vmem:[#allocation2 + $0x4a0] sm:$0xf]  ;;  %v4463_v18 = vld [vmem:[#allocation2 + $0x4c0] sm:$0xf0] }
 0x22e   :  { %1858 = vmatpush.bf16.msrb.mxu1 %v3815_v24  ;;  %v1529_v62 = vpop.f32.mrf.mxu3  ;;  %v3635_v24 = vor.u32 %v4463_v18, %v3634_v16  ;;  %v4867_v18 = vld [vmem:[%s5007_s3 + $0x8] sm:$0xff] }
 0x22f   :  { %v1568_v2 = vpop.f32.mrf.mxu2  ;;  %1878 = vperm.xlu2 %4645, %v4867_v18  }
 0x230   :  { %v1592_v4 = vpop.f32.mrf.mxu0 }
 0x231   :  { %1833 = vmatpush.bf16.msra.mxu3 %v3203_v30  ;;  %1846 = vmatpush.bf16.msrb.mxu0 %v3491_v32  ;;  %v1605_v7 = vpop.f32.mrf.mxu1 }
 0x232   :  { %1859 = vmatpush.bf16.msrb.mxu1 %v3779_v34 }
 0x235   :  { %1834 = vmatpush.bf16.msra.mxu3 %v3167_v47  ;;  %1847 = vmatpush.bf16.msrb.mxu0 %v3455_v48 }
 0x236   :  { %1860 = vmatpush.bf16.msrb.mxu1 %v3743_v19  ;;  %v1579_v25 = vpop.f32.mrf.mxu3 }
 0x237   :  { %v1580_v26 = vadd.f32 %v1579_v25, %v1566_v41  ;;  %v1618_v27 = vpop.f32.mrf.mxu2  ;;  %4647 = vset.pattern.permute.xlu2 %v4694_v40 }
 0x238   :  { %v1619_v28 = vadd.f32 %v1618_v27, %v1605_v7  ;;  %v1594_v29 = vpop.f32.mrf.mxu0 }
 0x239   :  { %1835 = vmatpush.bf16.msra.mxu3 %v3131_v57  ;;  %1848 = vmatpush.bf16.msrb.mxu0 %v3419_v59  ;;  %v4857_v30 = vadd.f32 %v1592_v4, %v1580_v26  ;;  %v1607_v32 = vpop.f32.mrf.mxu1 }
 0x23a   :  { %1861 = vmatpush.bf16.msrb.mxu1 %v3707_v61 }
 0x23b   :  { %v1870_v33 = vpack.c.bf16 %v4857_v30, %v4855_v46 }
 0x23d   :  { %1836 = vmatpush.bf16.msra.mxu3 %v3095_v5  ;;  %1849 = vmatpush.bf16.msrb.mxu0 %v3383_v6 }
 0x23e   :  { %1862 = vmatpush.bf16.msrb.mxu1 %v3671_v9  ;;  %v1581_v34 = vpop.f32.mrf.mxu3 }
 0x23f   :  { %v1620_v35 = vpop.f32.mrf.mxu2 }
 0x241   :  { %1837 = vmatpush.bf16.msra.mxu3 %v3059_v21  ;;  %1850 = vmatpush.bf16.msrb.mxu0 %v3347_v22  ;;  %v1644_v23 = vpop.f32.mrf.mxu0 }
 0x242   :  { %1863 = vmatpush.bf16.msrb.mxu1 %v3635_v24 }
 0x244   :  { %1838 = vmatmul.bf16.vlgmr.msra.gmra.mxu3 %v4825_v53  ;;  %1851 = vmatmul.bf16.vlgmr.msrb.gmra.mxu0 %v4827_v31  ;;  %v1657_v37 = vpop.f32.mrf.mxu1 }
 0x245   :  { %1864 = vmatmul.bf16.vlgmr.msrb.gmra.mxu1 %v4829_v45  ;;  %v1658_v38 = vadd.f32 %v1657_v37, %v1644_v23 }
 0x247   :  { %v1631_v39 = vpop.f32.mrf.mxu3 }
 0x248   :  { %v1632_v41 = vadd.f32 %v1631_v39, %v1619_v28 }
 0x249   :  { %v1646_v44 = vpop.f32.mrf.mxu0 }
 0x24a   :  { %v1670_v42 = vpop.f32.mrf.mxu2 }
 0x24b   :  { %v1671_v43 = vadd.f32 %v1670_v42, %v1658_v38  ;;  %v1869_v38 = vld [vmem:[%s5006_s2 + $0x4] sm:$0xf] }
 0x24c   :  { %v1659_v47 = vpop.f32.mrf.mxu1 }
 0x24d   :  { %v1871_v48 = vpack.c.bf16 %v1671_v43, %v1632_v41  ;;  %v4594_v47 = vld [vmem:[#allocation2 + $0x8d8] sm:$0xf0] }
 0x24f   :  { %v1633_v49 = vpop.f32.mrf.mxu3 }
 0x252   :  { %v1672_v50 = vpop.f32.mrf.mxu2 }
 0x261   :  { %v1696_v19 = vpop.f32.mrf.mxu0 }
 0x264   :  { %v1709_v53 = vpop.f32.mrf.mxu1 }
 0x267   :  { %v1683_v51 = vpop.f32.mrf.mxu3 }
 0x268   :  { %v1697_v31 = vadd.f32 %v1696_v19, %v1683_v51  ;;  %v4585_v19 = vld [vmem:[#allocation2 + $0x890] sm:$0xf0]  ;;  %v4071_v51 = vld [vmem:[#allocation2 + $0x828] sm:$0xf] }
 0x269   :  { %v1698_v45 = vpop.f32.mrf.mxu0 }
 0x26a   :  { %v1722_v52 = vpop.f32.mrf.mxu2  ;;  %v1710_v20 = vadd.f32 %v1709_v53, %v1697_v31  ;;  %v4590_v45 = vld [vmem:[#allocation2 + $0x8bc] sm:$0xf] }
 0x26c   :  { %v1711_v55 = vpop.f32.mrf.mxu1 }
 0x26d   :  { %v4151_v55 = vld [vmem:[#allocation2 + $0x8c0] sm:$0xf] }
 0x26f   :  { %v1685_v56 = vpop.f32.mrf.mxu3 }
 0x272   :  { %v1724_v57 = vpop.f32.mrf.mxu2 }
 0x281   :  { %v1748_v59 = vpop.f32.mrf.mxu0 }
 0x284   :  { %v1761_v60 = vpop.f32.mrf.mxu1 }
 0x287   :  { %v1735_v61 = vpop.f32.mrf.mxu3 }
 0x288   :  { %v1736_v62 = vadd.f32 %v1735_v61, %v1722_v52  ;;  %v4595_v61 = vld [vmem:[#allocation2 + $0x8e0] sm:$0xf0] }
 0x289   :  { %v1750_v1 = vpop.f32.mrf.mxu0  ;;  %v1879_v39 = vpop.permute.xlu2 %1878 }
 0x28a   :  { %v1774_v63 = vpop.f32.mrf.mxu2  ;;  %v1749_v54 = vadd.f32 %v1748_v59, %v1736_v62  ;;  %v4576_v59 = vld [vmem:[#allocation2 + $0x848] sm:$0xf0]  ;;  %v4152_v62 = vor.u32 %v4595_v61, %v4151_v55  ;;  %v4153_v1 = vld [vmem:[#allocation2 + $0x8e4] sm:$0xf0] }
 0x28b   :  { %v1775_v26 = vadd.f32 %v1774_v63, %v1761_v60  ;;  %v4591_v63 = vld [vmem:[#allocation2 + $0x8c4] sm:$0xf]  ;;  %v4009_v55 = vld [vmem:[#allocation2 + $0x7c4] sm:$0xf0] }
 0x28c   :  { %v1763_v2 = vpop.f32.mrf.mxu1  ;;  %v1872_v3 = vpack.c.bf16 %v1749_v54, %v1710_v20  ;;  %v4145_v20 = vld [vmem:[#allocation2 + $0x8dc] sm:$0xf0]  ;;  %2416 = vmatpush.bf16.msra.mxu0 %v4152_v62  ;;  %v3927_v61 = vld [vmem:[#allocation2 + $0x708] sm:$0xf] }
 0x28d   :  { %v4148_v60 = vor.u32 %v4590_v45, %v4145_v20  ;;  %v4035_v2 = vld [vmem:[#allocation2 + $0x7e0] sm:$0xf]  ;;  %v4559_v45 = vld [vmem:[#allocation2 + $0x7c0] sm:$0xf0] }
 0x28e   :  { %v4555_v20 = vld [vmem:[#allocation2 + $0x7a4] sm:$0xf] }
 0x28f   :  { %v1737_v10 = vpop.f32.mrf.mxu3  ;;  %2403 = vmatpush.bf16.msrb.mxu3 %v4148_v60 }
 0x290   :  { %v4581_v10 = vld [vmem:[#allocation2 + $0x874] sm:$0xf] }
 0x292   :  { %v1776_v4 = vpop.f32.mrf.mxu2 }
 0x293   :  { %v4109_v4 = vld [vmem:[#allocation2 + $0x894] sm:$0xf0] }
 0x2a1   :  { %v1800_v5 = vpop.f32.mrf.mxu0 }
 0x2a4   :  { %v1813_v6 = vpop.f32.mrf.mxu1 }
 0x2a5   :  { %v1814_v27 = vadd.f32 %v1813_v6, %v1800_v5  ;;  %v4072_v5 = vor.u32 %v4576_v59, %v4071_v51  ;;  %v4112_v6 = vor.u32 %v4581_v10, %v4109_v4  ;;  %v4550_v10 = vld [vmem:[#allocation2 + $0x778] sm:$0xf0] }
 0x2a7   :  { %v1787_v7 = vpop.f32.mrf.mxu3  ;;  %2404 = vmatpush.bf16.msrb.mxu3 %v4112_v6  ;;  %v3973_v6 = vld [vmem:[#allocation2 + $0x77c] sm:$0xf0] }
 0x2a8   :  { %v1788_v32 = vadd.f32 %v1787_v7, %v1775_v26  ;;  %v4115_v7 = vld [vmem:[#allocation2 + $0x878] sm:$0xf] }
 0x2a9   :  { %v1826_v8 = vpop.f32.mrf.mxu2  ;;  %v1802_v9 = vpop.f32.mrf.mxu0 }
 0x2aa   :  { %v1827_v34 = vadd.f32 %v1826_v8, %v1814_v27  ;;  %v4586_v8 = vld [vmem:[#allocation2 + $0x898] sm:$0xf0]  ;;  %v4079_v27 = vld [vmem:[#allocation2 + $0x830] sm:$0xf] }
 0x2ab   :  { %v4582_v9 = vld [vmem:[#allocation2 + $0x87c] sm:$0xf] }
 0x2ac   :  { %v1815_v11 = vpop.f32.mrf.mxu1  ;;  %v1873_v37 = vpack.c.bf16 %v1827_v34, %v1788_v32  ;;  %v4573_v32 = vld [vmem:[#allocation2 + $0x834] sm:$0xf]  ;;  %v4081_v34 = vld [vmem:[#allocation2 + $0x854] sm:$0xf0] }
 0x2af   :  { %v1789_v13 = vpop.f32.mrf.mxu3 }
 0x2b0   :  { %v4567_v13 = vld [vmem:[#allocation2 + $0x800] sm:$0xf0] }
 0x2b1   :  { %v1828_v14 = vpop.f32.mrf.mxu2 }
 0x2b2   :  { %v4116_v14 = vor.u32 %v4586_v8, %v4115_v7  ;;  %v3891_v7 = vld [vmem:[#allocation2 + $0x6c0] sm:$0xf] }
 0x2b4   :  { %2417 = vmatpush.bf16.msra.mxu0 %v4116_v14 }
 0x2c1   :  { %v1852_v16 = vpop.f32.mrf.mxu0 }
 0x2c2   :  { %v1865_v21 = vpop.f32.mrf.mxu1 }
 0x2c7   :  { %v1839_v22 = vpop.f32.mrf.mxu3 }
 0x2c8   :  { %v1853_v24 = vadd.f32 %v1852_v16, %v1839_v22  ;;  %v4117_v16 = vld [vmem:[#allocation2 + $0x89c] sm:$0xf0]  ;;  %v4572_v22 = vld [vmem:[#allocation2 + $0x82c] sm:$0xf] }
 0x2c9   :  { %v1854_v25 = vpop.f32.mrf.mxu0 }
 0x2ca   :  { %v1866_v28 = vadd.f32 %v1865_v21, %v1853_v24  ;;  %v1867_v29 = vpop.f32.mrf.mxu1  ;;  %v4120_v21 = vor.u32 %v4582_v9, %v4117_v16  ;;  %v4073_v24 = vld [vmem:[#allocation2 + $0x84c] sm:$0xf0]  ;;  %v4536_v16 = vld [vmem:[#allocation2 + $0x70c] sm:$0xf] }
 0x2cb   :  { %v4076_v26 = vor.u32 %v4572_v22, %v4073_v24  ;;  %v4577_v29 = vld [vmem:[#allocation2 + $0x850] sm:$0xf0]  ;;  %v4531_v22 = vld [vmem:[#allocation2 + $0x6e0] sm:$0xf0] }
 0x2cc   :  { %v1874_v35 = vpack.c.bf16 0.0, %v1866_v28  ;;  %v4036_v28 = vor.u32 %v4567_v13, %v4035_v2  ;;  %v4012_v2 = vor.u32 %v4555_v20, %v4009_v55  ;;  %v4528_v20 = vld [vmem:[#allocation2 + $0x6cc] sm:$0xf]  ;;  %v3901_v55 = vld [vmem:[#allocation2 + $0x6ec] sm:$0xf0] }
 0x2cd   :  { %2405 = vmatpush.bf16.msrb.mxu3 %v4076_v26  ;;  %v3935_v26 = vld [vmem:[#allocation2 + $0x710] sm:$0xf] }
 0x2ce   :  { %1888 = vmatpush.bf16.msrb.mxu2 %v1874_v35  ;;  %v3999_v35 = vld [vmem:[#allocation2 + $0x798] sm:$0xf] }
 0x2cf   :  { %v1841_v23 = vpop.f32.mrf.mxu3 }
 0x2d0   :  { %v4558_v23 = vld [vmem:[#allocation2 + $0x7b8] sm:$0xf0] }
 0x2d2   :  { %1889 = vmatpush.bf16.msrb.mxu2 %v1873_v37  ;;  %v4080_v37 = vor.u32 %v4577_v29, %v4079_v27  ;;  %v4541_v27 = vld [vmem:[#allocation2 + $0x730] sm:$0xf0]  ;;  %v4159_v29 = vld [vmem:[#allocation2 + $0x8c8] sm:$0xf] }
 0x2d4   :  { %2418 = vmatpush.bf16.msra.mxu0 %v4080_v37  ;;  %v3937_v37 = vld [vmem:[#allocation2 + $0x734] sm:$0xf0] }
 0x2d6   :  { %1890 = vmatpush.bf16.msrb.mxu2 %v1872_v3  ;;  %v4156_v3 = vor.u32 %v4591_v63, %v4153_v1  ;;  %v4545_v63 = vld [vmem:[#allocation2 + $0x754] sm:$0xf]  ;;  %v3965_v1 = vld [vmem:[#allocation2 + $0x774] sm:$0xf0] }
 0x2d7   :  { %v3968_v8 = vor.u32 %v4545_v63, %v3965_v1  ;;  %v4583_v1 = vld [vmem:[#allocation2 + $0x884] sm:$0xf] }
 0x2d8   :  { %2429 = vmatpush.bf16.msra.mxu1 %v4156_v3  ;;  %v3971_v3 = vld [vmem:[#allocation2 + $0x758] sm:$0xf] }
 0x2d9   :  { %v3972_v14 = vor.u32 %v4550_v10, %v3971_v3  ;;  %v3904_v3 = vor.u32 %v4528_v20, %v3901_v55  ;;  %v4131_v10 = vld [vmem:[#allocation2 + $0x888] sm:$0xf]  ;;  %v4533_v20 = vld [vmem:[#allocation2 + $0x6f0] sm:$0xf0] }
 0x2da   :  { %1891 = vmatpush.bf16.msrb.mxu2 %v1871_v48  ;;  %v4107_v48 = vld [vmem:[#allocation2 + $0x870] sm:$0xf] }
 0x2db   :  { %v4108_v52 = vor.u32 %v4585_v19, %v4107_v48  ;;  %v3963_v48 = vld [vmem:[#allocation2 + $0x750] sm:$0xf]  ;;  %v4554_v19 = vld [vmem:[#allocation2 + $0x79c] sm:$0xf] }
 0x2dc   :  { %2430 = vmatpush.bf16.msra.mxu1 %v4120_v21  ;;  %v3929_v21 = vld [vmem:[#allocation2 + $0x72c] sm:$0xf0] }
 0x2de   :  { %1892 = vmatpush.bf16.msrb.mxu2 %v1870_v33  ;;  %v4143_v33 = vld [vmem:[#allocation2 + $0x8b8] sm:$0xf] }
 0x2df   :  { %v4144_v50 = vor.u32 %v4594_v47, %v4143_v33  ;;  %v4045_v33 = vld [vmem:[#allocation2 + $0x80c] sm:$0xf0]  ;;  %v4000_v47 = vor.u32 %v4558_v23, %v3999_v35  ;;  %v3932_v35 = vor.u32 %v4536_v16, %v3929_v21  ;;  %v4537_v23 = vld [vmem:[#allocation2 + $0x714] sm:$0xf]  ;;  %v4574_v16 = vld [vmem:[#allocation2 + $0x83c] sm:$0xf] }
 0x2e0   :  { %v4089_v21 = vld [vmem:[#allocation2 + $0x85c] sm:$0xf0] }
 0x2e1   :  { %3888 = vmatmul.msk.bf16.vlgmr.msrb.gmra.mxu2 %vm1881_vm5, %v1869_v38  ;;  %v4084_v38 = vor.u32 %v4573_v32, %v4081_v34  ;;  %v4596_v32 = vld [vmem:[#allocation2 + $0x8e8] sm:$0xf0] }
 0x2e2   :  { %2390 = vmatpush.bf16.msra.mxu2 %v4144_v50 }
 0x2e3   :  { %2431 = vmatpush.bf16.msra.mxu1 %v4084_v38 }
 0x2e6   :  { %2391 = vmatpush.bf16.msra.mxu2 %v4108_v52  ;;  %v4007_v52 = vld [vmem:[#allocation2 + $0x7a0] sm:$0xf] }
 0x2e7   :  { %v4008_v62 = vor.u32 %v4559_v45, %v4007_v52 }
 0x2ea   :  { %2392 = vmatpush.bf16.msra.mxu2 %v4072_v5  ;;  %v4546_v5 = vld [vmem:[#allocation2 + $0x75c] sm:$0xf] }
 0x2eb   :  { %v3976_v24 = vor.u32 %v4546_v5, %v3973_v6 }
 0x2ee   :  { %2393 = vmatpush.bf16.msra.mxu2 %v4036_v28 }
 0x2f2   :  { %2394 = vmatpush.bf16.msra.mxu2 %v4000_v47  ;;  %v4592_v47 = vld [vmem:[#allocation2 + $0x8cc] sm:$0xf] }
 0x364   :  { %v1894_v41 = vpop.f32.mrf.mxu2 }
 0x365   :  { %v1895_v42 = vadd.f32 %v1894_v41, %v1879_v39  ;;  %v4563_v39 = vld [vmem:[#allocation2 + $0x7e4] sm:$0xf]  ;;  %v4037_v41 = vld [vmem:[#allocation2 + $0x804] sm:$0xf0] }
 0x367   :  { %v1898_v43 = vmax.f32 %v1895_v42, 0.0  ;;  %v4043_v42 = vld [vmem:[#allocation2 + $0x7e8] sm:$0xf] }
 0x369   :  { %v4879_v44 = vsel %vm1899_vm6, %v1898_v43, 0.0  ;;  %v4040_v43 = vor.u32 %v4563_v39, %v4037_v41  ;;  %v3892_v39 = vor.u32 %v4531_v22, %v3891_v7  ;;  %v4123_v41 = vld [vmem:[#allocation2 + $0x880] sm:$0xf]  ;;  %v4584_v7 = vld [vmem:[#allocation2 + $0x88c] sm:$0xf]  ;;  %vm2989_vm6 = vcmask 23552  }
 0x36a   :  { %1902 = vadd.xlane.f32.xlu2 %v4879_v44  ;;  %v1901_v46 = vmul.f32 %v4879_v44, %v4879_v44  ;;  %v4569_v22 = vld [vmem:[#allocation2 + $0x810] sm:$0xf0] }
 0x36b   :  { %2406 = vmatpush.bf16.msrb.mxu3 %v4040_v43  ;;  %v3893_v43 = vld [vmem:[#allocation2 + $0x6e4] sm:$0xf0] }
 0x36c   :  { %v1896_v30 = vpop.f32.mrf.mxu2  ;;  %1904 = vadd.xlane.f32.xlu1 %v1901_v46  ;;  %v4568_v46 = vld [vmem:[#allocation2 + $0x808] sm:$0xf0] }
 0x36d   :  { %v4564_v30 = vld [vmem:[#allocation2 + $0x7ec] sm:$0xf]  ;;  %v4044_v50 = vor.u32 %v4568_v46, %v4043_v42  ;;  %v3936_v42 = vor.u32 %v4541_v27, %v3935_v26  ;;  %v3899_v46 = vld [vmem:[#allocation2 + $0x6c8] sm:$0xf]  ;;  %v4579_v26 = vld [vmem:[#allocation2 + $0x860] sm:$0xf0] }
 0x36e   :  { %v4048_v51 = vor.u32 %v4564_v30, %v4045_v33  ;;  %v4160_v30 = vor.u32 %v4596_v32, %v4159_v29  ;;  %v4532_v33 = vld [vmem:[#allocation2 + $0x6e8] sm:$0xf0]  ;;  %v4575_v29 = vld [vmem:[#allocation2 + $0x844] sm:$0xf]  ;;  %v4097_v32 = vld [vmem:[#allocation2 + $0x864] sm:$0xf0] }
 0x36f   :  { %2419 = vmatpush.bf16.msra.mxu0 %v4044_v50  ;;  %v4587_v50 = vld [vmem:[#allocation2 + $0x8a0] sm:$0xf0] }
 0x370   :  { %2432 = vmatpush.bf16.msra.mxu1 %v4048_v51  ;;  %v4167_v51 = vld [vmem:[#allocation2 + $0x8d0] sm:$0xf] }
 0x373   :  { %2420 = vmatpush.bf16.msra.mxu0 %v4008_v62  ;;  %v4124_v62 = vor.u32 %v4587_v50, %v4123_v41  ;;  %v3979_v41 = vld [vmem:[#allocation2 + $0x760] sm:$0xf]  ;;  %v4570_v50 = vld [vmem:[#allocation2 + $0x818] sm:$0xf0] }
 0x374   :  { %2433 = vmatpush.bf16.msra.mxu1 %v4012_v2  ;;  %v4578_v2 = vld [vmem:[#allocation2 + $0x858] sm:$0xf0] }
 0x377   :  { %2421 = vmatpush.bf16.msra.mxu0 %v3972_v14 }
 0x378   :  { %2434 = vmatpush.bf16.msra.mxu1 %v3976_v24  ;;  %v4095_v24 = vld [vmem:[#allocation2 + $0x840] sm:$0xf] }
 0x37b   :  { %2422 = vmatpush.bf16.msra.mxu0 %v3936_v42  ;;  %v4551_v42 = vld [vmem:[#allocation2 + $0x780] sm:$0xf0] }
 0x382   :  { %1937 = vperm.xlu2 %4647, %v4867_v18  }
 0x38a   :  { %4652 = vset.pattern.permute.xlu2 %v4693_v36 }
 0x3dd   :  { %v1903_v49 = vpop.xlane.xlu2 %1902 }
 0x3de   :  { %v4886_v53 = vmul.f32 0.013888889, %v1903_v49  ;;  %v4549_v49 = vld [vmem:[#allocation2 + $0x770] sm:$0xf0] }
 0x3df   :  { %v1905_v31 = vpop.xlane.xlu1 %1904  ;;  %v3964_v60 = vor.u32 %v4549_v49, %v3963_v48  ;;  %v4161_v48 = vld [vmem:[#allocation2 + $0x8ec] sm:$0xf0] }
 0x3e0   :  { %v1908_v56 = vmul.f32 %v4886_v53, %v4886_v53  ;;  %v1907_v57 = vmul.f32 0.013888889, %v1905_v31  ;;  %v4001_v31 = vld [vmem:[#allocation2 + $0x7bc] sm:$0xf0] }
 0x3e1   :  { %2395 = vmatpush.bf16.msra.mxu2 %v3964_v60  ;;  %v4593_v60 = vld [vmem:[#allocation2 + $0x8d4] sm:$0xf] }
 0x3e2   :  { %v1909_v54 = vsub.f32 %v1907_v57, %v1908_v56  ;;  %v4004_v57 = vor.u32 %v4554_v19, %v4001_v31  ;;  %v3940_v19 = vor.u32 %v4537_v23, %v3937_v37  ;;  %v4597_v31 = vld [vmem:[#allocation2 + $0x8f0] sm:$0xf0]  ;;  %v4015_v23 = vld [vmem:[#allocation2 + $0x7a8] sm:$0xf]  ;;  %v4560_v37 = vld [vmem:[#allocation2 + $0x7c8] sm:$0xf0] }
 0x3e3   :  { %v4168_v63 = vor.u32 %v4597_v31, %v4167_v51  ;;  %v4061_v51 = vld [vmem:[#allocation2 + $0x81c] sm:$0xf0] }
 0x3e4   :  { %v4890_v11 = vmax.f32 %v1909_v54, 0.0  ;;  %v4540_v54 = vld [vmem:[#allocation2 + $0x728] sm:$0xf0]  ;;  %2407 = vmatpush.bf16.msrb.mxu3 %v4004_v57  ;;  %v3900_v57 = vor.u32 %v4532_v33, %v3899_v46  ;;  %2435 = vmatpush.bf16.msra.mxu1 %v3940_v19  ;;  %v4542_v46 = vld [vmem:[#allocation2 + $0x738] sm:$0xf0] }
 0x3e5   :  { %v3928_v13 = vor.u32 %v4540_v54, %v3927_v61  ;;  %v4169_v61 = vld [vmem:[#allocation2 + $0x8f4] sm:$0xf0]  ;;  %v4125_v54 = vld [vmem:[#allocation2 + $0x8a4] sm:$0xf0]  ;;  %v4565_v33 = vld [vmem:[#allocation2 + $0x7f4] sm:$0xf] }
 0x3e6   :  { %v4893_v25 = vadd.f32 1e-05, %v4890_v11  ;;  %v4172_v5 = vor.u32 %v4593_v60, %v4169_v61  ;;  %2423 = vmatpush.bf16.msra.mxu0 %v3900_v57  ;;  %v4128_v6 = vor.u32 %v4583_v1, %v4125_v54  ;;  %v4566_v19 = vld [vmem:[#allocation2 + $0x7fc] sm:$0xf]  ;;  %v4556_v57 = vld [vmem:[#allocation2 + $0x7ac] sm:$0xf] }
 0x3e7   :  { %2396 = vmatpush.bf16.msra.mxu2 %v3928_v13  ;;  %v4051_v13 = vld [vmem:[#allocation2 + $0x7f0] sm:$0xf] }
 0x3e8   :  { %4657 = vrsqrt.f32 %v4893_v25  ;;  %vm1924_vm8 = vweird.f32 %v4893_v25  ;;  %2408 = vmatpush.bf16.msrb.mxu3 %v3968_v8  ;;  %v4133_v8 = vld [vmem:[#allocation2 + $0x8ac] sm:$0xf0]  ;;  %2436 = vmatpush.bf16.msra.mxu1 %v3904_v3  ;;  %v4052_v34 = vor.u32 %v4569_v22, %v4051_v13  ;;  %v3981_v3 = vld [vmem:[#allocation2 + $0x784] sm:$0xf0]  ;;  %v4538_v13 = vld [vmem:[#allocation2 + $0x71c] sm:$0xf] }
 0x3e9   :  { %v4136_v27 = vor.u32 %v4584_v7, %v4133_v8  ;;  %v4023_v60 = vld [vmem:[#allocation2 + $0x7b0] sm:$0xf]  ;;  %v4543_v22 = vld [vmem:[#allocation2 + $0x740] sm:$0xf0] }
 0x3ea   :  { %2468 = vmatpush.bf16.msrb.mxu0 %v4168_v63  ;;  %v4025_v63 = vld [vmem:[#allocation2 + $0x7d4] sm:$0xf0]  ;;  %v3989_v7 = vld [vmem:[#allocation2 + $0x78c] sm:$0xf0] }
 0x3eb   :  { %2397 = vmatpush.bf16.msra.mxu2 %v3892_v39  ;;  %v4016_v39 = vor.u32 %v4560_v37, %v4015_v23  ;;  %v4534_v23 = vld [vmem:[#allocation2 + $0x6f8] sm:$0xf0] }
 0x3ec   :  { %2409 = vmatpush.bf16.msrb.mxu3 %v3932_v35  ;;  %2481 = vmatpush.bf16.msrb.mxu1 %v4172_v5  ;;  %v4096_v35 = vor.u32 %v4579_v26, %v4095_v24  ;;  %v4552_v5 = vld [vmem:[#allocation2 + $0x788] sm:$0xf0]  ;;  %v4539_v24 = vld [vmem:[#allocation2 + $0x724] sm:$0xf]  ;;  %v3953_v26 = vld [vmem:[#allocation2 + $0x744] sm:$0xf0] }
 0x3ed   :  { %v4530_v37 = vld [vmem:[#allocation2 + $0x6dc] sm:$0xf] }
 0x3ee   :  { %v4896_v56 = vpop.eup %4657 }
 0x3ef   :  { %v1919_v59 = vmul.f32 %v4896_v56, %v4893_v25  ;;  %vm1925_vm7 = vweird.f32 %v4896_v56  ;;  %v4527_v25 = vld [vmem:[#allocation2 + $0x6c4] sm:$0xf]  ;;  %2442 = vmatpush.bf16.msrb.mxu2 %v4160_v30 }
 0x3f0   :  { %vm4905_vm9 = vmor %vm1924_vm8, %vm1925_vm7  ;;  %v3896_v45 = vor.u32 %v4527_v25, %v3893_v43  ;;  %2482 = vmatpush.bf16.msrb.mxu1 %v4136_v27  ;;  %v3980_v25 = vor.u32 %v4551_v42, %v3979_v41  ;;  %v3943_v43 = vld [vmem:[#allocation2 + $0x718] sm:$0xf]  ;;  %v1929_v42 = vsub.f32 %v4879_v44, %v4886_v53  ;;  %vm2991_vm7 = vcmask 31744  }
 0x3f1   :  { %v1920_v4 = vmul.f32 %v4896_v56, %v1919_v59  ;;  %v4164_v59 = vor.u32 %v4592_v47, %v4161_v48  ;;  %v3944_v30 = vor.u32 %v4542_v46, %v3943_v43  ;;  %v4053_v47 = vld [vmem:[#allocation2 + $0x814] sm:$0xf0]  ;;  %v1938_v43 = vpop.permute.xlu2 %1937  ;;  %vm2993_vm8 = vcmask 39936  }
 0x3f2   :  { %2410 = vmatpush.bf16.msrb.mxu3 %v3896_v45  ;;  %v4059_v48 = vld [vmem:[#allocation2 + $0x7f8] sm:$0xf]  ;;  %v3907_v45 = vld [vmem:[#allocation2 + $0x6d0] sm:$0xf] }
 0x3f3   :  { %v1921_v9 = vmul.f32 0.5, %v1920_v4  ;;  %v4588_v4 = vld [vmem:[#allocation2 + $0x8a8] sm:$0xf0]  ;;  %2443 = vmatpush.bf16.msrb.mxu2 %v4124_v62  ;;  %v4060_v31 = vor.u32 %v4570_v50, %v4059_v48  ;;  %v3908_v55 = vor.u32 %v4533_v20, %v3907_v45  ;;  %v4561_v62 = vld [vmem:[#allocation2 + $0x7d0] sm:$0xf0] }
 0x3f4   :  { %v4132_v14 = vor.u32 %v4588_v4, %v4131_v10  ;;  %v4024_v1 = vor.u32 %v4561_v62, %v4023_v60  ;;  %v3987_v10 = vld [vmem:[#allocation2 + $0x768] sm:$0xf]  ;;  %v4139_v50 = vld [vmem:[#allocation2 + $0x890] sm:$0xf]  ;;  %v4067_v45 = vld [vmem:[#allocation2 + $0x800] sm:$0xf] }
 0x3f5   :  { %v1922_v28 = vsub.f32 1.5, %v1921_v9  ;;  %v3988_v8 = vor.u32 %v4552_v5, %v3987_v10  ;;  %v4571_v20 = vld [vmem:[#allocation2 + $0x820] sm:$0xf0]  ;;  %v4553_v62 = vld [vmem:[#allocation2 + $0x790] sm:$0xf0] }
 0x3f6   :  { %2455 = vmatpush.bf16.msra.mxu3 %v4164_v59  ;;  %2469 = vmatpush.bf16.msrb.mxu0 %v4132_v14  ;;  %v4017_v59 = vld [vmem:[#allocation2 + $0x7cc] sm:$0xf0]  ;;  %v3945_v14 = vld [vmem:[#allocation2 + $0x73c] sm:$0xf0] }
 0x3f7   :  { %v1923_v38 = vmul.f32 %v4896_v56, %v1922_v28  ;;  %v4092_v28 = vor.u32 %v4574_v16, %v4089_v21  ;;  %v4020_v61 = vor.u32 %v4556_v57, %v4017_v59  ;;  %v3951_v16 = vld [vmem:[#allocation2 + $0x720] sm:$0xf]  ;;  %v3948_v21 = vor.u32 %v4538_v13, %v3945_v14  ;;  %v4031_v57 = vld [vmem:[#allocation2 + $0x7b8] sm:$0xf]  ;;  %v4562_v59 = vld [vmem:[#allocation2 + $0x7d8] sm:$0xf0] }
 0x3f8   :  { %v3952_v27 = vor.u32 %v4543_v22, %v3951_v16  ;;  %v4032_v60 = vor.u32 %v4562_v59, %v4031_v57 }
 0x3f9   :  { %v1927_v49 = vsel %vm4905_vm9, %v4896_v56, %v1923_v38  ;;  %v4087_v56 = vld [vmem:[#allocation2 + $0x838] sm:$0xf]  ;;  %v4100_v38 = vor.u32 %v4575_v29, %v4097_v32  ;;  %v4529_v29 = vld [vmem:[#allocation2 + $0x6d4] sm:$0xf]  ;;  %vm2995_vm9 = vcmask 48128  }
 0x3fa   :  { %v1928_v52 = vmul.f32 %v1927_v49, %v4867_v18  ;;  %v4088_v9 = vor.u32 %v4578_v2, %v4087_v56  ;;  %2456 = vmatpush.bf16.msra.mxu3 %v4128_v6  ;;  %2470 = vmatpush.bf16.msrb.mxu0 %v4096_v35  ;;  %v4056_v49 = vor.u32 %v4565_v33, %v4053_v47  ;;  %v4557_v56 = vld [vmem:[#allocation2 + $0x7b4] sm:$0xf]  ;;  %v4547_v2 = vld [vmem:[#allocation2 + $0x764] sm:$0xf]  ;;  %v4548_v6 = vld [vmem:[#allocation2 + $0x76c] sm:$0xf] }
 0x3fb   :  { %2483 = vmatpush.bf16.msrb.mxu1 %v4100_v38  ;;  %v4028_v54 = vor.u32 %v4557_v56, %v4025_v63  ;;  %v3984_v4 = vor.u32 %v4547_v2, %v3981_v3  ;;  %v3909_v32 = vld [vmem:[#allocation2 + $0x6f4] sm:$0xf0]  ;;  %v3917_v38 = vld [vmem:[#allocation2 + $0x6fc] sm:$0xf0]  ;;  %v4598_v33 = vld [vmem:[#allocation2 + $0x8f8] sm:$0xf0] }
 0x3fc   :  { %1932 = vperm.xlu0 %4646, %v1928_v52   ;;  %2444 = vmatpush.bf16.msrb.mxu2 %v4088_v9  ;;  %v4064_v52 = vor.u32 %v4566_v19, %v4061_v51  ;;  %v3992_v9 = vor.u32 %v4548_v6, %v3989_v7  ;;  %v3912_v35 = vor.u32 %v4529_v29, %v3909_v32  ;;  %v4589_v19 = vld [vmem:[#allocation2 + $0x8b0] sm:$0xf0]  ;;  %v3959_v63 = vld [vmem:[#allocation2 + $0x728] sm:$0xf]  ;;  %v3923_v2 = vld [vmem:[#allocation2 + $0x6e0] sm:$0xf] }
 0x3fd   :  { %v3920_v41 = vor.u32 %v4530_v37, %v3917_v38  ;;  %v4140_v51 = vor.u32 %v4589_v19, %v4139_v50  ;;  %v4535_v3 = vld [vmem:[#allocation2 + $0x700] sm:$0xf0] }
 0x3fe   :  { %2457 = vmatpush.bf16.msra.mxu3 %v4092_v28  ;;  %2471 = vmatpush.bf16.msrb.mxu0 %v4060_v31  ;;  %v3956_v28 = vor.u32 %v4539_v24, %v3953_v26  ;;  %v4103_v31 = vld [vmem:[#allocation2 + $0x848] sm:$0xf]  ;;  %v3924_v10 = vor.u32 %v4535_v3, %v3923_v2  ;;  %v4294_v3 = vld [vmem:[#allocation2 + $0xb1c] sm:$0xf0] }
 0x3ff   :  { %2484 = vmatpush.bf16.msrb.mxu1 %v4064_v52  ;;  %v4580_v52 = vld [vmem:[#allocation2 + $0x868] sm:$0xf0] }
 0x400   :  { %2445 = vmatpush.bf16.msrb.mxu2 %v4052_v34  ;;  %v3915_v34 = vld [vmem:[#allocation2 + $0x6d8] sm:$0xf]  ;;  %v4104_v44 = vor.u32 %v4580_v52, %v4103_v31  ;;  %v1911_v31 = vmul.f32 0.9, %v4867_v18  ;;  %v1914_v52 = vmul.f32 1.0140845, %v4890_v11 }
 0x402   :  { %2458 = vmatpush.bf16.msra.mxu3 %v4056_v49  ;;  %2472 = vmatpush.bf16.msrb.mxu0 %v4024_v1  ;;  %v4544_v1 = vld [vmem:[#allocation2 + $0x748] sm:$0xf0] }
 0x403   :  { %2485 = vmatpush.bf16.msrb.mxu1 %v4028_v54  ;;  %v3960_v54 = vor.u32 %v4544_v1, %v3959_v63  ;;  %v4629_v63 = vld [vmem:[#allocation2 + $0xb18] sm:$0xf0] }
 0x404   :  { %4653 = vset.pattern.permute.xlu0 %v4694_v40  ;;  %2446 = vmatpush.bf16.msrb.mxu2 %v4016_v39  ;;  %v3916_v39 = vor.u32 %v4534_v23, %v3915_v34  ;;  %v4627_v1 = vld [vmem:[#allocation2 + $0xafc] sm:$0xf] }
 0x406   :  { %2459 = vmatpush.bf16.msra.mxu3 %v4020_v61  ;;  %2473 = vmatpush.bf16.msrb.mxu0 %v3988_v8  ;;  %v3995_v61 = vld [vmem:[#allocation2 + $0x770] sm:$0xf] }
 0x407   :  { %2486 = vmatpush.bf16.msrb.mxu1 %v3992_v9  ;;  %v3996_v56 = vor.u32 %v4553_v62, %v3995_v61 }
 0x408   :  { %2447 = vmatpush.bf16.msrb.mxu2 %v3980_v25 }
 0x40a   :  { %2460 = vmatpush.bf16.msra.mxu3 %v3984_v4  ;;  %2474 = vmatpush.bf16.msrb.mxu0 %v3952_v27 }
 0x40b   :  { %2487 = vmatpush.bf16.msrb.mxu1 %v3956_v28  ;;  %v4920_v28 = vld [vmem:[%s5007_s3 + $0x10] sm:$0xff] }
 0x40c   :  { %2448 = vmatpush.bf16.msrb.mxu2 %v3944_v30  ;;  %v4175_v30 = vld [vmem:[#allocation2 + $0x8d8] sm:$0xf]  ;;  %2516 = vperm.xlu1 %4648, %v4920_v28   ;;  %v4954_v62 = vmul.f32 0.9, %v4920_v28 }
 0x40d   :  { %v4176_v49 = vor.u32 %v4598_v33, %v4175_v30 }
 0x40e   :  { %2461 = vmatpush.bf16.msra.mxu3 %v3948_v21  ;;  %2475 = vmatpush.bf16.msrb.mxu0 %v3916_v39 }
 0x40f   :  { %2488 = vmatpush.bf16.msrb.mxu1 %v3920_v41 }
 0x410   :  { %2449 = vmatpush.bf16.msrb.mxu2 %v3908_v55  ;;  %v4068_v55 = vor.u32 %v4571_v20, %v4067_v45  ;;  %v1915_v45 = vmul.f32 0.1, %v1914_v52 }
 0x412   :  { %2462 = vmatpush.bf16.msra.mxu3 %v3912_v35  ;;  %v1916_v20 = vadd.f32 %v1915_v45, %v1911_v31  ;;  %v4246_v45 = vld [vmem:[#allocation2 + $0xa44] sm:$0xf0] }
 0x414   :  { %4649 = vset.pattern.permute.xlu1 %v4693_v36 }
 0x46e   :  { %v1933_v25 = vpop.permute.xlu0 %1932 }
 0x46f   :  { %v1935_v46 = vmul.f32 %v1933_v25, %v1929_v42  ;;  %v2507_v42 = vld [vmem:[%s5006_s2 + $0x8] sm:$0xf] }
 0x471   :  { %v1940_v47 = vadd.f32 %v1938_v43, %v1935_v46 }
 0x473   :  { %v1941_v48 = vpack.c.bf16 %v1940_v47, %v1940_v47 }
 0x475   :  { %2398 = vmatmul.bf16.vlgmr.msra.gmra.mxu2 %v1941_v48  ;;  %2411 = vmatmul.bf16.vlgmr.msrb.gmra.mxu3 %v1941_v48 }
 0x476   :  { %2424 = vmatmul.bf16.vlgmr.msra.gmra.mxu0 %v1941_v48  ;;  %2437 = vmatmul.bf16.vlgmr.msra.gmra.mxu1 %v1941_v48 }
 0x477   :  { %2494 = vmatpush.bf16.msra.mxu2 %v4176_v49  ;;  %v138_v49 = vmul.f32 1.0029674, %v4786_v12 }
 0x479   :  { %v139_v50 = vmul.f32 0.1, %v138_v49 }
 0x47b   :  { %2495 = vmatpush.bf16.msra.mxu2 %v4140_v51  ;;  %v140_v19 = vadd.f32 %v139_v50, %v4796_v58  ;;  %v1912_v51 = vmul.f32 0.1, %v4886_v53  ;;  %v4270_v50 = vld [vmem:[#allocation2 + $0xa94] sm:$0xf0] }
 0x47e   :  { %v2517_v25 = vpop.permute.xlu1 %2516 }
 0x47f   :  { %2496 = vmatpush.bf16.msra.mxu2 %v4104_v44  ;;  %v1913_v44 = vadd.f32 %v1912_v51, %v1911_v31  ;;  %v4617_v51 = vld [vmem:[#allocation2 + $0xa40] sm:$0xf0] }
 0x483   :  { %2497 = vmatpush.bf16.msra.mxu2 %v4068_v55 }
 0x485   :  { %2450 = vmatmul.bf16.vlgmr.msrb.gmra.mxu2 %v1941_v48  ;;  %2463 = vmatmul.bf16.vlgmr.msra.gmra.mxu3 %v1941_v48 }
 0x486   :  { %2476 = vmatmul.bf16.vlgmr.msrb.gmra.mxu0 %v1941_v48  ;;  %2489 = vmatmul.bf16.vlgmr.msrb.gmra.mxu1 %v1941_v48 }
 0x487   :  { %2498 = vmatpush.bf16.msra.mxu2 %v4032_v60 }
 0x48b   :  { %2499 = vmatpush.bf16.msra.mxu2 %v3996_v56  ;;  %v4292_v56 = vld [vmem:[#allocation2 + $0xaf8] sm:$0xf] }
 0x48c   :  { %v4293_v2 = vor.u32 %v4629_v63, %v4292_v56  ;;  %v4613_v56 = vld [vmem:[#allocation2 + $0x9f8] sm:$0xf0] }
 0x48d   :  { %v4611_v63 = vld [vmem:[#allocation2 + $0x9dc] sm:$0xf] }
 0x48e   :  { %2771 = vmatpush.bf16.msra.mxu0 %v4293_v2 }
 0x48f   :  { %2500 = vmatpush.bf16.msra.mxu2 %v3960_v54 }
 0x493   :  { %2501 = vmatpush.bf16.msra.mxu2 %v3924_v10  ;;  %v4300_v10 = vld [vmem:[#allocation2 + $0xb00] sm:$0xf] }
 0x496   :  { %2502 = vmatmul.bf16.vlgmr.msra.gmra.mxu2 %v1941_v48  ;;  %v4937_v48 = vld [vmem:[%s5007_s3 + $0x18] sm:$0xff] }
 0x497   :  { %v2862_v17 = vmul.f32 0.9, %v4937_v48 }
 0x4f3   :  { %v2425_v4 = vpop.f32.mrf.mxu0  ;;  %v2438_v5 = vpop.f32.mrf.mxu1 }
 0x4f4   :  { %v2509_v39 = vpack.c.bf16 %v2438_v5, %v2425_v4  ;;  %v4630_v4 = vld [vmem:[#allocation2 + $0xb20] sm:$0xf0]  ;;  %v4297_v5 = vor.u32 %v4627_v1, %v4294_v3  ;;  %v4230_v3 = vld [vmem:[#allocation2 + $0x9fc] sm:$0xf0] }
 0x4f6   :  { %2784 = vmatpush.bf16.msra.mxu1 %v4297_v5  ;;  %v4612_v5 = vld [vmem:[#allocation2 + $0x9e4] sm:$0xf] }
 0x4f8   :  { %v2399_v6 = vpop.f32.mrf.mxu2  ;;  %v2412_v7 = vpop.f32.mrf.mxu3 }
 0x4f9   :  { %v2508_v41 = vpack.c.bf16 %v2412_v7, %v2399_v6  ;;  %v4301_v6 = vor.u32 %v4630_v4, %v4300_v10  ;;  %v4628_v7 = vld [vmem:[#allocation2 + $0xb04] sm:$0xf]  ;;  %v4236_v10 = vld [vmem:[#allocation2 + $0x9e0] sm:$0xf] }
 0x4fa   :  { %v4614_v4 = vld [vmem:[#allocation2 + $0xa00] sm:$0xf0] }
 0x4fb   :  { %v2427_v8 = vpop.f32.mrf.mxu0  ;;  %v2440_v9 = vpop.f32.mrf.mxu1 }
 0x4fc   :  { %v4302_v8 = vld [vmem:[#allocation2 + $0xb24] sm:$0xf0]  ;;  %v4276_v9 = vld [vmem:[#allocation2 + $0xab0] sm:$0xf] }
 0x500   :  { %v2401_v13 = vpop.f32.mrf.mxu2  ;;  %v2414_v14 = vpop.f32.mrf.mxu3 }
 0x501   :  { %v4305_v13 = vor.u32 %v4628_v7, %v4302_v8  ;;  %v4625_v14 = vld [vmem:[#allocation2 + $0xad0] sm:$0xf0] }
 0x503   :  { %v2477_v16 = vpop.f32.mrf.mxu0  ;;  %v2490_v21 = vpop.f32.mrf.mxu1  ;;  %2810 = vmatpush.bf16.msrb.mxu2 %v4305_v13  ;;  %v4233_v13 = vor.u32 %v4611_v63, %v4230_v3 }
 0x504   :  { %v2511_v23 = vpack.c.bf16 %v2490_v21, %v2477_v16  ;;  %v4623_v16 = vld [vmem:[#allocation2 + $0xab4] sm:$0xf]  ;;  %v4278_v21 = vld [vmem:[#allocation2 + $0xad4] sm:$0xf0] }
 0x508   :  { %v2451_v22 = vpop.f32.mrf.mxu2  ;;  %v2464_v24 = vpop.f32.mrf.mxu3 }
 0x509   :  { %v2510_v38 = vpack.c.bf16 %v2464_v24, %v2451_v22  ;;  %v4277_v24 = vor.u32 %v4625_v14, %v4276_v9 }
 0x50b   :  { %v2479_v26 = vpop.f32.mrf.mxu0  ;;  %v2492_v27 = vpop.f32.mrf.mxu1  ;;  %2772 = vmatpush.bf16.msra.mxu0 %v4277_v24 }
 0x50c   :  { %v4281_v26 = vor.u32 %v4623_v16, %v4278_v21  ;;  %v4284_v27 = vld [vmem:[#allocation2 + $0xab8] sm:$0xf]  ;;  %v4212_v16 = vld [vmem:[#allocation2 + $0x990] sm:$0xf]  ;;  %v4609_v21 = vld [vmem:[#allocation2 + $0x9b0] sm:$0xf0] }
 0x50d   :  { %v4213_v24 = vor.u32 %v4609_v21, %v4212_v16 }
 0x50e   :  { %2785 = vmatpush.bf16.msra.mxu1 %v4281_v26  ;;  %v4214_v26 = vld [vmem:[#allocation2 + $0x9b4] sm:$0xf0] }
 0x510   :  { %v2453_v29 = vpop.f32.mrf.mxu2  ;;  %v2466_v32 = vpop.f32.mrf.mxu3 }
 0x511   :  { %v4626_v29 = vld [vmem:[#allocation2 + $0xad8] sm:$0xf0] }
 0x512   :  { %v4624_v32 = vld [vmem:[#allocation2 + $0xabc] sm:$0xf] }
 0x519   :  { %v2503_v34 = vpop.f32.mrf.mxu2 }
 0x51a   :  { %v2512_v35 = vpack.c.bf16 0.0, %v2503_v34 }
 0x51c   :  { %2525 = vmatpush.bf16.msrb.mxu3 %v2512_v35  ;;  %v4285_v35 = vor.u32 %v4626_v29, %v4284_v27  ;;  %v4220_v27 = vld [vmem:[#allocation2 + $0x998] sm:$0xf]  ;;  %v4610_v29 = vld [vmem:[#allocation2 + $0x9b8] sm:$0xf0] }
 0x520   :  { %2526 = vmatpush.bf16.msrb.mxu3 %v2511_v23  ;;  %v4286_v23 = vld [vmem:[#allocation2 + $0xadc] sm:$0xf0] }
 0x521   :  { %v2505_v37 = vpop.f32.mrf.mxu2 }
 0x522   :  { %v4260_v37 = vld [vmem:[#allocation2 + $0xa68] sm:$0xf] }
 0x524   :  { %2527 = vmatpush.bf16.msrb.mxu3 %v2510_v38  ;;  %v4621_v38 = vld [vmem:[#allocation2 + $0xa88] sm:$0xf0] }
 0x528   :  { %2528 = vmatpush.bf16.msrb.mxu3 %v2509_v39  ;;  %v4289_v39 = vor.u32 %v4624_v32, %v4286_v23  ;;  %v4222_v23 = vld [vmem:[#allocation2 + $0x9bc] sm:$0xf0] }
 0x52a   :  { %2811 = vmatpush.bf16.msrb.mxu2 %v4289_v39  ;;  %v4198_v39 = vld [vmem:[#allocation2 + $0x96c] sm:$0xf0] }
 0x52c   :  { %2529 = vmatpush.bf16.msrb.mxu3 %v2508_v41  ;;  %v4619_v41 = vld [vmem:[#allocation2 + $0xa6c] sm:$0xf] }
 0x52f   :  { %4177 = vmatmul.msk.bf16.vlgmr.msrb.gmra.mxu3 %vm1881_vm5, %v2507_v42  ;;  %v4262_v42 = vld [vmem:[#allocation2 + $0xa8c] sm:$0xf0]  ;;  %vm2987_vm5 = vcmask 15360  }
 0x530   :  { %2797 = vmatpush.bf16.msra.mxu3 %v4301_v6  ;;  %v4238_v6 = vld [vmem:[#allocation2 + $0xa04] sm:$0xf0] }
 0x531   :  { %v4241_v14 = vor.u32 %v4612_v5, %v4238_v6 }
 0x534   :  { %2798 = vmatpush.bf16.msra.mxu3 %v4285_v35  ;;  %v4608_v35 = vld [vmem:[#allocation2 + $0x99c] sm:$0xf] }
 0x5b2   :  { %v2531_v36 = vpop.f32.mrf.mxu3 }
 0x5b3   :  { %v2532_v43 = vadd.f32 %v2531_v36, %v2517_v25  ;;  %v4261_v36 = vor.u32 %v4621_v38, %v4260_v37  ;;  %v4196_v37 = vld [vmem:[#allocation2 + $0x948] sm:$0xf]  ;;  %v4605_v38 = vld [vmem:[#allocation2 + $0x968] sm:$0xf0] }
 0x5b5   :  { %v2535_v46 = vmax.f32 %v2532_v43, 0.0  ;;  %v4268_v43 = vld [vmem:[#allocation2 + $0xa70] sm:$0xf]  ;;  %2773 = vmatpush.bf16.msra.mxu0 %v4261_v36  ;;  %v4604_v36 = vld [vmem:[#allocation2 + $0x954] sm:$0xf] }
 0x5b7   :  { %v4929_v30 = vsel %vm2536_vm10, %v2535_v46, 0.0  ;;  %v4622_v46 = vld [vmem:[#allocation2 + $0xa90] sm:$0xf0]  ;;  %vm2997_vm10 = vcmask 56320  }
 0x5b8   :  { %2539 = vadd.xlane.f32.xlu2 %v4929_v30  ;;  %v2538_v33 = vmul.f32 %v4929_v30, %v4929_v30  ;;  %v4269_v49 = vor.u32 %v4622_v46, %v4268_v43  ;;  %v4206_v46 = vld [vmem:[#allocation2 + $0x974] sm:$0xf0] }
 0x5ba   :  { %v2533_v47 = vpop.f32.mrf.mxu3  ;;  %2541 = vadd.xlane.f32.xlu0 %v2538_v33  ;;  %v4620_v33 = vld [vmem:[#allocation2 + $0xa74] sm:$0xf]  ;;  %2799 = vmatpush.bf16.msra.mxu3 %v4269_v49  ;;  %v4601_v49 = vld [vmem:[#allocation2 + $0x920] sm:$0xf0] }
 0x5bb   :  { %v4265_v47 = vor.u32 %v4619_v41, %v4262_v42  ;;  %v4273_v52 = vor.u32 %v4620_v33, %v4270_v50  ;;  %v4204_v42 = vld [vmem:[#allocation2 + $0x950] sm:$0xf]  ;;  %v4209_v33 = vor.u32 %v4604_v36, %v4206_v46  ;;  %v4599_v50 = vld [vmem:[#allocation2 + $0x904] sm:$0xf] }
 0x5bd   :  { %2786 = vmatpush.bf16.msra.mxu1 %v4265_v47  ;;  %2812 = vmatpush.bf16.msrb.mxu2 %v4273_v52  ;;  %v4180_v47 = vld [vmem:[#allocation2 + $0x900] sm:$0xf]  ;;  %v4602_v52 = vld [vmem:[#allocation2 + $0x928] sm:$0xf0] }
 0x5ce   :  { %2888 = vperm.xlu0 %4653, %v4937_v48  }
 0x5d6   :  { %2958 = vrot.lane.b32.xlu0 %v140_v19, %s4695_s24  ;;  %v4244_v19 = vld [vmem:[#allocation2 + $0xa20] sm:$0xf] }
 0x5de   :  { %2962 = vrot.lane.b32.xlu0 %v1913_v44, %s4696_s25  ;;  %v4615_v44 = vld [vmem:[#allocation2 + $0xa24] sm:$0xf] }
 0x5e6   :  { %2966 = vrot.lane.b32.xlu0 %v1916_v20, %s4696_s25  ;;  %v4252_v20 = vld [vmem:[#allocation2 + $0xa28] sm:$0xf] }
 0x62b   :  { %v2540_v12 = vpop.xlane.xlu2 %2539 }
 0x62c   :  { %v4946_v55 = vmul.f32 0.125, %v2540_v12  ;;  %v4618_v12 = vld [vmem:[#allocation2 + $0xa48] sm:$0xf0] }
 0x62d   :  { %v2542_v57 = vpop.xlane.xlu0 %2541 }
 0x62e   :  { %v2545_v58 = vmul.f32 %v4946_v55, %v4946_v55  ;;  %v2544_v59 = vmul.f32 0.125, %v2542_v57  ;;  %v4616_v57 = vld [vmem:[#allocation2 + $0xa2c] sm:$0xf] }
 0x630   :  { %v2546_v60 = vsub.f32 %v2544_v59, %v2545_v58  ;;  %v4245_v59 = vor.u32 %v4617_v51, %v4244_v19  ;;  %v4181_v19 = vor.u32 %v4601_v49, %v4180_v47  ;;  %v4182_v51 = vld [vmem:[#allocation2 + $0x924] sm:$0xf0] }
 0x632   :  { %v2547_v53 = vmax.f32 %v2546_v60, 0.0  ;;  %v4254_v60 = vld [vmem:[#allocation2 + $0xa4c] sm:$0xf0]  ;;  %2774 = vmatpush.bf16.msra.mxu0 %v4245_v59  ;;  %v2566_v59 = vsub.f32 %v4929_v30, %v4946_v55  ;;  %v2823_v30 = vld [vmem:[%s5006_s2 + $0xc] sm:$0xf] }
 0x633   :  { %v4257_v2 = vor.u32 %v4616_v57, %v4254_v60 }
 0x634   :  { %v2551_v61 = vmul.f32 1.1428572, %v2547_v53  ;;  %v4950_v18 = vadd.f32 1e-05, %v2547_v53  ;;  %v4249_v53 = vor.u32 %v4615_v44, %v4246_v45  ;;  %v4185_v44 = vor.u32 %v4599_v50, %v4182_v51 }
 0x635   :  { %2813 = vmatpush.bf16.msrb.mxu2 %v4257_v2 }
 0x636   :  { %v2552_v11 = vmul.f32 0.1, %v2551_v61  ;;  %4659 = vrsqrt.f32 %v4950_v18  ;;  %v4253_v61 = vor.u32 %v4618_v12, %v4252_v20  ;;  %vm2561_vm12 = vweird.f32 %v4950_v18  ;;  %2787 = vmatpush.bf16.msra.mxu1 %v4249_v53  ;;  %v4600_v20 = vld [vmem:[#allocation2 + $0x90c] sm:$0xf]  ;;  %v4190_v12 = vld [vmem:[#allocation2 + $0x92c] sm:$0xf0] }
 0x637   :  { %v4193_v57 = vor.u32 %v4600_v20, %v4190_v12 }
 0x638   :  { %v4957_v54 = vadd.f32 %v2552_v11, %v4954_v62  ;;  %v4228_v11 = vld [vmem:[#allocation2 + $0x9d8] sm:$0xf]  ;;  %2800 = vmatpush.bf16.msra.mxu3 %v4253_v61 }
 0x639   :  { %v4229_v8 = vor.u32 %v4613_v56, %v4228_v11  ;;  %2814 = vmatpush.bf16.msrb.mxu2 %v4241_v14 }
 0x63a   :  { %2788 = vmatpush.bf16.msra.mxu1 %v4233_v13 }
 0x63b   :  { %2775 = vmatpush.bf16.msra.mxu0 %v4229_v8 }
 0x63c   :  { %v4959_v22 = vpop.eup %4659 }
 0x63d   :  { %v2556_v34 = vmul.f32 %v4959_v22, %v4950_v18  ;;  %vm2562_vm11 = vweird.f32 %v4959_v22  ;;  %v4237_v18 = vor.u32 %v4614_v4, %v4236_v10 }
 0x63e   :  { %vm2563_vm13 = vmor %vm2561_vm12, %vm2562_vm11 }
 0x63f   :  { %v2557_v25 = vmul.f32 %v4959_v22, %v2556_v34  ;;  %2801 = vmatpush.bf16.msra.mxu3 %v4237_v18  ;;  %v4221_v34 = vor.u32 %v4610_v29, %v4220_v27  ;;  %2776 = vmatpush.bf16.msra.mxu0 %v4213_v24 }
 0x640   :  { %v2889_v49 = vpop.permute.xlu0 %2888 }
 0x641   :  { %v2558_v31 = vmul.f32 0.5, %v2557_v25  ;;  %v4606_v25 = vld [vmem:[#allocation2 + $0x970] sm:$0xf0] }
 0x642   :  { %v4205_v43 = vor.u32 %v4606_v25, %v4204_v42 }
 0x643   :  { %v2559_v58 = vsub.f32 1.5, %v2558_v31  ;;  %2802 = vmatpush.bf16.msra.mxu3 %v4221_v34  ;;  %v4188_v31 = vld [vmem:[#allocation2 + $0x908] sm:$0xf] }
 0x644   :  { %v4189_v45 = vor.u32 %v4602_v52, %v4188_v31 }
 0x645   :  { %v2560_v1 = vmul.f32 %v4959_v22, %v2559_v58 }
 0x647   :  { %v2564_v7 = vsel %vm2563_vm13, %v4959_v22, %v2560_v1  ;;  %v4607_v22 = vld [vmem:[#allocation2 + $0x994] sm:$0xf]  ;;  %2803 = vmatpush.bf16.msra.mxu3 %v4205_v43 }
 0x648   :  { %v2565_v9 = vmul.f32 %v2564_v7, %v4920_v28  ;;  %v4217_v32 = vor.u32 %v4607_v22, %v4214_v26  ;;  %v2549_v22 = vmul.f32 0.1, %v4946_v55 }
 0x64a   :  { %2569 = vperm.xlu1 %4649, %v2565_v9   ;;  %2789 = vmatpush.bf16.msra.mxu1 %v4217_v32  ;;  %v2550_v24 = vadd.f32 %v2549_v22, %v4954_v62 }
 0x64b   :  { %2804 = vmatpush.bf16.msra.mxu3 %v4189_v45 }
 0x652   :  { %4650 = vset.pattern.permute.xlu1 %v4694_v40  ;;  %v4225_v40 = vor.u32 %v4608_v35, %v4222_v23 }
 0x653   :  { %2574 = vperm.xlu1 %4650, %v4920_v28   ;;  %v4603_v28 = vld [vmem:[#allocation2 + $0x94c] sm:$0xf] }
 0x654   :  { %v4201_v41 = vor.u32 %v4603_v28, %v4198_v39  ;;  %2815 = vmatpush.bf16.msrb.mxu2 %v4225_v40 }
 0x656   :  { %2790 = vmatpush.bf16.msra.mxu1 %v4201_v41 }
 0x658   :  { %2816 = vmatpush.bf16.msrb.mxu2 %v4209_v33 }
 0x65a   :  { %2791 = vmatpush.bf16.msra.mxu1 %v4185_v44 }
 0x65b   :  { %4651 = vset.pattern.permute.xlu1 %v4692_v0  ;;  %v4197_v0 = vor.u32 %v4605_v38, %v4196_v37 }
 0x65c   :  { %2829 = vperm.xlu1 %4651, %v4937_v48   ;;  %2817 = vmatpush.bf16.msrb.mxu2 %v4193_v57 }
 0x65d   :  { %2777 = vmatpush.bf16.msra.mxu0 %v4197_v0 }
 0x661   :  { %2778 = vmatpush.bf16.msra.mxu0 %v4181_v19  ;;  %v2892_v19 = vld [vmem:[%s5006_s2 + $0x10] sm:$0xf] }
 0x662   :  { %v2893_v51 = vunpack.c.l.bf16 %v2892_v19 }
 0x664   :  { %2947 = vmatpush.msrb.mxu1 %v2893_v51 }
 0x6bc   :  { %v2570_v58 = vpop.permute.xlu1 %2569 }
 0x6bd   :  { %v2572_v60 = vmul.f32 %v2570_v58, %v2566_v59 }
 0x6c5   :  { %v2575_v53 = vpop.permute.xlu1 %2574 }
 0x6c6   :  { %v2577_v61 = vadd.f32 %v2575_v53, %v2572_v60 }
 0x6c8   :  { %v2578_v11 = vpack.c.bf16 %v2577_v61, %v2577_v61 }
 0x6ca   :  { %2779 = vmatmul.bf16.vlgmr.msra.gmra.mxu0 %v2578_v11  ;;  %2792 = vmatmul.bf16.vlgmr.msra.gmra.mxu1 %v2578_v11 }
 0x6cb   :  { %2805 = vmatmul.bf16.vlgmr.msra.gmra.mxu3 %v2578_v11  ;;  %2818 = vmatmul.bf16.vlgmr.msrb.gmra.mxu2 %v2578_v11 }
 0x6ce   :  { %v2830_v8 = vpop.permute.xlu1 %2829 }
 0x747   :  { %v2780_v56 = vpop.f32.mrf.mxu0  ;;  %v2793_v63 = vpop.f32.mrf.mxu1 }
 0x748   :  { %v2824_v5 = vpack.c.bf16 %v2793_v63, %v2780_v56  ;;  %v4654_v63 = vld [vmem:[%s5007_s3 + $0x20] ss:$0 sm:$0xff] }
 0x74e   :  { %v2806_v1 = vpop.f32.mrf.mxu3  ;;  %v2819_v2 = vpop.f32.mrf.mxu2 }
 0x74f   :  { %v2825_v3 = vpack.c.bf16 %v2819_v2, %v2806_v1  ;;  %v2782_v10 = vpop.f32.mrf.mxu0  ;;  %v2795_v4 = vpop.f32.mrf.mxu1 }
 0x751   :  { %2842 = vmatpush.bf16.msrb.mxu0 %v2825_v3 }
 0x755   :  { %2843 = vmatpush.bf16.msrb.mxu0 %v2824_v5 }
 0x756   :  { %v2808_v6 = vpop.f32.mrf.mxu3  ;;  %v2821_v7 = vpop.f32.mrf.mxu2 }
 0x758   :  { %4306 = vmatmul.msk.bf16.vlgmr.msrb.gmra.mxu0 %vm2832_vm14, %v2823_v30 }
 0x7d5   :  { %v2845_v9 = vpop.f32.mrf.mxu0 }
 0x7d6   :  { %v2846_v13 = vadd.f32 %v2845_v9, %v2830_v8 }
 0x7d8   :  { %v2849_v18 = vmax.f32 %v2846_v13, 0.0 }
 0x7da   :  { %v2851_v14 = vsel %vm2850_vm15, %v2849_v18, 0.0 }
 0x7db   :  { %2853 = vadd.xlane.f32.xlu2 %v2851_v14  ;;  %v2852_v16 = vmul.f32 %v2851_v14, %v2851_v14 }
 0x7dd   :  { %2855 = vadd.xlane.f32.xlu1 %v2852_v16  ;;  %v2847_v21 = vpop.f32.mrf.mxu0 }
 0x7f6   :  { %2954 = vrot.lane.b32.xlu1 %v4804_v15, %s4695_s24 }
 0x7fe   :  { %2970 = vrot.lane.b32.xlu1 %v2550_v24, %s4697_s28 }
 0x84e   :  { %v2854_v26 = vpop.xlane.xlu2 %2853 }
 0x84f   :  { %v2857_v27 = vmul.f32 0.5, %v2854_v26 }
 0x850   :  { %v2856_v29 = vpop.xlane.xlu1 %2855 }
 0x851   :  { %v2863_v32 = vmul.f32 0.1, %v2857_v27  ;;  %v2859_v34 = vmul.f32 %v2857_v27, %v2857_v27  ;;  %v2858_v35 = vmul.f32 0.5, %v2856_v29  ;;  %v2880_v46 = vsub.f32 %v2851_v14, %v2857_v27 }
 0x853   :  { %v2860_v23 = vsub.f32 %v2858_v35, %v2859_v34  ;;  %v2864_v37 = vadd.f32 %v2863_v32, %v2862_v17 }
 0x855   :  { %v2861_v40 = vmax.f32 %v2860_v23, 0.0  ;;  %2978 = vrot.lane.b32.xlu0 %v2864_v37, %s4698_s1 }
 0x857   :  { %v2865_v15 = vmul.f32 2.0, %v2861_v40  ;;  %v2868_v55 = vadd.f32 1e-05, %v2861_v40 }
 0x859   :  { %v2866_v38 = vmul.f32 0.1, %v2865_v15  ;;  %4661 = vrsqrt.f32 %v2868_v55  ;;  %vm2875_vm1 = vweird.f32 %v2868_v55 }
 0x85b   :  { %v2867_v62 = vadd.f32 %v2866_v38, %v2862_v17 }
 0x85d   :  { %2982 = vrot.lane.b32.xlu1 %v2867_v62, %s4698_s1 }
 0x85f   :  { %v4662_v28 = vpop.eup %4661 }
 0x860   :  { %v2870_v39 = vmul.f32 %v4662_v28, %v2868_v55  ;;  %vm2876_vm0 = vweird.f32 %v4662_v28 }
 0x861   :  { %vm2877_vm2 = vmor %vm2875_vm1, %vm2876_vm0 }
 0x862   :  { %v2871_v0 = vmul.f32 %v4662_v28, %v2870_v39 }
 0x864   :  { %v2872_v41 = vmul.f32 0.5, %v2871_v0 }
 0x866   :  { %v2873_v42 = vsub.f32 1.5, %v2872_v41 }
 0x868   :  { %v2874_v25 = vmul.f32 %v4662_v28, %v2873_v42  ;;  %v2955_v44 = vpop.permute.xlu1 %2954 }
 0x86a   :  { %v2878_v36 = vsel %vm2877_vm2, %v4662_v28, %v2874_v25 }
 0x86b   :  { %v2879_v43 = vmul.f32 %v2878_v36, %v4937_v48  ;;  %v2959_v48 = vpop.permute.xlu0 %2958 }
 0x86c   :  { %v2986_v20 = vsel %vm2985_vm4, %v2955_v44, %v2959_v48 }
 0x86d   :  { %2883 = vperm.xlu2 %4652, %v2879_v43  }
 0x870   :  { %v2971_v12 = vpop.permute.xlu1 %2970 }
 0x873   :  { %v2963_v52 = vpop.permute.xlu0 %2962 }
 0x874   :  { %v2988_v57 = vsel %vm2987_vm5, %v2986_v20, %v2963_v52 }
 0x87b   :  { %v2967_v45 = vpop.permute.xlu0 %2966 }
 0x87c   :  { %v2990_v58 = vsel %vm2989_vm6, %v2988_v57, %v2967_v45 }
 0x87d   :  { %v2992_v59 = vsel %vm2991_vm7, %v2990_v58, %v2971_v12 }
 0x8c7   :  { %v2884_v33 = vpop.permute.xlu2 %2883  ;;  %v2979_v60 = vpop.permute.xlu0 %2978 }
 0x8c8   :  { %v2886_v47 = vmul.f32 %v2884_v33, %v2880_v46 }
 0x8ca   :  { %v2891_v50 = vadd.f32 %v2889_v49, %v2886_v47 }
 0x8cc   :  { %2896 = vxpose.xlu2.b32.start.end [1/1] (short) (narrow) %v2891_v50, 8 }
 0x8cf   :  { %v2983_v61 = vpop.permute.xlu1 %2982 }
 0x935   :  { %2974 = vrot.lane.b32.xlu2 %v4957_v54, %s4697_s28 }
 0x965   :  { %v2912_v31 = vpop.trf.xlu2 }
 0x966   :  { %4307 = vmatmul.msk.f32.vlgmr.msrb.gmra.mxu1 %vm2928_vm3, %v2912_v31 }
 0x98f   :  { %v2975_v54 = vpop.permute.xlu2 %2974 }
 0x990   :  { %v2994_v53 = vsel %vm2993_vm8, %v2992_v59, %v2975_v54 }
 0x991   :  { %v2996_v11 = vsel %vm2995_vm9, %v2994_v53, %v2979_v60 }
 0x992   :  { %v2998_v56 = vsel %vm2997_vm10, %v2996_v11, %v2983_v61 }
 0x993   :  { %2999 = vst.msk [vmem:[%s5009_s5] sm:$0xff] %vm2928_vm3, %v2998_v56 }
 0x9e3   :  { %v2949_v1 = vpop.f32.mrf.mxu1 }
 0x9e4   :  { %v2950_v2 = vadd.f32 %v4654_v63, %v2949_v1 }
 0x9e6   :  { %2952 = vst [vmem:[%s5008_s4] sm:$0xff] %v2950_v2 }
 0x9e7   :  { %3008 = vsyncpa [#allocation3], 1 }

</bundles_post_ra>
